<compile_context>
chip_gen: v7x
topology: tpu7x:2x2x1
jax: 0.10.0
libtpu: 0.0.40
codegen_flags: <defaults>
</compile_context>

<pallas_src>
import functools

import jax
import jax.numpy as jnp
from jax import lax
from jax.experimental import pallas as pl
from jax.experimental.pallas import tpu as pltpu

EPS = 1e-5


def _conv_bn_add_relu_kernel(w_ref, x_ref, gamma_ref, beta_ref, res_ref, o_ref):
    # w_ref:     (TC, Cin)   -- slice of conv weight (channels-major, no transpose)
    # x_ref:     (Cin, M)    -- full input, M = H*W spatial positions
    # gamma_ref: (TC, 1)
    # beta_ref:  (TC, 1)
    # res_ref:   (TC, M)     -- residual slice
    # o_ref:     (TC, M)
    y = jnp.dot(w_ref[...], x_ref[...], preferred_element_type=jnp.float32)

    # Training-mode BatchNorm, single pass over y: per-output-channel mean and
    # biased variance over the N*H*W (= M, since N == 1) positions.  M is never
    # tiled, so the statistics are exact per Cout tile.
    inv_m = 1.0 / y.shape[-1]
    s = jnp.sum(y, axis=-1, keepdims=True)
    sq = jnp.sum(y * y, axis=-1, keepdims=True)
    mean = s * inv_m
    var = sq * inv_m - mean * mean

    # Fold gamma * inv_std into a single per-channel scale (fewer live temps).
    scale = gamma_ref[...] * lax.rsqrt(var + EPS)
    o_ref[...] = jnp.maximum((y - mean) * scale + (beta_ref[...] + res_ref[...]), 0.0)


def _pick_tile_cout(cout):
    """Multi-step Cout tiling on every generation (no device sniffing).

    Prefer 4 grid steps (>=256 rows each) so Pallas double-buffers the weight
    DMA on v5e/v6e and megacore-shards 2 steps per core on v7x; fall back to
    2 steps, then a single step if Cout is too small / oddly shaped.
    """
    for steps in (4, 2):
        tile = cout // steps
        if cout % steps == 0 and tile % 8 == 0 and tile >= 256:
            return tile
    return cout


@functools.partial(jax.jit, static_argnames=("tile_cout",))
def _conv_bn_add_relu_impl(x328, x322, w, gamma, beta, tile_cout):
    n, cin, h, wdim = x328.shape
    cout = w.shape[0]
    m = h * wdim
    assert n == 1, "channels-major fast path assumes N == 1 (as in the module)"
    assert cout % tile_cout == 0 and tile_cout % 8 == 0

    # N == 1 NCHW is already channels-major & contiguous: pure reshapes only.
    x_mat = x328.reshape(cin, m)        # (Cin, M)
    res_mat = x322.reshape(cout, m)     # (Cout, M)
    w_mat = w.reshape(cout, cin)        # (Cout, Cin)  -- no .T materialization
    gamma2 = gamma.reshape(cout, 1)
    beta2 = beta.reshape(cout, 1)

    grid = (cout // tile_cout,)
    cost = pl.CostEstimate(
        flops=2 * m * cin * cout,
        transcendentals=0,
        bytes_accessed=4 * (cout * cin + cin * m + 2 * cout * m + 2 * cout),
    )

    out_mat = pl.pallas_call(
        _conv_bn_add_relu_kernel,
        out_shape=jax.ShapeDtypeStruct((cout, m), jnp.float32),
        grid_spec=pltpu.PrefetchScalarGridSpec(
            num_scalar_prefetch=0,
            grid=grid,
            in_specs=[
                pl.BlockSpec((tile_cout, cin), lambda j: (j, 0)),  # W slice (dominant DMA)
                pl.BlockSpec((cin, m), lambda j: (0, 0)),          # x (whole, reused)
                pl.BlockSpec((tile_cout, 1), lambda j: (j, 0)),    # gamma slice
                pl.BlockSpec((tile_cout, 1), lambda j: (j, 0)),    # beta slice
                pl.BlockSpec((tile_cout, m), lambda j: (j, 0)),    # residual slice
            ],
            out_specs=pl.BlockSpec((tile_cout, m), lambda j: (j, 0)),
        ),
        compiler_params=pltpu.CompilerParams(
            dimension_semantics=("parallel",),
        ),
        cost_estimate=cost,
    )(w_mat, x_mat, gamma2, beta2, res_mat)

    # (Cout, M) -> (1, Cout, H, W): a reshape, no transpose.
    return out_mat.reshape(1, cout, h, wdim)


def conv_bn_add_relu(x328, x322, w, gamma, beta):
    return _conv_bn_add_relu_impl(
        x328, x322, w, gamma, beta, tile_cout=_pick_tile_cout(w.shape[0])
    )


def _reference(x328, x322, w, gamma, beta):
    n, cin, h, wdim = x328.shape
    cout = w.shape[0]
    x_mat = jnp.transpose(x328, (0, 2, 3, 1)).reshape(-1, cin)
    y = x_mat @ w.reshape(cout, cin).T
    mean = jnp.mean(y, axis=0, keepdims=True)
    var = jnp.mean((y - mean) ** 2, axis=0, keepdims=True)
    yn = gamma.reshape(1, -1) * (y - mean) / jnp.sqrt(var + EPS) + beta.reshape(1, -1)
    yn = jnp.transpose(yn.reshape(n, h, wdim, cout), (0, 3, 1, 2))
    return jnp.maximum(yn + x322, 0.0)


if __name__ == "__main__":
    # Shapes implied by the module: x328 (1, 512, 7, 7), x322 (1, 2048, 7, 7).
    N, CIN, COUT, H, W = 1, 512, 2048, 7, 7

    key = jax.random.PRNGKey(0)
    k1, k2, k3, k4, k5 = jax.random.split(key, 5)
    x328 = jax.random.normal(k1, (N, CIN, H, W), dtype=jnp.float32)
    x322 = jax.random.normal(k2, (N, COUT, H, W), dtype=jnp.float32)
    # Conv2d(512, 2048, kernel_size=1, bias=False) weight: (2048, 512, 1, 1)
    w = jax.random.normal(k3, (COUT, CIN, 1, 1), dtype=jnp.float32) * 0.02
    # BatchNorm2d(2048) affine params (deterministic, non-trivial)
    gamma = 1.0 + 0.1 * jax.random.normal(k4, (COUT,), dtype=jnp.float32)
    beta = 0.1 * jax.random.normal(k5, (COUT,), dtype=jnp.float32)

    out = jax.block_until_ready(conv_bn_add_relu(x328, x322, w, gamma, beta))
    ref = jax.block_until_ready(_reference(x328, x322, w, gamma, beta))
    if not jnp.allclose(out, ref, atol=1e-3, rtol=1e-3):
        raise AssertionError("Pallas kernel output mismatch vs reference")

    print("KERNEL_OK")
</pallas_src>

<mosaic_0001>
module attributes {stable_mosaic.version = 11 : i64} {
  func.func @_conv_bn_add_relu_kernel(%arg0: i32, %arg1: memref<512x512xf32, #tpu.memory_space<vmem>>, %arg2: memref<512x49xf32, #tpu.memory_space<vmem>>, %arg3: memref<512x1xf32, #tpu.memory_space<vmem>>, %arg4: memref<512x1xf32, #tpu.memory_space<vmem>>, %arg5: memref<512x49xf32, #tpu.memory_space<vmem>>, %arg6: memref<512x49xf32, #tpu.memory_space<vmem>>) attributes {dimension_semantics = [#tpu.dimension_semantics<parallel>], iteration_bounds = array<i64: 4>, scalar_prefetch = 0 : i64, scratch_operands = 0 : i64, tpu.core_type = #tpu.core_type<tc>, window_params = [{transform_indices = @transform_0, window_bounds = array<i64: 512, 512>}, {pipeline_mode = #tpu.pipeline_mode<synchronous>, transform_indices = @transform_1, window_bounds = array<i64: 512, 49>}, {transform_indices = @transform_2, window_bounds = array<i64: 512, 1>}, {transform_indices = @transform_3, window_bounds = array<i64: 512, 1>}, {transform_indices = @transform_4, window_bounds = array<i64: 512, 49>}, {transform_indices = @transform_5, window_bounds = array<i64: 512, 49>}]} {
    %c0 = arith.constant 0 : index
    %c0_0 = arith.constant 0 : index
    %0 = vector.load %arg1[%c0, %c0_0] : memref<512x512xf32, #tpu.memory_space<vmem>>, vector<512x512xf32>
    %c0_1 = arith.constant 0 : index
    %c0_2 = arith.constant 0 : index
    %1 = vector.load %arg2[%c0_1, %c0_2] : memref<512x49xf32, #tpu.memory_space<vmem>>, vector<512x49xf32>
    %cst = arith.constant dense<0.000000e+00> : vector<512x49xf32>
    %2 = tpu.matmul %0, %1, %cst {dimension_numbers = #tpu.dot_dimension_numbers<[1], [0], [0], [1], [0, 0, 1, 1], [], []>} : vector<512x512xf32>, vector<512x49xf32>, vector<512x49xf32> -> vector<512x49xf32>
    %cst_3 = arith.constant dense<0.000000e+00> : vector<512xf32>
    %3 = vector.multi_reduction <add>, %2, %cst_3 [1] : vector<512x49xf32> to vector<512xf32>
    %4 = vector.shape_cast %3 : vector<512xf32> to vector<512x1xf32>
    %5 = arith.mulf %2, %2 : vector<512x49xf32>
    %cst_4 = arith.constant dense<0.000000e+00> : vector<512xf32>
    %6 = vector.multi_reduction <add>, %5, %cst_4 [1] : vector<512x49xf32> to vector<512xf32>
    %7 = vector.shape_cast %6 : vector<512xf32> to vector<512x1xf32>
    %cst_5 = arith.constant 0.0204081628 : f32
    %8 = vector.broadcast %cst_5 : f32 to vector<512x1xf32>
    %9 = arith.mulf %4, %8 : vector<512x1xf32>
    %cst_6 = arith.constant 0.0204081628 : f32
    %10 = vector.broadcast %cst_6 : f32 to vector<512x1xf32>
    %11 = arith.mulf %7, %10 : vector<512x1xf32>
    %12 = arith.mulf %9, %9 : vector<512x1xf32>
    %13 = arith.subf %11, %12 : vector<512x1xf32>
    %c0_7 = arith.constant 0 : index
    %c0_8 = arith.constant 0 : index
    %14 = vector.load %arg3[%c0_7, %c0_8] : memref<512x1xf32, #tpu.memory_space<vmem>>, vector<512x1xf32>
    %cst_9 = arith.constant 9.99999974E-6 : f32
    %15 = vector.broadcast %cst_9 : f32 to vector<512x1xf32>
    %16 = arith.addf %13, %15 : vector<512x1xf32>
    %17 = math.rsqrt %16 : vector<512x1xf32>
    %18 = arith.mulf %14, %17 : vector<512x1xf32>
    %19 = vector.broadcast %9 : vector<512x1xf32> to vector<512x49xf32>
    %20 = arith.subf %2, %19 : vector<512x49xf32>
    %21 = vector.broadcast %18 : vector<512x1xf32> to vector<512x49xf32>
    %22 = arith.mulf %20, %21 : vector<512x49xf32>
    %c0_10 = arith.constant 0 : index
    %c0_11 = arith.constant 0 : index
    %23 = vector.load %arg4[%c0_10, %c0_11] : memref<512x1xf32, #tpu.memory_space<vmem>>, vector<512x1xf32>
    %c0_12 = arith.constant 0 : index
    %c0_13 = arith.constant 0 : index
    %24 = vector.load %arg5[%c0_12, %c0_13] : memref<512x49xf32, #tpu.memory_space<vmem>>, vector<512x49xf32>
    %25 = vector.broadcast %23 : vector<512x1xf32> to vector<512x49xf32>
    %26 = arith.addf %25, %24 : vector<512x49xf32>
    %27 = arith.addf %22, %26 : vector<512x49xf32>
    %cst_14 = arith.constant 0.000000e+00 : f32
    %28 = vector.broadcast %cst_14 : f32 to vector<512x49xf32>
    %29 = arith.maximumf %27, %28 : vector<512x49xf32>
    %c0_15 = arith.constant 0 : index
    %c0_16 = arith.constant 0 : index
    %30 = vector.load %arg6[%c0_15, %c0_16] : memref<512x49xf32, #tpu.memory_space<vmem>>, vector<512x49xf32>
    tpu.vector_store %arg6[%c0_15, %c0_16], %29 {strides = array<i32>} : memref<512x49xf32, #tpu.memory_space<vmem>>, vector<512x49xf32>,
    return
  }
  func.func @transform_0(%arg0: i32) -> (i32, i32) {
    %c0_i32 = arith.constant 0 : i32
    %c0_i32_0 = arith.constant 0 : i32
    return %arg0, %c0_i32 : i32, i32
  }
  func.func @transform_1(%arg0: i32) -> (i32, i32) {
    %c0_i32 = arith.constant 0 : i32
    %c0_i32_0 = arith.constant 0 : i32
    %c0_i32_1 = arith.constant 0 : i32
    return %c0_i32, %c0_i32_0 : i32, i32
  }
  func.func @transform_2(%arg0: i32) -> (i32, i32) {
    %c0_i32 = arith.constant 0 : i32
    %c0_i32_0 = arith.constant 0 : i32
    return %arg0, %c0_i32 : i32, i32
  }
  func.func @transform_3(%arg0: i32) -> (i32, i32) {
    %c0_i32 = arith.constant 0 : i32
    %c0_i32_0 = arith.constant 0 : i32
    return %arg0, %c0_i32 : i32, i32
  }
  func.func @transform_4(%arg0: i32) -> (i32, i32) {
    %c0_i32 = arith.constant 0 : i32
    %c0_i32_0 = arith.constant 0 : i32
    return %arg0, %c0_i32 : i32, i32
  }
  func.func @transform_5(%arg0: i32) -> (i32, i32) {
    %c0_i32 = arith.constant 0 : i32
    %c0_i32_0 = arith.constant 0 : i32
    return %arg0, %c0_i32 : i32, i32
  }
}

</mosaic_0001>

<bundles_post_ra>
// kernel: _conv_bn_add_relu_impl.1
= control target key start
LH: loop header
LB: loop body
LE: loop exit
PB: predicated region body
PF: predicated region fallthrough
CT: control target
= control target key end

     0   :  { %s3951_s18 = smov 0   ;;  %s6190_s0 = inlined_call_operand.vmem [shape: f32[2048,512], index: 0, kind: input, shape index: {}]   ;;  %s6191_s1 = inlined_call_operand.vmem [shape: f32[512,49], index: 1, kind: input, shape index: {}]   ;;  %s6192_s2 = inlined_call_operand.vmem [shape: f32[2048,1], index: 2, kind: input, shape index: {}]   ;;  %s6193_s3 = inlined_call_operand.vmem [shape: f32[2048,1], index: 3, kind: input, shape index: {}]   ;;  %s6194_s4 = inlined_call_operand.vmem [shape: f32[2048,49], index: 4, kind: input, shape index: {}]   ;;  %s6195_s5 = inlined_call_operand.vmem [shape: f32[2048,49], index: 5, kind: output, shape index: {}]  }
   0x1 LB: > { %s3592_s19 = sadd.s32 4294967295, %s3917_s18   ;;  %p3596_p0 = scmp.ge.s32.totalorder %s3917_s18, 1  ;;  %s3917_s18 = sphi %s3951_s18, %s15_s18  }
   0x2   : > { %p222_p1 = scmp.lt.s32.totalorder %s3917_s18, 5 }
   0x4   : > { %p223_p2 = pnand %p3596_p0, %p222_p1 }
   0x6   : > { %226 = sbr.rel (%p223_p2) target bundleno = 1408 (0x580), region = 40 }
   0xd   : > { %v553_v0 = vld [vmem:[%s6191_s1] sm:$0xff]  ;;  %v554_v1 = vld [vmem:[%s6191_s1 + $0x8] sm:$0xff]  ;;  %s3597_s26 = sshll.u32 %s3592_s19, 6  ;;  %v3919_v3 = vmov 0.0|0.0   ;;  %v555_v6 = vld [vmem:[%s6191_s1 + $0x10] sm:$0xff]  ;;  %v3920_v11 = vmov 0  }
   0xe   : > { %v585_v2 = vld [vmem:[%s6191_s1 + $0x100] sm:$0xff]  ;;  %3611 = vmatprep.subr.bf16.mxu1 %v3919_v3  ;;  %3659 = vmatprep.subr.bf16.mxu0 %v3919_v3  ;;  %v3612_v4 = vpack.c.bf16 %v554_v1, %v553_v0  ;;  %v586_v5 = vld [vmem:[%s6191_s1 + $0x108] sm:$0xff]  ;;  %v556_v7 = vld [vmem:[%s6191_s1 + $0x18] sm:$0xff]  ;;  %p267_p3 = scmp.lt.s32.totalorder %s3597_s26, 255  ;;  %vm1387_vm0 = vcmask 400384  }
   0xf   : > { %v3660_v8 = vpack.c.bf16 %v586_v5, %v585_v2  ;;  %v587_v9 = vld [vmem:[%s6191_s1 + $0x110] sm:$0xff]  ;;  %v588_v10 = vld [vmem:[%s6191_s1 + $0x118] sm:$0xff]  ;;  %3781 = vset.pattern.permute.xlu1 %v3920_v11  ;;  %3782 = vset.pattern.permute.xlu0 %v3920_v11  ;;  %v3615_v12 = vpack.c.bf16 %v556_v7, %v555_v6  ;;  %v557_v14 = vld [vmem:[%s6191_s1 + $0x20] sm:$0xff] }
  0x10   : > { %3613 = vmatpush1.bf16.msra.mxu1 %v3612_v4  ;;  %s6622_s26 = smov (!%p267_p3, %s3597_s26), 255  ;;  %v3663_v13 = vpack.c.bf16 %v588_v10, %v587_v9  ;;  %v558_v15 = vld [vmem:[%s6191_s1 + $0x28] sm:$0xff]  ;;  %v589_v16 = vld [vmem:[%s6191_s1 + $0x120] sm:$0xff]  ;;  %v559_v21 = vld [vmem:[%s6191_s1 + $0x30] sm:$0xff] }
  0x11   : > { %3661 = vmatpush1.bf16.msra.mxu0 %v3660_v8  ;;  %3614 = vmatprep.subr.bf16.mxu1 %v3919_v3  ;;  %v590_v17 = vld [vmem:[%s6191_s1 + $0x128] sm:$0xff]  ;;  %s4002_s21 = sshll.u32 %s6622_s26, 3  ;;  %v3618_v18 = vpack.c.bf16 %v558_v15, %v557_v14  ;;  %v560_v22 = vld [vmem:[%s6191_s1 + $0x38] sm:$0xff]  ;;  %v591_v23 = vld [vmem:[%s6191_s1 + $0x130] sm:$0xff]  ;;  %s3610_s12 = sshll.u32 %s6622_s26, 5 }
  0x12   : > { %3662 = vmatprep.subr.bf16.mxu0 %v3919_v3  ;;  %s4008_s24 = scalar_lea.vmem %s6193_s3, %s4002_s21  ;;  %v3666_v20 = vpack.c.bf16 %v590_v17, %v589_v16  ;;  %v592_v24 = vld [vmem:[%s6191_s1 + $0x138] sm:$0xff]  ;;  %v3621_v27 = vpack.c.bf16 %v560_v22, %v559_v21  ;;  %v561_v30 = vld [vmem:[%s6191_s1 + $0x40] sm:$0xff]  ;;  %v562_v31 = vld [vmem:[%s6191_s1 + $0x48] sm:$0xff]  ;;  %s4094_s25 = scalar_lea.vmem %s6190_s0, %s3610_s12 }
  0x13   : > { %v2796_v19 = vld [vmem:[%s4008_s24] sm:$0xff]  ;;  %v2797_v25 = vld [vmem:[%s4008_s24 + $0x8] sm:$0xff]  ;;  %v2798_v26 = vld [vmem:[%s4008_s24 + $0x10] sm:$0xff]  ;;  %v3669_v29 = vpack.c.bf16 %v592_v24, %v591_v23  ;;  %v3624_v35 = vpack.c.bf16 %v562_v31, %v561_v30  ;;  %s4958_s30 = scalar_lea.vmem %s6192_s2, %s4002_s21  ;;  %s5210_s8 = scalar_lea.vmem %s6194_s4, %s4002_s21 }
  0x14   : > { %3616 = vmatpush1.bf16.msra.mxu1 %v3615_v12  ;;  %2926 = vperm.xlu1 %3781, %v2796_v19   ;;  %v2799_v28 = vld [vmem:[%s4008_s24 + $0x18] sm:$0xff]  ;;  %v593_v32 = vld [vmem:[%s6191_s1 + $0x140] sm:$0xff]  ;;  %v594_v33 = vld [vmem:[%s6191_s1 + $0x148] sm:$0xff]  ;;  %s5230_s11 = scalar_lea.vmem %s6195_s5, %s4002_s21 }
  0x15   : > { %3664 = vmatpush1.bf16.msra.mxu0 %v3663_v13  ;;  %3617 = vmatprep.subr.bf16.mxu1 %v3919_v3  ;;  %v2800_v34 = vld [vmem:[%s4008_s24 + $0x20] sm:$0xff]  ;;  %v2801_v36 = vld [vmem:[%s4008_s24 + $0x28] sm:$0xff]  ;;  %v3672_v37 = vpack.c.bf16 %v594_v33, %v593_v32  ;;  %v563_v38 = vld [vmem:[%s6191_s1 + $0x50] sm:$0xff] }
  0x16   : > { %3665 = vmatprep.subr.bf16.mxu0 %v3919_v3  ;;  %2931 = vperm.xlu0 %3782, %v2797_v25   ;;  %v564_v39 = vld [vmem:[%s6191_s1 + $0x58] sm:$0xff]  ;;  %v595_v40 = vld [vmem:[%s6191_s1 + $0x150] sm:$0xff]  ;;  %v565_v46 = vld [vmem:[%s6191_s1 + $0x60] sm:$0xff] }
  0x17   : > { %v596_v41 = vld [vmem:[%s6191_s1 + $0x158] sm:$0xff]  ;;  %v2802_v42 = vld [vmem:[%s4008_s24 + $0x30] sm:$0xff]  ;;  %v3627_v43 = vpack.c.bf16 %v564_v39, %v563_v38  ;;  %v566_v47 = vld [vmem:[%s6191_s1 + $0x68] sm:$0xff] }
  0x18   : > { %3619 = vmatpush1.bf16.msra.mxu1 %v3618_v18  ;;  %2936 = vperm.xlu1 %3781, %v2798_v26   ;;  %v2803_v44 = vld [vmem:[%s4008_s24 + $0x38] sm:$0xff]  ;;  %v3675_v45 = vpack.c.bf16 %v596_v41, %v595_v40  ;;  %v597_v48 = vld [vmem:[%s6191_s1 + $0x160] sm:$0xff]  ;;  %v598_v49 = vld [vmem:[%s6191_s1 + $0x168] sm:$0xff]  ;;  %v3630_v51 = vpack.c.bf16 %v566_v47, %v565_v46 }
  0x19   : > { %3667 = vmatpush1.bf16.msra.mxu0 %v3666_v20  ;;  %3620 = vmatprep.subr.bf16.mxu1 %v3919_v3  ;;  %v2804_v50 = vld [vmem:[%s4008_s24 + $0x40] sm:$0xff]  ;;  %v2805_v52 = vld [vmem:[%s4008_s24 + $0x48] sm:$0xff]  ;;  %v3678_v53 = vpack.c.bf16 %v598_v49, %v597_v48  ;;  %v567_v54 = vld [vmem:[%s6191_s1 + $0x70] sm:$0xff] }
  0x1a   : > { %3668 = vmatprep.subr.bf16.mxu0 %v3919_v3  ;;  %2941 = vperm.xlu0 %3782, %v2799_v28   ;;  %v568_v55 = vld [vmem:[%s6191_s1 + $0x78] sm:$0xff]  ;;  %v599_v56 = vld [vmem:[%s6191_s1 + $0x170] sm:$0xff]  ;;  %v569_v62 = vld [vmem:[%s6191_s1 + $0x80] sm:$0xff] }
  0x1b   : > { %v600_v57 = vld [vmem:[%s6191_s1 + $0x178] sm:$0xff]  ;;  %v2806_v58 = vld [vmem:[%s4008_s24 + $0x50] sm:$0xff]  ;;  %v3633_v59 = vpack.c.bf16 %v568_v55, %v567_v54  ;;  %v570_v63 = vld [vmem:[%s6191_s1 + $0x88] sm:$0xff] }
  0x1c   : > { %3622 = vmatpush1.bf16.msra.mxu1 %v3621_v27  ;;  %2946 = vperm.xlu1 %3781, %v2800_v34   ;;  %v2807_v60 = vld [vmem:[%s4008_s24 + $0x58] sm:$0xff]  ;;  %v3681_v61 = vpack.c.bf16 %v600_v57, %v599_v56  ;;  %v601_v0 = vld [vmem:[%s6191_s1 + $0x180] sm:$0xff]  ;;  %v602_v1 = vld [vmem:[%s6191_s1 + $0x188] sm:$0xff]  ;;  %v3636_v6 = vpack.c.bf16 %v570_v63, %v569_v62 }
  0x1d   : > { %3670 = vmatpush1.bf16.msra.mxu0 %v3669_v29  ;;  %3623 = vmatprep.subr.bf16.mxu1 %v3919_v3  ;;  %v298_v2 = vld [vmem:[%s4094_s25 + $0x8] sm:$0xff]  ;;  %v300_v4 = vld [vmem:[%s4094_s25 + $0x18] sm:$0xff]  ;;  %v2808_v5 = vld [vmem:[%s4008_s24 + $0x60] sm:$0xff]  ;;  %v3684_v8 = vpack.c.bf16 %v602_v1, %v601_v0 }
  0x1e   : > { %3671 = vmatprep.subr.bf16.mxu0 %v3919_v3  ;;  %2951 = vperm.xlu0 %3782, %v2801_v36   ;;  %v2809_v7 = vld [vmem:[%s4008_s24 + $0x68] sm:$0xff]  ;;  %v571_v9 = vld [vmem:[%s6191_s1 + $0x90] sm:$0xff]  ;;  %v572_v10 = vld [vmem:[%s6191_s1 + $0x98] sm:$0xff] }
  0x1f   : > { %681 = vmatprep.mubr.f32.mxu1 %v298_v2  ;;  %1066 = vmatprep.mubr.f32.mxu0 %v300_v4  ;;  %v603_v11 = vld [vmem:[%s6191_s1 + $0x190] sm:$0xff]  ;;  %v604_v12 = vld [vmem:[%s6191_s1 + $0x198] sm:$0xff]  ;;  %v3639_v14 = vpack.c.bf16 %v572_v10, %v571_v9  ;;  %v573_v17 = vld [vmem:[%s6191_s1 + $0xa0] sm:$0xff] }
  0x20   : > { %3625 = vmatpush1.bf16.msra.mxu1 %v3624_v35  ;;  %2956 = vperm.xlu1 %3781, %v2802_v42   ;;  %v2810_v13 = vld [vmem:[%s4008_s24 + $0x70] sm:$0xff]  ;;  %v2811_v15 = vld [vmem:[%s4008_s24 + $0x78] sm:$0xff]  ;;  %v3687_v16 = vpack.c.bf16 %v604_v12, %v603_v11  ;;  %v574_v18 = vld [vmem:[%s6191_s1 + $0xa8] sm:$0xff] }
  0x21   : > { %3673 = vmatpush1.bf16.msra.mxu0 %v3672_v37  ;;  %3626 = vmatprep.subr.bf16.mxu1 %v3919_v3  ;;  %v605_v19 = vld [vmem:[%s6191_s1 + $0x1a0] sm:$0xff]  ;;  %v606_v20 = vld [vmem:[%s6191_s1 + $0x1a8] sm:$0xff]  ;;  %v3642_v22 = vpack.c.bf16 %v574_v18, %v573_v17  ;;  %v575_v25 = vld [vmem:[%s6191_s1 + $0xb0] sm:$0xff] }
  0x22   : > { %3674 = vmatprep.subr.bf16.mxu0 %v3919_v3  ;;  %2961 = vperm.xlu0 %3782, %v2803_v44   ;;  %v2812_v21 = vld [vmem:[%s4008_s24 + $0x80] sm:$0xff]  ;;  %v2813_v23 = vld [vmem:[%s4008_s24 + $0x88] sm:$0xff]  ;;  %v3690_v24 = vpack.c.bf16 %v606_v20, %v605_v19  ;;  %v576_v26 = vld [vmem:[%s6191_s1 + $0xb8] sm:$0xff] }
  0x23   : > { %v607_v27 = vld [vmem:[%s6191_s1 + $0x1b0] sm:$0xff]  ;;  %v608_v28 = vld [vmem:[%s6191_s1 + $0x1b8] sm:$0xff]  ;;  %v3645_v30 = vpack.c.bf16 %v576_v26, %v575_v25  ;;  %v577_v33 = vld [vmem:[%s6191_s1 + $0xc0] sm:$0xff] }
  0x24   : > { %3628 = vmatpush1.bf16.msra.mxu1 %v3627_v43  ;;  %2966 = vperm.xlu1 %3781, %v2804_v50   ;;  %v2814_v29 = vld [vmem:[%s4008_s24 + $0x90] sm:$0xff]  ;;  %v2815_v31 = vld [vmem:[%s4008_s24 + $0x98] sm:$0xff]  ;;  %v3693_v32 = vpack.c.bf16 %v608_v28, %v607_v27  ;;  %v578_v34 = vld [vmem:[%s6191_s1 + $0xc8] sm:$0xff] }
  0x25   : > { %3676 = vmatpush1.bf16.msra.mxu0 %v3675_v45  ;;  %3629 = vmatprep.subr.bf16.mxu1 %v3919_v3  ;;  %v609_v35 = vld [vmem:[%s6191_s1 + $0x1c0] sm:$0xff]  ;;  %v610_v36 = vld [vmem:[%s6191_s1 + $0x1c8] sm:$0xff]  ;;  %v3648_v38 = vpack.c.bf16 %v578_v34, %v577_v33  ;;  %v579_v41 = vld [vmem:[%s6191_s1 + $0xd0] sm:$0xff] }
  0x26   : > { %3677 = vmatprep.subr.bf16.mxu0 %v3919_v3  ;;  %2971 = vperm.xlu0 %3782, %v2805_v52   ;;  %v2816_v37 = vld [vmem:[%s4008_s24 + $0xa0] sm:$0xff]  ;;  %v2817_v39 = vld [vmem:[%s4008_s24 + $0xa8] sm:$0xff]  ;;  %v3696_v40 = vpack.c.bf16 %v610_v36, %v609_v35  ;;  %v580_v42 = vld [vmem:[%s6191_s1 + $0xd8] sm:$0xff] }
  0x27   : > { %v611_v43 = vld [vmem:[%s6191_s1 + $0x1d0] sm:$0xff]  ;;  %v612_v44 = vld [vmem:[%s6191_s1 + $0x1d8] sm:$0xff]  ;;  %v3651_v46 = vpack.c.bf16 %v580_v42, %v579_v41  ;;  %v581_v49 = vld [vmem:[%s6191_s1 + $0xe0] sm:$0xff] }
  0x28   : > { %3631 = vmatpush1.bf16.msra.mxu1 %v3630_v51  ;;  %2976 = vperm.xlu1 %3781, %v2806_v58   ;;  %v2818_v45 = vld [vmem:[%s4008_s24 + $0xb0] sm:$0xff]  ;;  %v2819_v47 = vld [vmem:[%s4008_s24 + $0xb8] sm:$0xff]  ;;  %v3699_v48 = vpack.c.bf16 %v612_v44, %v611_v43  ;;  %v582_v50 = vld [vmem:[%s6191_s1 + $0xe8] sm:$0xff] }
  0x29   : > { %3679 = vmatpush1.bf16.msra.mxu0 %v3678_v53  ;;  %3632 = vmatprep.subr.bf16.mxu1 %v3919_v3  ;;  %v613_v51 = vld [vmem:[%s6191_s1 + $0x1e0] sm:$0xff]  ;;  %v614_v52 = vld [vmem:[%s6191_s1 + $0x1e8] sm:$0xff]  ;;  %v3654_v54 = vpack.c.bf16 %v582_v50, %v581_v49  ;;  %v583_v57 = vld [vmem:[%s6191_s1 + $0xf0] sm:$0xff] }
  0x2a   : > { %3680 = vmatprep.subr.bf16.mxu0 %v3919_v3  ;;  %2981 = vperm.xlu0 %3782, %v2807_v60   ;;  %v2820_v53 = vld [vmem:[%s4008_s24 + $0xc0] sm:$0xff]  ;;  %v2821_v55 = vld [vmem:[%s4008_s24 + $0xc8] sm:$0xff]  ;;  %v3702_v56 = vpack.c.bf16 %v614_v52, %v613_v51  ;;  %v584_v58 = vld [vmem:[%s6191_s1 + $0xf8] sm:$0xff] }
  0x2b   : > { %v616_v60 = vld [vmem:[%s6191_s1 + $0x1f8] sm:$0xff]  ;;  %v3657_v62 = vpack.c.bf16 %v584_v58, %v583_v57  ;;  %v2824_v1 = vld [vmem:[%s4008_s24 + $0xe0] sm:$0xff]  ;;  %v2825_v4 = vld [vmem:[%s4008_s24 + $0xe8] sm:$0xff] }
  0x2c   : > { %3634 = vmatpush1.bf16.msra.mxu1 %v3633_v59  ;;  %2986 = vperm.xlu1 %3781, %v2808_v5   ;;  %v615_v59 = vld [vmem:[%s6191_s1 + $0x1f0] sm:$0xff]  ;;  %v2823_v63 = vld [vmem:[%s4008_s24 + $0xd8] sm:$0xff]  ;;  %v297_v2 = vld [vmem:[%s4094_s25] sm:$0xff] }
  0x2d   : > { %3682 = vmatpush1.bf16.msra.mxu0 %v3681_v61  ;;  %3635 = vmatprep.subr.bf16.mxu1 %v3919_v3  ;;  %v2822_v61 = vld [vmem:[%s4008_s24 + $0xd0] sm:$0xff]  ;;  %v3705_v0 = vpack.c.bf16 %v616_v60, %v615_v59  ;;  %v2827_v9 = vld [vmem:[%s4008_s24 + $0xf8] sm:$0xff]  ;;  %v306_v11 = vld [vmem:[%s4094_s25 + $0x48] sm:$0xff] }
  0x2e   : > { %3683 = vmatprep.subr.bf16.mxu0 %v3919_v3  ;;  %2991 = vperm.xlu0 %3782, %v2809_v7   ;;  %v299_v5 = vld [vmem:[%s4094_s25 + $0x10] sm:$0xff]  ;;  %v304_v7 = vld [vmem:[%s4094_s25 + $0x38] sm:$0xff]  ;;  %v310_v17 = vld [vmem:[%s4094_s25 + $0x68] sm:$0xff] }
  0x2f   : > { %v303_v10 = vld [vmem:[%s4094_s25 + $0x30] sm:$0xff]  ;;  %v308_v12 = vld [vmem:[%s4094_s25 + $0x58] sm:$0xff]  ;;  %v309_v20 = vld [vmem:[%s4094_s25 + $0x60] sm:$0xff] }
  0x30   : > { %3637 = vmatpush1.bf16.msra.mxu1 %v3636_v6  ;;  %2996 = vperm.xlu1 %3781, %v2810_v13   ;;  %v302_v6 = vld [vmem:[%s4094_s25 + $0x28] sm:$0xff]  ;;  %v2828_v13 = vld [vmem:[%s4008_s24 + $0x100] sm:$0xff]  ;;  %v312_v18 = vld [vmem:[%s4094_s25 + $0x78] sm:$0xff] }
  0x31   : > { %3685 = vmatpush1.bf16.msra.mxu0 %v3684_v8  ;;  %3638 = vmatprep.subr.bf16.mxu1 %v3919_v3  ;;  %v2826_v8 = vld [vmem:[%s4008_s24 + $0xf0] sm:$0xff]  ;;  %v2832_v25 = vld [vmem:[%s4008_s24 + $0x120] sm:$0xff]  ;;  %v2833_v27 = vld [vmem:[%s4008_s24 + $0x128] sm:$0xff] }
  0x32   : > { %3686 = vmatprep.subr.bf16.mxu0 %v3919_v3  ;;  %3001 = vperm.xlu0 %3782, %v2811_v15   ;;  %v2829_v15 = vld [vmem:[%s4008_s24 + $0x108] sm:$0xff]  ;;  %v2830_v19 = vld [vmem:[%s4008_s24 + $0x110] sm:$0xff]  ;;  %v313_v26 = vld [vmem:[%s4094_s25 + $0x80] sm:$0xff] }
  0x33   : > { %v315_v28 = vld [vmem:[%s4094_s25 + $0x90] sm:$0xff]  ;;  %v2835_v33 = vld [vmem:[%s4008_s24 + $0x138] sm:$0xff]  ;;  %v322_v35 = vld [vmem:[%s4094_s25 + $0xc8] sm:$0xff] }
  0x34   : > { %3640 = vmatpush1.bf16.msra.mxu1 %v3639_v14  ;;  %3006 = vperm.xlu1 %3781, %v2812_v21   ;;  %v305_v14 = vld [vmem:[%s4094_s25 + $0x40] sm:$0xff]  ;;  %v2831_v21 = vld [vmem:[%s4008_s24 + $0x118] sm:$0xff]  ;;  %v319_v34 = vld [vmem:[%s4094_s25 + $0xb0] sm:$0xff] }
  0x35   : > { %3688 = vmatpush1.bf16.msra.mxu0 %v3687_v16  ;;  %3641 = vmatprep.subr.bf16.mxu1 %v3919_v3  ;;  %v307_v16 = vld [vmem:[%s4094_s25 + $0x50] sm:$0xff]  ;;  %v324_v36 = vld [vmem:[%s4094_s25 + $0xd8] sm:$0xff]  ;;  %v326_v41 = vld [vmem:[%s4094_s25 + $0xe8] sm:$0xff] }
  0x36   : > { %3689 = vmatprep.subr.bf16.mxu0 %v3919_v3  ;;  %3011 = vperm.xlu0 %3782, %v2813_v23   ;;  %v314_v23 = vld [vmem:[%s4094_s25 + $0x88] sm:$0xff]  ;;  %v328_v42 = vld [vmem:[%s4094_s25 + $0xf8] sm:$0xff]  ;;  %v2838_v43 = vld [vmem:[%s4008_s24 + $0x150] sm:$0xff] }
  0x37   : > { %v325_v44 = vld [vmem:[%s4094_s25 + $0xe0] sm:$0xff]  ;;  %v2841_v51 = vld [vmem:[%s4008_s24 + $0x168] sm:$0xff]  ;;  %v331_v52 = vld [vmem:[%s4094_s25 + $0x110] sm:$0xff] }
  0x38   : > { %3643 = vmatpush1.bf16.msra.mxu1 %v3642_v22  ;;  %3016 = vperm.xlu1 %3781, %v2814_v29   ;;  %v311_v22 = vld [vmem:[%s4094_s25 + $0x70] sm:$0xff]  ;;  %v318_v29 = vld [vmem:[%s4094_s25 + $0xa8] sm:$0xff]  ;;  %v2840_v49 = vld [vmem:[%s4008_s24 + $0x160] sm:$0xff] }
  0x39   : > { %3691 = vmatpush1.bf16.msra.mxu0 %v3690_v24  ;;  %3644 = vmatprep.subr.bf16.mxu1 %v3919_v3  ;;  %v316_v24 = vld [vmem:[%s4094_s25 + $0x98] sm:$0xff]  ;;  %v329_v50 = vld [vmem:[%s4094_s25 + $0x100] sm:$0xff]  ;;  %v335_v58 = vld [vmem:[%s4094_s25 + $0x130] sm:$0xff] }
  0x3a   : > { %3692 = vmatprep.subr.bf16.mxu0 %v3919_v3  ;;  %3021 = vperm.xlu0 %3782, %v2815_v31   ;;  %v2834_v31 = vld [vmem:[%s4008_s24 + $0x130] sm:$0xff]  ;;  %v2843_v57 = vld [vmem:[%s4008_s24 + $0x178] sm:$0xff]  ;;  %v338_v59 = vld [vmem:[%s4094_s25 + $0x148] sm:$0xff] }
  0x3b   : > { %v340_v60 = vld [vmem:[%s4094_s25 + $0x158] sm:$0xff] }
  0x3c   : > { %3646 = vmatpush1.bf16.msra.mxu1 %v3645_v30  ;;  %3026 = vperm.xlu1 %3781, %v2816_v37   ;;  %v320_v30 = vld [vmem:[%s4094_s25 + $0xb8] sm:$0xff]  ;;  %v2836_v37 = vld [vmem:[%s4008_s24 + $0x140] sm:$0xff] }
  0x3d   : > { %3694 = vmatpush1.bf16.msra.mxu0 %v3693_v32  ;;  %3647 = vmatprep.subr.bf16.mxu1 %v3919_v3  ;;  %v317_v32 = vld [vmem:[%s4094_s25 + $0xa0] sm:$0xff] }
  0x3e   : > { %3695 = vmatprep.subr.bf16.mxu0 %v3919_v3  ;;  %3031 = vperm.xlu0 %3782, %v2817_v39   ;;  %v2837_v39 = vld [vmem:[%s4008_s24 + $0x148] sm:$0xff] }
  0x40   : > { %3649 = vmatpush1.bf16.msra.mxu1 %v3648_v38  ;;  %3036 = vperm.xlu1 %3781, %v2818_v45   ;;  %v321_v38 = vld [vmem:[%s4094_s25 + $0xc0] sm:$0xff]  ;;  %v2839_v45 = vld [vmem:[%s4008_s24 + $0x158] sm:$0xff] }
  0x41   : > { %3697 = vmatpush1.bf16.msra.mxu0 %v3696_v40  ;;  %3650 = vmatprep.subr.bf16.mxu1 %v3919_v3  ;;  %v323_v40 = vld [vmem:[%s4094_s25 + $0xd0] sm:$0xff] }
  0x42   : > { %3698 = vmatprep.subr.bf16.mxu0 %v3919_v3  ;;  %3041 = vperm.xlu0 %3782, %v2819_v47   ;;  %v330_v47 = vld [vmem:[%s4094_s25 + $0x108] sm:$0xff] }
  0x44   : > { %3652 = vmatpush1.bf16.msra.mxu1 %v3651_v46  ;;  %3046 = vperm.xlu1 %3781, %v2820_v53   ;;  %v327_v46 = vld [vmem:[%s4094_s25 + $0xf0] sm:$0xff]  ;;  %v334_v53 = vld [vmem:[%s4094_s25 + $0x128] sm:$0xff] }
  0x45   : > { %3700 = vmatpush1.bf16.msra.mxu0 %v3699_v48  ;;  %3653 = vmatprep.subr.bf16.mxu1 %v3919_v3  ;;  %v332_v48 = vld [vmem:[%s4094_s25 + $0x118] sm:$0xff] }
  0x46   : > { %3701 = vmatprep.subr.bf16.mxu0 %v3919_v3  ;;  %3051 = vperm.xlu0 %3782, %v2821_v55   ;;  %v2842_v55 = vld [vmem:[%s4008_s24 + $0x170] sm:$0xff] }
  0x48   : > { %3655 = vmatpush1.bf16.msra.mxu1 %v3654_v54  ;;  %3056 = vperm.xlu1 %3781, %v2822_v61   ;;  %v336_v54 = vld [vmem:[%s4094_s25 + $0x138] sm:$0xff]  ;;  %v2844_v61 = vld [vmem:[%s4008_s24 + $0x180] sm:$0xff] }
  0x49   : > { %3703 = vmatpush1.bf16.msra.mxu0 %v3702_v56  ;;  %3656 = vmatprep.subr.bf16.mxu1 %v3919_v3  ;;  %v333_v56 = vld [vmem:[%s4094_s25 + $0x120] sm:$0xff] }
  0x4a   : > { %3704 = vmatprep.subr.bf16.mxu0 %v3919_v3  ;;  %3061 = vperm.xlu0 %3782, %v2823_v63   ;;  %v301_v3 = vld [vmem:[%s4094_s25 + $0x20] sm:$0xff]  ;;  %v2845_v63 = vld [vmem:[%s4008_s24 + $0x188] sm:$0xff] }
  0x4c   : > { %3658 = vmatpush1.bf16.msra.mxu1 %v3657_v62  ;;  %3066 = vperm.xlu1 %3781, %v2824_v1   ;;  %v337_v62 = vld [vmem:[%s4094_s25 + $0x140] sm:$0xff]  ;;  %v342_v1 = vld [vmem:[%s4094_s25 + $0x168] sm:$0xff] }
  0x4d   : > { %3706 = vmatpush1.bf16.msra.mxu0 %v3705_v0  ;;  %v339_v0 = vld [vmem:[%s4094_s25 + $0x150] sm:$0xff] }
  0x4e   : > { %3071 = vperm.xlu0 %3782, %v2825_v4   ;;  %v2846_v4 = vld [vmem:[%s4008_s24 + $0x190] sm:$0xff] }
  0x4f   : > { %682 = vmatmul.mubr.f32.vlgmr.msra.gmra.mrb[0].mxu1 %v297_v2  ;;  %v344_v2 = vld [vmem:[%s4094_s25 + $0x178] sm:$0xff] }
  0x50   : > { %1067 = vmatmul.mubr.f32.vlgmr.msra.gmra.mrb[0].mxu0 %v299_v5  ;;  %686 = vmatprep.mubr.f32.mxu1 %v302_v6  ;;  %v341_v5 = vld [vmem:[%s4094_s25 + $0x160] sm:$0xff]  ;;  %v2847_v6 = vld [vmem:[%s4008_s24 + $0x198] sm:$0xff] }
  0x51   : > { %1071 = vmatprep.mubr.f32.mxu0 %v304_v7  ;;  %3076 = vperm.xlu1 %3781, %v2826_v8   ;;  %v343_v7 = vld [vmem:[%s4094_s25 + $0x170] sm:$0xff]  ;;  %v346_v8 = vld [vmem:[%s4094_s25 + $0x188] sm:$0xff] }
  0x52   : > { %3081 = vperm.xlu0 %3782, %v2827_v9   ;;  %v2848_v9 = vld [vmem:[%s4008_s24 + $0x1a0] sm:$0xff] }
  0x53   : > { %687 = vmatmul.mubr.f32.gmra.mrb[2].mxu1 %v301_v3  ;;  %v348_v3 = vld [vmem:[%s4094_s25 + $0x198] sm:$0xff] }
  0x54   : > { %1072 = vmatmul.mubr.f32.gmra.mrb[2].mxu0 %v303_v10  ;;  %691 = vmatprep.mubr.f32.mxu1 %v306_v11  ;;  %v345_v10 = vld [vmem:[%s4094_s25 + $0x180] sm:$0xff]  ;;  %v2849_v11 = vld [vmem:[%s4008_s24 + $0x1a8] sm:$0xff] }
  0x55   : > { %1076 = vmatprep.mubr.f32.mxu0 %v308_v12  ;;  %3086 = vperm.xlu1 %3781, %v2828_v13   ;;  %v347_v12 = vld [vmem:[%s4094_s25 + $0x190] sm:$0xff]  ;;  %v350_v13 = vld [vmem:[%s4094_s25 + $0x1a8] sm:$0xff] }
  0x56   : > { %3091 = vperm.xlu0 %3782, %v2829_v15   ;;  %v2850_v15 = vld [vmem:[%s4008_s24 + $0x1b0] sm:$0xff] }
  0x57   : > { %692 = vmatmul.mubr.f32.gmra.mrb[4].mxu1 %v305_v14  ;;  %v352_v14 = vld [vmem:[%s4094_s25 + $0x1b8] sm:$0xff] }
  0x58   : > { %1077 = vmatmul.mubr.f32.gmra.mrb[4].mxu0 %v307_v16  ;;  %696 = vmatprep.mubr.f32.mxu1 %v310_v17  ;;  %v349_v16 = vld [vmem:[%s4094_s25 + $0x1a0] sm:$0xff]  ;;  %v2851_v17 = vld [vmem:[%s4008_s24 + $0x1b8] sm:$0xff] }
  0x59   : > { %1081 = vmatprep.mubr.f32.mxu0 %v312_v18  ;;  %3096 = vperm.xlu1 %3781, %v2830_v19   ;;  %v351_v18 = vld [vmem:[%s4094_s25 + $0x1b0] sm:$0xff]  ;;  %v354_v19 = vld [vmem:[%s4094_s25 + $0x1c8] sm:$0xff] }
  0x5a   : > { %3101 = vperm.xlu0 %3782, %v2831_v21   ;;  %v2852_v21 = vld [vmem:[%s4008_s24 + $0x1c0] sm:$0xff] }
  0x5b   : > { %697 = vmatmul.mubr.f32.gmra.mrb[6].mxu1 %v309_v20  ;;  %v356_v20 = vld [vmem:[%s4094_s25 + $0x1d8] sm:$0xff] }
  0x5c   : > { %1082 = vmatmul.mubr.f32.gmra.mrb[6].mxu0 %v311_v22  ;;  %701 = vmatprep.mubr.f32.mxu1 %v314_v23  ;;  %v353_v22 = vld [vmem:[%s4094_s25 + $0x1c0] sm:$0xff]  ;;  %v2853_v23 = vld [vmem:[%s4008_s24 + $0x1c8] sm:$0xff] }
  0x5d   : > { %1086 = vmatprep.mubr.f32.mxu0 %v316_v24  ;;  %3106 = vperm.xlu1 %3781, %v2832_v25   ;;  %v355_v24 = vld [vmem:[%s4094_s25 + $0x1d0] sm:$0xff]  ;;  %v358_v25 = vld [vmem:[%s4094_s25 + $0x1e8] sm:$0xff] }
  0x5e   : > { %3111 = vperm.xlu0 %3782, %v2833_v27   ;;  %v2854_v27 = vld [vmem:[%s4008_s24 + $0x1d0] sm:$0xff] }
  0x5f   : > { %702 = vmatmul.mubr.f32.gmra.mrb[8].mxu1 %v313_v26  ;;  %v360_v26 = vld [vmem:[%s4094_s25 + $0x1f8] sm:$0xff] }
  0x60   : > { %1087 = vmatmul.mubr.f32.gmra.mrb[8].mxu0 %v315_v28  ;;  %706 = vmatprep.mubr.f32.mxu1 %v318_v29  ;;  %v357_v28 = vld [vmem:[%s4094_s25 + $0x1e0] sm:$0xff]  ;;  %v2855_v29 = vld [vmem:[%s4008_s24 + $0x1d8] sm:$0xff] }
  0x61   : > { %1091 = vmatprep.mubr.f32.mxu0 %v320_v30  ;;  %3116 = vperm.xlu1 %3781, %v2834_v31   ;;  %v359_v30 = vld [vmem:[%s4094_s25 + $0x1f0] sm:$0xff]  ;;  %v362_v31 = vld [vmem:[%s4094_s25 + $0x208] sm:$0xff] }
  0x62   : > { %3121 = vperm.xlu0 %3782, %v2835_v33   ;;  %v2856_v33 = vld [vmem:[%s4008_s24 + $0x1e0] sm:$0xff] }
  0x63   : > { %707 = vmatmul.mubr.f32.gmra.mrb[10].mxu1 %v317_v32  ;;  %v364_v32 = vld [vmem:[%s4094_s25 + $0x218] sm:$0xff] }
  0x64   : > { %1092 = vmatmul.mubr.f32.gmra.mrb[10].mxu0 %v319_v34  ;;  %711 = vmatprep.mubr.f32.mxu1 %v322_v35  ;;  %v361_v34 = vld [vmem:[%s4094_s25 + $0x200] sm:$0xff]  ;;  %v2857_v35 = vld [vmem:[%s4008_s24 + $0x1e8] sm:$0xff] }
  0x65   : > { %1096 = vmatprep.mubr.f32.mxu0 %v324_v36  ;;  %3126 = vperm.xlu1 %3781, %v2836_v37   ;;  %v363_v36 = vld [vmem:[%s4094_s25 + $0x210] sm:$0xff]  ;;  %v366_v37 = vld [vmem:[%s4094_s25 + $0x228] sm:$0xff] }
  0x66   : > { %3131 = vperm.xlu0 %3782, %v2837_v39   ;;  %v365_v39 = vld [vmem:[%s4094_s25 + $0x220] sm:$0xff] }
  0x67   : > { %712 = vmatmul.mubr.f32.gmra.mrb[12].mxu1 %v321_v38  ;;  %v368_v38 = vld [vmem:[%s4094_s25 + $0x238] sm:$0xff] }
  0x68   : > { %1097 = vmatmul.mubr.f32.gmra.mrb[12].mxu0 %v323_v40  ;;  %716 = vmatprep.mubr.f32.mxu1 %v326_v41  ;;  %v367_v40 = vld [vmem:[%s4094_s25 + $0x230] sm:$0xff]  ;;  %v370_v41 = vld [vmem:[%s4094_s25 + $0x248] sm:$0xff] }
  0x69   : > { %1101 = vmatprep.mubr.f32.mxu0 %v328_v42  ;;  %3136 = vperm.xlu1 %3781, %v2838_v43   ;;  %v372_v42 = vld [vmem:[%s4094_s25 + $0x258] sm:$0xff]  ;;  %v369_v43 = vld [vmem:[%s4094_s25 + $0x240] sm:$0xff] }
  0x6a   : > { %3141 = vperm.xlu0 %3782, %v2839_v45   ;;  %v374_v45 = vld [vmem:[%s4094_s25 + $0x268] sm:$0xff] }
  0x6b   : > { %717 = vmatmul.mubr.f32.gmra.mrb[14].mxu1 %v325_v44  ;;  %v371_v44 = vld [vmem:[%s4094_s25 + $0x250] sm:$0xff] }
  0x6c   : > { %1102 = vmatmul.mubr.f32.gmra.mrb[14].mxu0 %v327_v46  ;;  %721 = vmatprep.mubr.f32.mxu1 %v330_v47  ;;  %v376_v46 = vld [vmem:[%s4094_s25 + $0x278] sm:$0xff]  ;;  %v373_v47 = vld [vmem:[%s4094_s25 + $0x260] sm:$0xff] }
  0x6d   : > { %1106 = vmatprep.mubr.f32.mxu0 %v332_v48  ;;  %3146 = vperm.xlu1 %3781, %v2840_v49   ;;  %v375_v48 = vld [vmem:[%s4094_s25 + $0x270] sm:$0xff]  ;;  %v378_v49 = vld [vmem:[%s4094_s25 + $0x288] sm:$0xff] }
  0x6e   : > { %3151 = vperm.xlu0 %3782, %v2841_v51   ;;  %v377_v51 = vld [vmem:[%s4094_s25 + $0x280] sm:$0xff] }
  0x6f   : > { %722 = vmatmul.mubr.f32.gmra.mrb[16].mxu1 %v329_v50  ;;  %v380_v50 = vld [vmem:[%s4094_s25 + $0x298] sm:$0xff] }
  0x70   : > { %1107 = vmatmul.mubr.f32.gmra.mrb[16].mxu0 %v331_v52  ;;  %726 = vmatprep.mubr.f32.mxu1 %v334_v53  ;;  %v379_v52 = vld [vmem:[%s4094_s25 + $0x290] sm:$0xff]  ;;  %v382_v53 = vld [vmem:[%s4094_s25 + $0x2a8] sm:$0xff] }
  0x71   : > { %1111 = vmatprep.mubr.f32.mxu0 %v336_v54  ;;  %3156 = vperm.xlu1 %3781, %v2842_v55   ;;  %v384_v54 = vld [vmem:[%s4094_s25 + $0x2b8] sm:$0xff]  ;;  %v381_v55 = vld [vmem:[%s4094_s25 + $0x2a0] sm:$0xff] }
  0x72   : > { %3161 = vperm.xlu0 %3782, %v2843_v57   ;;  %v386_v57 = vld [vmem:[%s4094_s25 + $0x2c8] sm:$0xff] }
  0x73   : > { %727 = vmatmul.mubr.f32.gmra.mrb[18].mxu1 %v333_v56  ;;  %v383_v56 = vld [vmem:[%s4094_s25 + $0x2b0] sm:$0xff] }
  0x74   : > { %1112 = vmatmul.mubr.f32.gmra.mrb[18].mxu0 %v335_v58  ;;  %731 = vmatprep.mubr.f32.mxu1 %v338_v59  ;;  %v388_v58 = vld [vmem:[%s4094_s25 + $0x2d8] sm:$0xff]  ;;  %v385_v59 = vld [vmem:[%s4094_s25 + $0x2c0] sm:$0xff] }
  0x75   : > { %1116 = vmatprep.mubr.f32.mxu0 %v340_v60  ;;  %3166 = vperm.xlu1 %3781, %v2844_v61   ;;  %v387_v60 = vld [vmem:[%s4094_s25 + $0x2d0] sm:$0xff]  ;;  %v390_v61 = vld [vmem:[%s4094_s25 + $0x2e8] sm:$0xff] }
  0x76   : > { %3171 = vperm.xlu0 %3782, %v2845_v63   ;;  %v389_v63 = vld [vmem:[%s4094_s25 + $0x2e0] sm:$0xff] }
  0x77   : > { %732 = vmatmul.mubr.f32.gmra.mrb[20].mxu1 %v337_v62  ;;  %v392_v62 = vld [vmem:[%s4094_s25 + $0x2f8] sm:$0xff] }
  0x78   : > { %1117 = vmatmul.mubr.f32.gmra.mrb[20].mxu0 %v339_v0  ;;  %736 = vmatprep.mubr.f32.mxu1 %v342_v1  ;;  %v391_v0 = vld [vmem:[%s4094_s25 + $0x2f0] sm:$0xff]  ;;  %v394_v1 = vld [vmem:[%s4094_s25 + $0x308] sm:$0xff] }
  0x79   : > { %1121 = vmatprep.mubr.f32.mxu0 %v344_v2  ;;  %3176 = vperm.xlu1 %3781, %v2846_v4   ;;  %v396_v2 = vld [vmem:[%s4094_s25 + $0x318] sm:$0xff]  ;;  %v393_v4 = vld [vmem:[%s4094_s25 + $0x300] sm:$0xff] }
  0x7a   : > { %3181 = vperm.xlu0 %3782, %v2847_v6   ;;  %v398_v6 = vld [vmem:[%s4094_s25 + $0x328] sm:$0xff] }
  0x7b   : > { %737 = vmatmul.mubr.f32.gmra.mrb[22].mxu1 %v341_v5  ;;  %v395_v5 = vld [vmem:[%s4094_s25 + $0x310] sm:$0xff] }
  0x7c   : > { %1122 = vmatmul.mubr.f32.gmra.mrb[22].mxu0 %v343_v7  ;;  %741 = vmatprep.mubr.f32.mxu1 %v346_v8  ;;  %v400_v7 = vld [vmem:[%s4094_s25 + $0x338] sm:$0xff]  ;;  %v397_v8 = vld [vmem:[%s4094_s25 + $0x320] sm:$0xff] }
  0x7d   : > { %1126 = vmatprep.mubr.f32.mxu0 %v348_v3  ;;  %3186 = vperm.xlu1 %3781, %v2848_v9   ;;  %v399_v3 = vld [vmem:[%s4094_s25 + $0x330] sm:$0xff]  ;;  %v402_v9 = vld [vmem:[%s4094_s25 + $0x348] sm:$0xff] }
  0x7e   : > { %3191 = vperm.xlu0 %3782, %v2849_v11   ;;  %v401_v11 = vld [vmem:[%s4094_s25 + $0x340] sm:$0xff] }
  0x7f   : > { %742 = vmatmul.mubr.f32.gmra.mrb[24].mxu1 %v345_v10  ;;  %v404_v10 = vld [vmem:[%s4094_s25 + $0x358] sm:$0xff] }
  0x80   : > { %1127 = vmatmul.mubr.f32.gmra.mrb[24].mxu0 %v347_v12  ;;  %746 = vmatprep.mubr.f32.mxu1 %v350_v13  ;;  %v403_v12 = vld [vmem:[%s4094_s25 + $0x350] sm:$0xff]  ;;  %v406_v13 = vld [vmem:[%s4094_s25 + $0x368] sm:$0xff] }
  0x81   : > { %1131 = vmatprep.mubr.f32.mxu0 %v352_v14  ;;  %3196 = vperm.xlu1 %3781, %v2850_v15   ;;  %v408_v14 = vld [vmem:[%s4094_s25 + $0x378] sm:$0xff]  ;;  %v405_v15 = vld [vmem:[%s4094_s25 + $0x360] sm:$0xff] }
  0x82   : > { %3201 = vperm.xlu0 %3782, %v2851_v17   ;;  %v410_v17 = vld [vmem:[%s4094_s25 + $0x388] sm:$0xff] }
  0x83   : > { %747 = vmatmul.mubr.f32.gmra.mrb[26].mxu1 %v349_v16  ;;  %v407_v16 = vld [vmem:[%s4094_s25 + $0x370] sm:$0xff] }
  0x84   : > { %1132 = vmatmul.mubr.f32.gmra.mrb[26].mxu0 %v351_v18  ;;  %751 = vmatprep.mubr.f32.mxu1 %v354_v19  ;;  %v412_v18 = vld [vmem:[%s4094_s25 + $0x398] sm:$0xff]  ;;  %v409_v19 = vld [vmem:[%s4094_s25 + $0x380] sm:$0xff] }
  0x85   : > { %1136 = vmatprep.mubr.f32.mxu0 %v356_v20  ;;  %3206 = vperm.xlu1 %3781, %v2852_v21   ;;  %v411_v20 = vld [vmem:[%s4094_s25 + $0x390] sm:$0xff]  ;;  %v414_v21 = vld [vmem:[%s4094_s25 + $0x3a8] sm:$0xff] }
  0x86   : > { %3211 = vperm.xlu0 %3782, %v2853_v23   ;;  %v413_v23 = vld [vmem:[%s4094_s25 + $0x3a0] sm:$0xff] }
  0x87   : > { %752 = vmatmul.mubr.f32.gmra.mrb[28].mxu1 %v353_v22  ;;  %v416_v22 = vld [vmem:[%s4094_s25 + $0x3b8] sm:$0xff] }
  0x88   : > { %1137 = vmatmul.mubr.f32.gmra.mrb[28].mxu0 %v355_v24  ;;  %756 = vmatprep.mubr.f32.mxu1 %v358_v25  ;;  %v415_v24 = vld [vmem:[%s4094_s25 + $0x3b0] sm:$0xff]  ;;  %v418_v25 = vld [vmem:[%s4094_s25 + $0x3c8] sm:$0xff] }
  0x89   : > { %1141 = vmatprep.mubr.f32.mxu0 %v360_v26  ;;  %3216 = vperm.xlu1 %3781, %v2854_v27   ;;  %v420_v26 = vld [vmem:[%s4094_s25 + $0x3d8] sm:$0xff]  ;;  %v417_v27 = vld [vmem:[%s4094_s25 + $0x3c0] sm:$0xff] }
  0x8a   : > { %3221 = vperm.xlu0 %3782, %v2855_v29   ;;  %v422_v29 = vld [vmem:[%s4094_s25 + $0x3e8] sm:$0xff] }
  0x8b   : > { %757 = vmatmul.mubr.f32.gmra.mrb[30].mxu1 %v357_v28  ;;  %v419_v28 = vld [vmem:[%s4094_s25 + $0x3d0] sm:$0xff] }
  0x8c   : > { %1142 = vmatmul.mubr.f32.gmra.mrb[30].mxu0 %v359_v30  ;;  %761 = vmatprep.mubr.f32.mxu1 %v362_v31  ;;  %v424_v30 = vld [vmem:[%s4094_s25 + $0x3f8] sm:$0xff]  ;;  %v421_v31 = vld [vmem:[%s4094_s25 + $0x3e0] sm:$0xff] }
  0x8d   : > { %1146 = vmatprep.mubr.f32.mxu0 %v364_v32  ;;  %3226 = vperm.xlu1 %3781, %v2856_v33   ;;  %v423_v32 = vld [vmem:[%s4094_s25 + $0x3f0] sm:$0xff]  ;;  %v426_v33 = vld [vmem:[%s4094_s25 + $0x408] sm:$0xff] }
  0x8e   : > { %3231 = vperm.xlu0 %3782, %v2857_v35   ;;  %v425_v35 = vld [vmem:[%s4094_s25 + $0x400] sm:$0xff] }
  0x8f   : > { %762 = vmatmul.mubr.f32.gmra.mrb[32].mxu1 %v361_v34  ;;  %v428_v34 = vld [vmem:[%s4094_s25 + $0x418] sm:$0xff] }
  0x90   : > { %1147 = vmatmul.mubr.f32.gmra.mrb[32].mxu0 %v363_v36  ;;  %766 = vmatprep.mubr.f32.mxu1 %v366_v37  ;;  %v427_v36 = vld [vmem:[%s4094_s25 + $0x410] sm:$0xff]  ;;  %v430_v37 = vld [vmem:[%s4094_s25 + $0x428] sm:$0xff] }
  0x91   : > { %1151 = vmatprep.mubr.f32.mxu0 %v368_v38  ;;  %v432_v38 = vld [vmem:[%s4094_s25 + $0x438] sm:$0xff] }
  0x93   : > { %767 = vmatmul.mubr.f32.gmra.mrb[34].mxu1 %v365_v39  ;;  %v429_v39 = vld [vmem:[%s4094_s25 + $0x420] sm:$0xff] }
  0x94   : > { %1152 = vmatmul.mubr.f32.gmra.mrb[34].mxu0 %v367_v40  ;;  %771 = vmatprep.mubr.f32.mxu1 %v370_v41  ;;  %v431_v40 = vld [vmem:[%s4094_s25 + $0x430] sm:$0xff]  ;;  %v434_v41 = vld [vmem:[%s4094_s25 + $0x448] sm:$0xff] }
  0x95   : > { %1156 = vmatprep.mubr.f32.mxu0 %v372_v42  ;;  %v436_v42 = vld [vmem:[%s4094_s25 + $0x458] sm:$0xff] }
  0x97   : > { %772 = vmatmul.mubr.f32.gmra.mrb[36].mxu1 %v369_v43  ;;  %v433_v43 = vld [vmem:[%s4094_s25 + $0x440] sm:$0xff] }
  0x98   : > { %1157 = vmatmul.mubr.f32.gmra.mrb[36].mxu0 %v371_v44  ;;  %776 = vmatprep.mubr.f32.mxu1 %v374_v45  ;;  %v435_v44 = vld [vmem:[%s4094_s25 + $0x450] sm:$0xff]  ;;  %v438_v45 = vld [vmem:[%s4094_s25 + $0x468] sm:$0xff] }
  0x99   : > { %1161 = vmatprep.mubr.f32.mxu0 %v376_v46  ;;  %v440_v46 = vld [vmem:[%s4094_s25 + $0x478] sm:$0xff] }
  0x9b   : > { %777 = vmatmul.mubr.f32.gmra.mrb[38].mxu1 %v373_v47  ;;  %v437_v47 = vld [vmem:[%s4094_s25 + $0x460] sm:$0xff] }
  0x9c   : > { %1162 = vmatmul.mubr.f32.gmra.mrb[38].mxu0 %v375_v48  ;;  %781 = vmatprep.mubr.f32.mxu1 %v378_v49  ;;  %v439_v48 = vld [vmem:[%s4094_s25 + $0x470] sm:$0xff]  ;;  %v442_v49 = vld [vmem:[%s4094_s25 + $0x488] sm:$0xff] }
  0x9d   : > { %1166 = vmatprep.mubr.f32.mxu0 %v380_v50  ;;  %v444_v50 = vld [vmem:[%s4094_s25 + $0x498] sm:$0xff] }
  0x9f   : > { %782 = vmatmul.mubr.f32.gmra.mrb[40].mxu1 %v377_v51  ;;  %v441_v51 = vld [vmem:[%s4094_s25 + $0x480] sm:$0xff] }
  0xa0   : > { %1167 = vmatmul.mubr.f32.gmra.mrb[40].mxu0 %v379_v52  ;;  %786 = vmatprep.mubr.f32.mxu1 %v382_v53  ;;  %v443_v52 = vld [vmem:[%s4094_s25 + $0x490] sm:$0xff]  ;;  %v446_v53 = vld [vmem:[%s4094_s25 + $0x4a8] sm:$0xff] }
  0xa1   : > { %1171 = vmatprep.mubr.f32.mxu0 %v384_v54  ;;  %v448_v54 = vld [vmem:[%s4094_s25 + $0x4b8] sm:$0xff] }
  0xa3   : > { %787 = vmatmul.mubr.f32.gmra.mrb[42].mxu1 %v381_v55  ;;  %v445_v55 = vld [vmem:[%s4094_s25 + $0x4a0] sm:$0xff] }
  0xa4   : > { %1172 = vmatmul.mubr.f32.gmra.mrb[42].mxu0 %v383_v56  ;;  %791 = vmatprep.mubr.f32.mxu1 %v386_v57  ;;  %v447_v56 = vld [vmem:[%s4094_s25 + $0x4b0] sm:$0xff]  ;;  %v450_v57 = vld [vmem:[%s4094_s25 + $0x4c8] sm:$0xff] }
  0xa5   : > { %1176 = vmatprep.mubr.f32.mxu0 %v388_v58  ;;  %v452_v58 = vld [vmem:[%s4094_s25 + $0x4d8] sm:$0xff] }
  0xa7   : > { %792 = vmatmul.mubr.f32.gmra.mrb[44].mxu1 %v385_v59  ;;  %v449_v59 = vld [vmem:[%s4094_s25 + $0x4c0] sm:$0xff] }
  0xa8   : > { %1177 = vmatmul.mubr.f32.gmra.mrb[44].mxu0 %v387_v60  ;;  %796 = vmatprep.mubr.f32.mxu1 %v390_v61  ;;  %v451_v60 = vld [vmem:[%s4094_s25 + $0x4d0] sm:$0xff]  ;;  %v454_v61 = vld [vmem:[%s4094_s25 + $0x4e8] sm:$0xff] }
  0xa9   : > { %1181 = vmatprep.mubr.f32.mxu0 %v392_v62  ;;  %v456_v62 = vld [vmem:[%s4094_s25 + $0x4f8] sm:$0xff] }
  0xab   : > { %797 = vmatmul.mubr.f32.gmra.mrb[46].mxu1 %v389_v63  ;;  %v453_v63 = vld [vmem:[%s4094_s25 + $0x4e0] sm:$0xff] }
  0xac   : > { %1182 = vmatmul.mubr.f32.gmra.mrb[46].mxu0 %v391_v0  ;;  %801 = vmatprep.mubr.f32.mxu1 %v394_v1  ;;  %v455_v0 = vld [vmem:[%s4094_s25 + $0x4f0] sm:$0xff]  ;;  %v458_v1 = vld [vmem:[%s4094_s25 + $0x508] sm:$0xff] }
  0xad   : > { %1186 = vmatprep.mubr.f32.mxu0 %v396_v2  ;;  %v460_v2 = vld [vmem:[%s4094_s25 + $0x518] sm:$0xff] }
  0xaf   : > { %802 = vmatmul.mubr.f32.gmra.mrb[48].mxu1 %v393_v4  ;;  %v457_v4 = vld [vmem:[%s4094_s25 + $0x500] sm:$0xff] }
  0xb0   : > { %1187 = vmatmul.mubr.f32.gmra.mrb[48].mxu0 %v395_v5  ;;  %806 = vmatprep.mubr.f32.mxu1 %v398_v6  ;;  %v459_v5 = vld [vmem:[%s4094_s25 + $0x510] sm:$0xff]  ;;  %v462_v6 = vld [vmem:[%s4094_s25 + $0x528] sm:$0xff] }
  0xb1   : > { %1191 = vmatprep.mubr.f32.mxu0 %v400_v7  ;;  %v464_v7 = vld [vmem:[%s4094_s25 + $0x538] sm:$0xff] }
  0xb3   : > { %807 = vmatmul.mubr.f32.gmra.mrb[50].mxu1 %v397_v8  ;;  %v461_v8 = vld [vmem:[%s4094_s25 + $0x520] sm:$0xff] }
  0xb4   : > { %1192 = vmatmul.mubr.f32.gmra.mrb[50].mxu0 %v399_v3  ;;  %811 = vmatprep.mubr.f32.mxu1 %v402_v9  ;;  %v463_v3 = vld [vmem:[%s4094_s25 + $0x530] sm:$0xff]  ;;  %v466_v9 = vld [vmem:[%s4094_s25 + $0x548] sm:$0xff] }
  0xb5   : > { %1196 = vmatprep.mubr.f32.mxu0 %v404_v10  ;;  %v468_v10 = vld [vmem:[%s4094_s25 + $0x558] sm:$0xff] }
  0xb7   : > { %812 = vmatmul.mubr.f32.gmra.mrb[52].mxu1 %v401_v11  ;;  %v465_v11 = vld [vmem:[%s4094_s25 + $0x540] sm:$0xff] }
  0xb8   : > { %1197 = vmatmul.mubr.f32.gmra.mrb[52].mxu0 %v403_v12  ;;  %816 = vmatprep.mubr.f32.mxu1 %v406_v13  ;;  %v467_v12 = vld [vmem:[%s4094_s25 + $0x550] sm:$0xff]  ;;  %v470_v13 = vld [vmem:[%s4094_s25 + $0x568] sm:$0xff] }
  0xb9   : > { %1201 = vmatprep.mubr.f32.mxu0 %v408_v14  ;;  %v472_v14 = vld [vmem:[%s4094_s25 + $0x578] sm:$0xff] }
  0xbb   : > { %817 = vmatmul.mubr.f32.gmra.mrb[54].mxu1 %v405_v15  ;;  %v469_v15 = vld [vmem:[%s4094_s25 + $0x560] sm:$0xff] }
  0xbc   : > { %1202 = vmatmul.mubr.f32.gmra.mrb[54].mxu0 %v407_v16  ;;  %821 = vmatprep.mubr.f32.mxu1 %v410_v17  ;;  %v471_v16 = vld [vmem:[%s4094_s25 + $0x570] sm:$0xff]  ;;  %v474_v17 = vld [vmem:[%s4094_s25 + $0x588] sm:$0xff] }
  0xbd   : > { %1206 = vmatprep.mubr.f32.mxu0 %v412_v18  ;;  %v476_v18 = vld [vmem:[%s4094_s25 + $0x598] sm:$0xff] }
  0xbf   : > { %822 = vmatmul.mubr.f32.gmra.mrb[56].mxu1 %v409_v19  ;;  %v4440_v19 = vpop.permute.xlu0 %2931 }
  0xc0   : > { %1207 = vmatmul.mubr.f32.gmra.mrb[56].mxu0 %v411_v20  ;;  %826 = vmatprep.mubr.f32.mxu1 %v414_v21  ;;  %v473_v20 = vld [vmem:[%s4094_s25 + $0x580] sm:$0xff]  ;;  %v475_v21 = vld [vmem:[%s4094_s25 + $0x590] sm:$0xff] }
  0xc1   : > { %1211 = vmatprep.mubr.f32.mxu0 %v416_v22  ;;  %v478_v22 = vld [vmem:[%s4094_s25 + $0x5a8] sm:$0xff] }
  0xc3   : > { %827 = vmatmul.mubr.f32.gmra.mrb[58].mxu1 %v413_v23  ;;  %v480_v23 = vld [vmem:[%s4094_s25 + $0x5b8] sm:$0xff] }
  0xc4   : > { %1212 = vmatmul.mubr.f32.gmra.mrb[58].mxu0 %v415_v24  ;;  %831 = vmatprep.mubr.f32.mxu1 %v418_v25  ;;  %v4446_v24 = vpop.permute.xlu1 %2926  ;;  %v477_v25 = vld [vmem:[%s4094_s25 + $0x5a0] sm:$0xff] }
  0xc5   : > { %1216 = vmatprep.mubr.f32.mxu0 %v420_v26  ;;  %v479_v26 = vld [vmem:[%s4094_s25 + $0x5b0] sm:$0xff] }
  0xc7   : > { %832 = vmatmul.mubr.f32.gmra.mrb[60].mxu1 %v417_v27  ;;  %v482_v27 = vld [vmem:[%s4094_s25 + $0x5c8] sm:$0xff] }
  0xc8   : > { %1217 = vmatmul.mubr.f32.gmra.mrb[60].mxu0 %v419_v28  ;;  %836 = vmatprep.mubr.f32.mxu1 %v422_v29  ;;  %v4451_v28 = vpop.permute.xlu0 %2941  ;;  %v484_v29 = vld [vmem:[%s4094_s25 + $0x5d8] sm:$0xff] }
  0xc9   : > { %1221 = vmatprep.mubr.f32.mxu0 %v424_v30  ;;  %v481_v30 = vld [vmem:[%s4094_s25 + $0x5c0] sm:$0xff] }
  0xcb   : > { %837 = vmatmul.mubr.f32.gmra.mrb[62].mxu1 %v421_v31  ;;  %v483_v31 = vld [vmem:[%s4094_s25 + $0x5d0] sm:$0xff] }
  0xcc   : > { %1222 = vmatmul.mubr.f32.gmra.mrb[62].mxu0 %v423_v32  ;;  %841 = vmatprep.mubr.f32.mxu1 %v426_v33  ;;  %v486_v32 = vld [vmem:[%s4094_s25 + $0x5e8] sm:$0xff]  ;;  %v4457_v33 = vpop.permute.xlu1 %2936 }
  0xcd   : > { %1226 = vmatprep.mubr.f32.mxu0 %v428_v34  ;;  %v488_v34 = vld [vmem:[%s4094_s25 + $0x5f8] sm:$0xff] }
  0xcf   : > { %842 = vmatmul.mubr.f32.gmra.mrb[64].mxu1 %v425_v35  ;;  %v4460_v35 = vpop.permute.xlu0 %2951 }
  0xd0   : > { %1227 = vmatmul.mubr.f32.gmra.mrb[64].mxu0 %v427_v36  ;;  %846 = vmatprep.mubr.f32.mxu1 %v430_v37  ;;  %v485_v36 = vld [vmem:[%s4094_s25 + $0x5e0] sm:$0xff]  ;;  %v487_v37 = vld [vmem:[%s4094_s25 + $0x5f0] sm:$0xff] }
  0xd1   : > { %1231 = vmatprep.mubr.f32.mxu0 %v432_v38  ;;  %v490_v38 = vld [vmem:[%s4094_s25 + $0x608] sm:$0xff] }
  0xd3   : > { %847 = vmatmul.mubr.f32.gmra.mrb[66].mxu1 %v429_v39  ;;  %v492_v39 = vld [vmem:[%s4094_s25 + $0x618] sm:$0xff] }
  0xd4   : > { %1232 = vmatmul.mubr.f32.gmra.mrb[66].mxu0 %v431_v40  ;;  %851 = vmatprep.mubr.f32.mxu1 %v434_v41  ;;  %v4466_v40 = vpop.permute.xlu1 %2946  ;;  %v489_v41 = vld [vmem:[%s4094_s25 + $0x600] sm:$0xff] }
  0xd5   : > { %1236 = vmatprep.mubr.f32.mxu0 %v436_v42  ;;  %v491_v42 = vld [vmem:[%s4094_s25 + $0x610] sm:$0xff] }
  0xd7   : > { %852 = vmatmul.mubr.f32.gmra.mrb[68].mxu1 %v433_v43  ;;  %v494_v43 = vld [vmem:[%s4094_s25 + $0x628] sm:$0xff] }
  0xd8   : > { %1237 = vmatmul.mubr.f32.gmra.mrb[68].mxu0 %v435_v44  ;;  %856 = vmatprep.mubr.f32.mxu1 %v438_v45  ;;  %v4471_v44 = vpop.permute.xlu0 %2961  ;;  %v496_v45 = vld [vmem:[%s4094_s25 + $0x638] sm:$0xff] }
  0xd9   : > { %1241 = vmatprep.mubr.f32.mxu0 %v440_v46  ;;  %6267 = vst [vmem:[#allocation2_spill] sm:$0xff] %v4471_v44  ;;  %v493_v46 = vld [vmem:[%s4094_s25 + $0x620] sm:$0xff] }
  0xdb   : > { %857 = vmatmul.mubr.f32.gmra.mrb[70].mxu1 %v437_v47  ;;  %v495_v47 = vld [vmem:[%s4094_s25 + $0x630] sm:$0xff] }
  0xdc   : > { %1242 = vmatmul.mubr.f32.gmra.mrb[70].mxu0 %v439_v48  ;;  %861 = vmatprep.mubr.f32.mxu1 %v442_v49  ;;  %v498_v48 = vld [vmem:[%s4094_s25 + $0x648] sm:$0xff]  ;;  %v4477_v49 = vpop.permute.xlu1 %2956 }
  0xdd   : > { %1246 = vmatprep.mubr.f32.mxu0 %v444_v50  ;;  %v500_v50 = vld [vmem:[%s4094_s25 + $0x658] sm:$0xff] }
  0xdf   : > { %862 = vmatmul.mubr.f32.gmra.mrb[72].mxu1 %v441_v51  ;;  %v4480_v51 = vpop.permute.xlu0 %2971 }
  0xe0   : > { %1247 = vmatmul.mubr.f32.gmra.mrb[72].mxu0 %v443_v52  ;;  %866 = vmatprep.mubr.f32.mxu1 %v446_v53  ;;  %v497_v52 = vld [vmem:[%s4094_s25 + $0x640] sm:$0xff]  ;;  %v499_v53 = vld [vmem:[%s4094_s25 + $0x650] sm:$0xff] }
  0xe1   : > { %1251 = vmatprep.mubr.f32.mxu0 %v448_v54  ;;  %v4484_v54 = vpop.permute.xlu1 %2966 }
  0xe2   : > { %6268 = vst [vmem:[#allocation3_spill] sm:$0xff] %v4484_v54 }
  0xe3   : > { %867 = vmatmul.mubr.f32.gmra.mrb[74].mxu1 %v445_v55  ;;  %v4486_v55 = vpop.permute.xlu0 %2981 }
  0xe4   : > { %1252 = vmatmul.mubr.f32.gmra.mrb[74].mxu0 %v447_v56  ;;  %871 = vmatprep.mubr.f32.mxu1 %v450_v57  ;;  %6269 = vst [vmem:[#allocation4_spill] sm:$0xff] %v4486_v55 }
  0xe5   : > { %1256 = vmatprep.mubr.f32.mxu0 %v452_v58  ;;  %v4488_v56 = vpop.permute.xlu1 %2976 }
  0xe6   : > { %6270 = vst [vmem:[#allocation5_spill] sm:$0xff] %v4488_v56 }
  0xe7   : > { %872 = vmatmul.mubr.f32.gmra.mrb[76].mxu1 %v449_v59  ;;  %v4490_v57 = vpop.permute.xlu0 %2991 }
  0xe8   : > { %1257 = vmatmul.mubr.f32.gmra.mrb[76].mxu0 %v451_v60  ;;  %876 = vmatprep.mubr.f32.mxu1 %v454_v61  ;;  %6271 = vst [vmem:[#allocation6_spill] sm:$0xff] %v4490_v57 }
  0xe9   : > { %1261 = vmatprep.mubr.f32.mxu0 %v456_v62  ;;  %v4492_v61 = vpop.permute.xlu1 %2986 }
  0xea   : > { %6272 = vst [vmem:[#allocation7_spill] sm:$0xff] %v4492_v61  ;;  %v529_v61 = vld [vmem:[%s4094_s25 + $0x740] sm:$0xff] }
  0xeb   : > { %877 = vmatmul.mubr.f32.gmra.mrb[78].mxu1 %v453_v63 }
  0xec   : > { %1262 = vmatmul.mubr.f32.gmra.mrb[78].mxu0 %v455_v0  ;;  %881 = vmatprep.mubr.f32.mxu1 %v458_v1  ;;  %v4496_v0 = vpop.permute.xlu0 %3001 }
  0xed   : > { %1266 = vmatprep.mubr.f32.mxu0 %v460_v2  ;;  %6273 = vst [vmem:[#allocation8_spill] sm:$0xff] %v4496_v0 }
  0xef   : > { %882 = vmatmul.mubr.f32.gmra.mrb[80].mxu1 %v457_v4 }
  0xf0   : > { %1267 = vmatmul.mubr.f32.gmra.mrb[80].mxu0 %v459_v5  ;;  %886 = vmatprep.mubr.f32.mxu1 %v462_v6 }
  0xf1   : > { %1271 = vmatprep.mubr.f32.mxu0 %v464_v7 }
  0xf3   : > { %887 = vmatmul.mubr.f32.gmra.mrb[82].mxu1 %v461_v8 }
  0xf4   : > { %1272 = vmatmul.mubr.f32.gmra.mrb[82].mxu0 %v463_v3  ;;  %891 = vmatprep.mubr.f32.mxu1 %v466_v9  ;;  %v4504_v3 = vpop.permute.xlu1 %2996 }
  0xf5   : > { %1276 = vmatprep.mubr.f32.mxu0 %v468_v10  ;;  %6274 = vst [vmem:[#allocation9_spill] sm:$0xff] %v4504_v3 }
  0xf7   : > { %892 = vmatmul.mubr.f32.gmra.mrb[84].mxu1 %v465_v11 }
  0xf8   : > { %1277 = vmatmul.mubr.f32.gmra.mrb[84].mxu0 %v467_v12  ;;  %896 = vmatprep.mubr.f32.mxu1 %v470_v13 }
  0xf9   : > { %1281 = vmatprep.mubr.f32.mxu0 %v472_v14  ;;  %v4509_v14 = vpop.permute.xlu0 %3011 }
  0xfa   : > { %6275 = vst [vmem:[#allocation10_spill] sm:$0xff] %v4509_v14 }
  0xfb   : > { %897 = vmatmul.mubr.f32.gmra.mrb[86].mxu1 %v469_v15 }
  0xfc   : > { %1282 = vmatmul.mubr.f32.gmra.mrb[86].mxu0 %v471_v16  ;;  %901 = vmatprep.mubr.f32.mxu1 %v474_v17 }
  0xfd   : > { %1286 = vmatprep.mubr.f32.mxu0 %v476_v18  ;;  %v502_v18 = vld [vmem:[%s4094_s25 + $0x668] sm:$0xff] }
  0xff   : > { %902 = vmatmul.mubr.f32.gmra.mrb[88].mxu1 %v473_v20  ;;  %v504_v20 = vld [vmem:[%s4094_s25 + $0x678] sm:$0xff] }
 0x100   : > { %1287 = vmatmul.mubr.f32.gmra.mrb[88].mxu0 %v475_v21  ;;  %906 = vmatprep.mubr.f32.mxu1 %v478_v22  ;;  %v501_v21 = vld [vmem:[%s4094_s25 + $0x660] sm:$0xff] }
 0x101   : > { %1291 = vmatprep.mubr.f32.mxu0 %v480_v23 }
 0x103   : > { %907 = vmatmul.mubr.f32.gmra.mrb[90].mxu1 %v477_v25 }
 0x104   : > { %1292 = vmatmul.mubr.f32.gmra.mrb[90].mxu0 %v479_v26  ;;  %911 = vmatprep.mubr.f32.mxu1 %v482_v27  ;;  %v503_v27 = vld [vmem:[%s4094_s25 + $0x670] sm:$0xff] }
 0x105   : > { %1296 = vmatprep.mubr.f32.mxu0 %v484_v29 }
 0x107   : > { %912 = vmatmul.mubr.f32.gmra.mrb[92].mxu1 %v481_v30 }
 0x108   : > { %1297 = vmatmul.mubr.f32.gmra.mrb[92].mxu0 %v483_v31  ;;  %916 = vmatprep.mubr.f32.mxu1 %v486_v32  ;;  %v4524_v31 = vpop.permute.xlu1 %3006 }
 0x109   : > { %1301 = vmatprep.mubr.f32.mxu0 %v488_v34  ;;  %6276 = vst [vmem:[#allocation11_spill] sm:$0xff] %v4524_v31 }
 0x10b   : > { %917 = vmatmul.mubr.f32.gmra.mrb[94].mxu1 %v485_v36 }
 0x10c   : > { %1302 = vmatmul.mubr.f32.gmra.mrb[94].mxu0 %v487_v37  ;;  %921 = vmatprep.mubr.f32.mxu1 %v490_v38  ;;  %v506_v37 = vld [vmem:[%s4094_s25 + $0x688] sm:$0xff]  ;;  %v508_v38 = vld [vmem:[%s4094_s25 + $0x698] sm:$0xff] }
 0x10d   : > { %1306 = vmatprep.mubr.f32.mxu0 %v492_v39  ;;  %v505_v39 = vld [vmem:[%s4094_s25 + $0x680] sm:$0xff] }
 0x10f   : > { %922 = vmatmul.mubr.f32.gmra.mrb[96].mxu1 %v489_v41  ;;  %v4532_v41 = vpop.permute.xlu0 %3021 }
 0x110   : > { %1307 = vmatmul.mubr.f32.gmra.mrb[96].mxu0 %v491_v42  ;;  %926 = vmatprep.mubr.f32.mxu1 %v494_v43  ;;  %6277 = vst [vmem:[#allocation12_spill] sm:$0xff] %v4532_v41 }
 0x111   : > { %1311 = vmatprep.mubr.f32.mxu0 %v496_v45  ;;  %v507_v45 = vld [vmem:[%s4094_s25 + $0x690] sm:$0xff] }
 0x113   : > { %927 = vmatmul.mubr.f32.gmra.mrb[98].mxu1 %v493_v46 }
 0x114   : > { %1312 = vmatmul.mubr.f32.gmra.mrb[98].mxu0 %v495_v47  ;;  %931 = vmatprep.mubr.f32.mxu1 %v498_v48 }
 0x115   : > { %1316 = vmatprep.mubr.f32.mxu0 %v500_v50 }
 0x117   : > { %932 = vmatmul.mubr.f32.gmra.mrb[100].mxu1 %v497_v52 }
 0x118   : > { %1317 = vmatmul.mubr.f32.gmra.mrb[100].mxu0 %v499_v53  ;;  %936 = vmatprep.mubr.f32.mxu1 %v502_v18  ;;  %v4541_v53 = vpop.permute.xlu1 %3016 }
 0x119   : > { %1321 = vmatprep.mubr.f32.mxu0 %v504_v20  ;;  %6278 = vst [vmem:[#allocation13_spill] sm:$0xff] %v4541_v53 }
 0x11b   : > { %937 = vmatmul.mubr.f32.gmra.mrb[102].mxu1 %v501_v21 }
 0x11c   : > { %1322 = vmatmul.mubr.f32.gmra.mrb[102].mxu0 %v503_v27  ;;  %941 = vmatprep.mubr.f32.mxu1 %v506_v37 }
 0x11d   : > { %1326 = vmatprep.mubr.f32.mxu0 %v508_v38 }
 0x11f   : > { %942 = vmatmul.mubr.f32.gmra.mrb[104].mxu1 %v505_v39 }
 0x120   : > { %1327 = vmatmul.mubr.f32.gmra.mrb[104].mxu0 %v507_v45 }
 0x122   : > { %v683_v58 = vpop.f32.mrb[0].mxu1 }
 0x123   : > { %v1068_v59 = vpop.f32.mrb[0].mxu0  ;;  %v685_v60 = vpop.f32.mrb[1].mxu1 }
 0x124   : > { %v4494_v62 = vadd.f32 %v1068_v59, %v683_v58  ;;  %v1070_v63 = vpop.f32.mrb[1].mxu0 }
 0x126   : > { %v1388_v1 = vsel %vm1387_vm0, %v4494_v62, 0.0  ;;  %v688_v2 = vpop.f32.mrb[2].mxu1  ;;  %v1580_v4 = vmul.f32 %v4494_v62, %v4494_v62 }
 0x127   : > { %v1073_v5 = vpop.f32.mrb[2].mxu0  ;;  %1389 = vadd.xlane.f32.xlu0 %v1388_v1  ;;  %v690_v6 = vpop.f32.mrb[3].mxu1 }
 0x128   : > { %v4502_v7 = vadd.f32 %v1073_v5, %v688_v2  ;;  %v1075_v8 = vpop.f32.mrb[3].mxu0  ;;  %v1644_v9 = vsel %vm1387_vm0, %v1580_v4, 0.0  ;;  %v4547_v2 = vpop.permute.xlu0 %3031 }
 0x129   : > { %6279 = vst [vmem:[#allocation14_spill] sm:$0xff] %v4547_v2 }
 0x12a   : > { %v693_v10 = vpop.f32.mrb[4].mxu1  ;;  %v1581_v11 = vmul.f32 %v4502_v7, %v4502_v7  ;;  %v1391_v22 = vsel %vm1387_vm0, %v4502_v7, 0.0 }
 0x12b   : > { %1645 = vadd.xlane.f32.xlu0 %v1644_v9  ;;  %v1078_v12 = vpop.f32.mrb[4].mxu0  ;;  %v695_v13 = vpop.f32.mrb[5].mxu1 }
 0x12c   : > { %v4511_v15 = vadd.f32 %v1078_v12, %v693_v10  ;;  %v1080_v16 = vpop.f32.mrb[5].mxu0  ;;  %v1647_v17 = vsel %vm1387_vm0, %v1581_v11, 0.0  ;;  %v4555_v13 = vpop.permute.xlu1 %3026 }
 0x12d   : > { %1648 = vadd.xlane.f32.xlu1 %v1647_v17  ;;  %6280 = vst [vmem:[#allocation15_spill] sm:$0xff] %v4555_v13  ;;  %v4561_v20 = vpop.permute.xlu0 %3041 }
 0x12e   : > { %v698_v23 = vpop.f32.mrb[6].mxu1  ;;  %v1394_v25 = vsel %vm1387_vm0, %v4511_v15, 0.0  ;;  %v1582_v26 = vmul.f32 %v4511_v15, %v4511_v15  ;;  %6281 = vst [vmem:[#allocation16_spill] sm:$0xff] %v4561_v20 }
 0x12f   : > { %1392 = vadd.xlane.f32.xlu0 %v1391_v22  ;;  %v1083_v29 = vpop.f32.mrb[6].mxu0  ;;  %v700_v30 = vpop.f32.mrb[7].mxu1 }
 0x130   : > { %v4526_v32 = vadd.f32 %v1083_v29, %v698_v23  ;;  %v1085_v34 = vpop.f32.mrb[7].mxu0  ;;  %v1650_v36 = vsel %vm1387_vm0, %v1582_v26, 0.0 }
 0x131   : > { %1395 = vadd.xlane.f32.xlu1 %v1394_v25 }
 0x132   : > { %v703_v42 = vpop.f32.mrb[8].mxu1  ;;  %v1397_v43 = vsel %vm1387_vm0, %v4526_v32, 0.0  ;;  %v1583_v52 = vmul.f32 %v4526_v32, %v4526_v32 }
 0x133   : > { %v1088_v46 = vpop.f32.mrb[8].mxu0  ;;  %1651 = vadd.xlane.f32.xlu0 %v1650_v36  ;;  %v705_v47 = vpop.f32.mrb[9].mxu1 }
 0x134   : > { %v4537_v48 = vadd.f32 %v1088_v46, %v703_v42  ;;  %v1090_v50 = vpop.f32.mrb[9].mxu0  ;;  %v1653_v6 = vsel %vm1387_vm0, %v1583_v52, 0.0  ;;  %v4571_v36 = vpop.permute.xlu1 %3036 }
 0x135   : > { %1398 = vadd.xlane.f32.xlu1 %v1397_v43  ;;  %6283 = vst [vmem:[#allocation18_spill] sm:$0xff] %v4571_v36  ;;  %v4575_v43 = vpop.permute.xlu0 %3051 }
 0x136   : > { %v1400_v58 = vsel %vm1387_vm0, %v4537_v48, 0.0  ;;  %v708_v59 = vpop.f32.mrb[10].mxu1  ;;  %v1584_v60 = vmul.f32 %v4537_v48, %v4537_v48  ;;  %6284 = vst [vmem:[#allocation19_spill] sm:$0xff] %v4575_v43 }
 0x137   : > { %1401 = vadd.xlane.f32.xlu0 %v1400_v58  ;;  %v1093_v63 = vpop.f32.mrb[10].mxu0  ;;  %v710_v1 = vpop.f32.mrb[11].mxu1 }
 0x138   : > { %v4549_v4 = vadd.f32 %v1093_v63, %v708_v59  ;;  %v1095_v5 = vpop.f32.mrb[11].mxu0  ;;  %v1656_v8 = vsel %vm1387_vm0, %v1584_v60, 0.0  ;;  %v4585_v63 = vpop.permute.xlu1 %3046 }
 0x139   : > { %1654 = vadd.xlane.f32.xlu1 %v1653_v6  ;;  %6286 = vst [vmem:[#allocation21_spill] sm:$0xff] %v4585_v63 }
 0x13a   : > { %v713_v9 = vpop.f32.mrb[12].mxu1  ;;  %v1403_v10 = vsel %vm1387_vm0, %v4549_v4, 0.0  ;;  %v1585_v18 = vmul.f32 %v4549_v4, %v4549_v4 }
 0x13b   : > { %v1098_v11 = vpop.f32.mrb[12].mxu0  ;;  %1657 = vadd.xlane.f32.xlu0 %v1656_v8  ;;  %v715_v12 = vpop.f32.mrb[13].mxu1 }
 0x13c   : > { %v4557_v16 = vadd.f32 %v1098_v11, %v713_v9  ;;  %v1100_v17 = vpop.f32.mrb[13].mxu0  ;;  %v1659_v30 = vsel %vm1387_vm0, %v1585_v18, 0.0  ;;  %v4591_v9 = vpop.permute.xlu0 %3061 }
 0x13d   : > { %1404 = vadd.xlane.f32.xlu1 %v1403_v10  ;;  %6287 = vst [vmem:[#allocation22_spill] sm:$0xff] %v4591_v9 }
 0x13e   : > { %v1406_v21 = vsel %vm1387_vm0, %v4557_v16, 0.0  ;;  %v718_v22 = vpop.f32.mrb[14].mxu1  ;;  %v1586_v23 = vmul.f32 %v4557_v16, %v4557_v16 }
 0x13f   : > { %1407 = vadd.xlane.f32.xlu0 %v1406_v21  ;;  %v1103_v25 = vpop.f32.mrb[14].mxu0  ;;  %v720_v26 = vpop.f32.mrb[15].mxu1 }
 0x140   : > { %v4567_v27 = vadd.f32 %v1103_v25, %v718_v22  ;;  %v1105_v29 = vpop.f32.mrb[15].mxu0  ;;  %v1662_v34 = vsel %vm1387_vm0, %v1586_v23, 0.0  ;;  %v4599_v23 = vpop.permute.xlu1 %3056 }
 0x141   : > { %1660 = vadd.xlane.f32.xlu1 %v1659_v30  ;;  %6289 = vst [vmem:[#allocation24_spill] sm:$0xff] %v4599_v23  ;;  %v516_v23 = vld [vmem:[%s4094_s25 + $0x6d8] sm:$0xff] }
 0x142   : > { %6282 = vst [vmem:[#allocation17_spill] sm:$0xff] %v4567_v27  ;;  %v723_v37 = vpop.f32.mrb[16].mxu1  ;;  %v1409_v38 = vsel %vm1387_vm0, %v4567_v27, 0.0  ;;  %v1587_v47 = vmul.f32 %v4567_v27, %v4567_v27 }
 0x143   : > { %v1108_v39 = vpop.f32.mrb[16].mxu0  ;;  %1663 = vadd.xlane.f32.xlu0 %v1662_v34  ;;  %v725_v42 = vpop.f32.mrb[17].mxu1 }
 0x144   : > { %v4577_v45 = vadd.f32 %v1108_v39, %v723_v37  ;;  %v1110_v46 = vpop.f32.mrb[17].mxu0  ;;  %v1665_v6 = vsel %vm1387_vm0, %v1587_v47, 0.0  ;;  %v4605_v37 = vpop.permute.xlu0 %3071 }
 0x145   : > { %1410 = vadd.xlane.f32.xlu1 %v1409_v38  ;;  %6290 = vst [vmem:[#allocation25_spill] sm:$0xff] %v4605_v37  ;;  %v519_v37 = vld [vmem:[%s4094_s25 + $0x6f0] sm:$0xff] }
 0x146   : > { %6285 = vst [vmem:[#allocation20_spill] sm:$0xff] %v4577_v45  ;;  %v1412_v50 = vsel %vm1387_vm0, %v4577_v45, 0.0  ;;  %v728_v52 = vpop.f32.mrb[18].mxu1  ;;  %v1588_v58 = vmul.f32 %v4577_v45, %v4577_v45 }
 0x147   : > { %1413 = vadd.xlane.f32.xlu0 %v1412_v50  ;;  %v1113_v59 = vpop.f32.mrb[18].mxu0  ;;  %v730_v60 = vpop.f32.mrb[19].mxu1 }
 0x148   : > { %v4587_v1 = vadd.f32 %v1113_v59, %v728_v52  ;;  %v1115_v5 = vpop.f32.mrb[19].mxu0  ;;  %v1668_v8 = vsel %vm1387_vm0, %v1588_v58, 0.0  ;;  %v4613_v59 = vpop.permute.xlu1 %3066 }
 0x149   : > { %1666 = vadd.xlane.f32.xlu1 %v1665_v6  ;;  %6292 = vst [vmem:[#allocation27_spill] sm:$0xff] %v4613_v59 }
 0x14a   : > { %v733_v10 = vpop.f32.mrb[20].mxu1  ;;  %v1415_v11 = vsel %vm1387_vm0, %v4587_v1, 0.0  ;;  %v1589_v22 = vmul.f32 %v4587_v1, %v4587_v1 }
 0x14b   : > { %v1118_v12 = vpop.f32.mrb[20].mxu0  ;;  %1669 = vadd.xlane.f32.xlu0 %v1668_v8  ;;  %v735_v17 = vpop.f32.mrb[21].mxu1 }
 0x14c   : > { %v4595_v18 = vadd.f32 %v1118_v12, %v733_v10  ;;  %v1120_v21 = vpop.f32.mrb[21].mxu0  ;;  %v1671_v42 = vsel %vm1387_vm0, %v1589_v22, 0.0  ;;  %v4619_v8 = vpop.permute.xlu0 %3081 }
 0x14d   : > { %1416 = vadd.xlane.f32.xlu1 %v1415_v11  ;;  %6294 = vst [vmem:[#allocation29_spill] sm:$0xff] %v4619_v8 }
 0x14e   : > { %6288 = vst [vmem:[#allocation23_spill] sm:$0xff] %v4595_v18  ;;  %v1418_v25 = vsel %vm1387_vm0, %v4595_v18, 0.0  ;;  %v738_v26 = vpop.f32.mrb[22].mxu1  ;;  %v1590_v29 = vmul.f32 %v4595_v18, %v4595_v18 }
 0x14f   : > { %1419 = vadd.xlane.f32.xlu0 %v1418_v25  ;;  %v1123_v30 = vpop.f32.mrb[22].mxu0  ;;  %v740_v34 = vpop.f32.mrb[23].mxu1 }
 0x150   : > { %v4607_v38 = vadd.f32 %v1123_v30, %v738_v26  ;;  %v1125_v39 = vpop.f32.mrb[23].mxu0  ;;  %v1674_v46 = vsel %vm1387_vm0, %v1590_v29, 0.0  ;;  %v4629_v30 = vpop.permute.xlu1 %3076 }
 0x151   : > { %1672 = vadd.xlane.f32.xlu1 %v1671_v42  ;;  %6296 = vst [vmem:[#allocation31_spill] sm:$0xff] %v4629_v30 }
 0x152   : > { %6291 = vst [vmem:[#allocation26_spill] sm:$0xff] %v4607_v38  ;;  %v743_v47 = vpop.f32.mrb[24].mxu1  ;;  %v1421_v50 = vsel %vm1387_vm0, %v4607_v38, 0.0  ;;  %v1591_v6 = vmul.f32 %v4607_v38, %v4607_v38 }
 0x153   : > { %v1128_v52 = vpop.f32.mrb[24].mxu0  ;;  %1675 = vadd.xlane.f32.xlu0 %v1674_v46  ;;  %v745_v58 = vpop.f32.mrb[25].mxu1 }
 0x154   : > { %v4615_v60 = vadd.f32 %v1128_v52, %v743_v47  ;;  %v1130_v5 = vpop.f32.mrb[25].mxu0  ;;  %v1677_v26 = vsel %vm1387_vm0, %v1591_v6, 0.0  ;;  %v4633_v47 = vpop.permute.xlu0 %3091 }
 0x155   : > { %1422 = vadd.xlane.f32.xlu1 %v1421_v50  ;;  %6297 = vst [vmem:[#allocation32_spill] sm:$0xff] %v4633_v47 }
 0x156   : > { %6293 = vst [vmem:[#allocation28_spill] sm:$0xff] %v4615_v60  ;;  %v1424_v10 = vsel %vm1387_vm0, %v4615_v60, 0.0  ;;  %v748_v11 = vpop.f32.mrb[26].mxu1  ;;  %v1592_v12 = vmul.f32 %v4615_v60, %v4615_v60 }
 0x157   : > { %1425 = vadd.xlane.f32.xlu0 %v1424_v10  ;;  %v1133_v17 = vpop.f32.mrb[26].mxu0  ;;  %v750_v21 = vpop.f32.mrb[27].mxu1 }
 0x158   : > { %v4625_v22 = vadd.f32 %v1133_v17, %v748_v11  ;;  %v1135_v25 = vpop.f32.mrb[27].mxu0  ;;  %v1680_v29 = vsel %vm1387_vm0, %v1592_v12, 0.0  ;;  %v4643_v17 = vpop.permute.xlu1 %3086 }
 0x159   : > { %1678 = vadd.xlane.f32.xlu1 %v1677_v26  ;;  %6299 = vst [vmem:[#allocation34_spill] sm:$0xff] %v4643_v17 }
 0x15a   : > { %6295 = vst [vmem:[#allocation30_spill] sm:$0xff] %v4625_v22  ;;  %v753_v34 = vpop.f32.mrb[28].mxu1  ;;  %v1427_v39 = vsel %vm1387_vm0, %v4625_v22, 0.0  ;;  %v1593_v58 = vmul.f32 %v4625_v22, %v4625_v22 }
 0x15b   : > { %v1138_v42 = vpop.f32.mrb[28].mxu0  ;;  %1681 = vadd.xlane.f32.xlu0 %v1680_v29  ;;  %v755_v46 = vpop.f32.mrb[29].mxu1 }
 0x15c   : > { %v4635_v50 = vadd.f32 %v1138_v42, %v753_v34  ;;  %v1140_v52 = vpop.f32.mrb[29].mxu0  ;;  %v1683_v26 = vsel %vm1387_vm0, %v1593_v58, 0.0  ;;  %v4649_v34 = vpop.permute.xlu0 %3101 }
 0x15d   : > { %1428 = vadd.xlane.f32.xlu1 %v1427_v39  ;;  %6301 = vst [vmem:[#allocation36_spill] sm:$0xff] %v4649_v34 }
 0x15e   : > { %6298 = vst [vmem:[#allocation33_spill] sm:$0xff] %v4635_v50  ;;  %v1430_v5 = vsel %vm1387_vm0, %v4635_v50, 0.0  ;;  %v758_v6 = vpop.f32.mrb[30].mxu1  ;;  %v1594_v10 = vmul.f32 %v4635_v50, %v4635_v50  ;;  %v532_v50 = vld [vmem:[%s4094_s25 + $0x758] sm:$0xff] }
 0x15f   : > { %1431 = vadd.xlane.f32.xlu0 %v1430_v5  ;;  %v1143_v11 = vpop.f32.mrb[30].mxu0  ;;  %v760_v12 = vpop.f32.mrb[31].mxu1 }
 0x160   : > { %v4645_v21 = vadd.f32 %v1143_v11, %v758_v6  ;;  %v1145_v25 = vpop.f32.mrb[31].mxu0  ;;  %v1686_v29 = vsel %vm1387_vm0, %v1594_v10, 0.0  ;;  %v4657_v10 = vpop.permute.xlu1 %3096 }
 0x161   : > { %1684 = vadd.xlane.f32.xlu1 %v1683_v26  ;;  %6303 = vst [vmem:[#allocation38_spill] sm:$0xff] %v4657_v10  ;;  %v510_v26 = vld [vmem:[%s4094_s25 + $0x6a8] sm:$0xff] }
 0x162   : > { %6300 = vst [vmem:[#allocation35_spill] sm:$0xff] %v4645_v21  ;;  %v763_v39 = vpop.f32.mrb[32].mxu1  ;;  %v1433_v42 = vsel %vm1387_vm0, %v4645_v21, 0.0  ;;  %v1595_v58 = vmul.f32 %v4645_v21, %v4645_v21  ;;  %946 = vmatprep.mubr.f32.mxu1 %v510_v26 }
 0x163   : > { %v1148_v46 = vpop.f32.mrb[32].mxu0  ;;  %1687 = vadd.xlane.f32.xlu0 %v1686_v29  ;;  %v765_v52 = vpop.f32.mrb[33].mxu1  ;;  %v512_v29 = vld [vmem:[%s4094_s25 + $0x6b8] sm:$0xff] }
 0x164   : > { %v4653_v5 = vadd.f32 %v1148_v46, %v763_v39  ;;  %v1150_v6 = vpop.f32.mrb[33].mxu0  ;;  %v509_v46 = vld [vmem:[%s4094_s25 + $0x6a0] sm:$0xff]  ;;  %v1689_v30 = vsel %vm1387_vm0, %v1595_v58, 0.0  ;;  %1331 = vmatprep.mubr.f32.mxu0 %v512_v29  ;;  %v4679_v36 = vpop.permute.xlu1 %3106 }
 0x165   : > { %1434 = vadd.xlane.f32.xlu1 %v1433_v42  ;;  %v511_v6 = vld [vmem:[%s4094_s25 + $0x6b0] sm:$0xff]  ;;  %v4667_v42 = vpop.permute.xlu0 %3111  ;;  %947 = vmatmul.mubr.f32.gmra.mrb[106].mxu1 %v509_v46  ;;  %6306 = vst [vmem:[#allocation41_spill] sm:$0xff] %v4679_v36 }
 0x166   : > { %6302 = vst [vmem:[#allocation37_spill] sm:$0xff] %v4653_v5  ;;  %v1436_v11 = vsel %vm1387_vm0, %v4653_v5, 0.0  ;;  %v768_v12 = vpop.f32.mrb[34].mxu1  ;;  %v1596_v25 = vmul.f32 %v4653_v5, %v4653_v5  ;;  %6304 = vst [vmem:[#allocation39_spill] sm:$0xff] %v4667_v42  ;;  %1332 = vmatmul.mubr.f32.gmra.mrb[106].mxu0 %v511_v6 }
 0x167   : > { %1437 = vadd.xlane.f32.xlu0 %v1436_v11  ;;  %v1153_v52 = vpop.f32.mrb[34].mxu0  ;;  %v770_v39 = vpop.f32.mrb[35].mxu1  ;;  %1336 = vmatprep.mubr.f32.mxu0 %v516_v23 }
 0x168   : > { %v4669_v10 = vadd.f32 %v1153_v52, %v768_v12  ;;  %v1155_v17 = vpop.f32.mrb[35].mxu0  ;;  %v1692_v59 = vsel %vm1387_vm0, %v1596_v25, 0.0  ;;  %v514_v39 = vld [vmem:[%s4094_s25 + $0x6c8] sm:$0xff]  ;;  %v515_v52 = vld [vmem:[%s4094_s25 + $0x6d0] sm:$0xff] }
 0x169   : > { %1690 = vadd.xlane.f32.xlu1 %v1689_v30  ;;  %951 = vmatprep.mubr.f32.mxu1 %v514_v39  ;;  %v513_v17 = vld [vmem:[%s4094_s25 + $0x6c0] sm:$0xff]  ;;  %v4685_v29 = vpop.permute.xlu0 %3121 }
 0x16a   : > { %6305 = vst [vmem:[#allocation40_spill] sm:$0xff] %v4669_v10  ;;  %v773_v11 = vpop.f32.mrb[36].mxu1  ;;  %v1439_v26 = vsel %vm1387_vm0, %v4669_v10, 0.0  ;;  %v1597_v30 = vmul.f32 %v4669_v10, %v4669_v10  ;;  %952 = vmatmul.mubr.f32.gmra.mrb[108].mxu1 %v513_v17  ;;  %1337 = vmatmul.mubr.f32.gmra.mrb[108].mxu0 %v515_v52  ;;  %6308 = vst [vmem:[#allocation43_spill] sm:$0xff] %v4685_v29  ;;  %v4695_v17 = vpop.permute.xlu1 %3116  ;;  %v2093_v10 = vld [vmem:[%s4958_s30 + $0x8] sm:$0xff] }
 0x16b   : > { %v1158_v63 = vpop.f32.mrb[36].mxu0  ;;  %1693 = vadd.xlane.f32.xlu0 %v1692_v59  ;;  %v775_v12 = vpop.f32.mrb[37].mxu1  ;;  %6310 = vst [vmem:[#allocation45_spill] sm:$0xff] %v4695_v17 }
 0x16c   : > { %v4681_v58 = vadd.f32 %v1158_v63, %v773_v11  ;;  %v1160_v25 = vpop.f32.mrb[37].mxu0  ;;  %v1695_v23 = vsel %vm1387_vm0, %v1597_v30, 0.0 }
 0x16d   : > { %1440 = vadd.xlane.f32.xlu1 %v1439_v26 }
 0x16e   : > { %6307 = vst [vmem:[#allocation42_spill] sm:$0xff] %v4681_v58  ;;  %v1442_v59 = vsel %vm1387_vm0, %v4681_v58, 0.0  ;;  %v778_v46 = vpop.f32.mrb[38].mxu1  ;;  %v1598_v6 = vmul.f32 %v4681_v58, %v4681_v58 }
 0x16f   : > { %1443 = vadd.xlane.f32.xlu0 %v1442_v59  ;;  %v1163_v63 = vpop.f32.mrb[38].mxu0  ;;  %v780_v11 = vpop.f32.mrb[39].mxu1 }
 0x170   : > { %v4691_v39 = vadd.f32 %v1163_v63, %v778_v46  ;;  %v1165_v12 = vpop.f32.mrb[39].mxu0  ;;  %v1698_v26 = vsel %vm1387_vm0, %v1598_v6, 0.0  ;;  %v4699_v59 = vpop.permute.xlu0 %3131 }
 0x171   : > { %1696 = vadd.xlane.f32.xlu1 %v1695_v23  ;;  %6311 = vst [vmem:[#allocation46_spill] sm:$0xff] %v4699_v59 }
 0x172   : > { %6309 = vst [vmem:[#allocation44_spill] sm:$0xff] %v4691_v39  ;;  %v783_v52 = vpop.f32.mrb[40].mxu1  ;;  %v1445_v25 = vsel %vm1387_vm0, %v4691_v39, 0.0  ;;  %v1599_v30 = vmul.f32 %v4691_v39, %v4691_v39 }
 0x173   : > { %v1168_v36 = vpop.f32.mrb[40].mxu0  ;;  %1699 = vadd.xlane.f32.xlu0 %v1698_v26  ;;  %v785_v13 = vpop.f32.mrb[41].mxu1 }
 0x174   : > { %v4701_v11 = vadd.f32 %v1168_v36, %v783_v52  ;;  %v1170_v46 = vpop.f32.mrb[41].mxu0  ;;  %v4709_v13 = vpop.permute.xlu1 %3126  ;;  %v1701_v52 = vsel %vm1387_vm0, %v1599_v30, 0.0 }
 0x175   : > { %1446 = vadd.xlane.f32.xlu1 %v1445_v25  ;;  %6313 = vst [vmem:[#allocation48_spill] sm:$0xff] %v4709_v13  ;;  %v4715_v25 = vpop.permute.xlu0 %3141 }
 0x176   : > { %6312 = vst [vmem:[#allocation47_spill] sm:$0xff] %v4701_v11  ;;  %v1448_v6 = vsel %vm1387_vm0, %v4701_v11, 0.0  ;;  %v788_v63 = vpop.f32.mrb[42].mxu1  ;;  %v1600_v12 = vmul.f32 %v4701_v11, %v4701_v11  ;;  %6315 = vst [vmem:[#allocation50_spill] sm:$0xff] %v4715_v25 }
 0x177   : > { %1449 = vadd.xlane.f32.xlu0 %v1448_v6  ;;  %v1173_v23 = vpop.f32.mrb[42].mxu0  ;;  %v790_v26 = vpop.f32.mrb[43].mxu1 }
 0x178   : > { %v4711_v17 = vadd.f32 %v1173_v23, %v788_v63  ;;  %v1175_v36 = vpop.f32.mrb[43].mxu0  ;;  %v1704_v46 = vsel %vm1387_vm0, %v1600_v12, 0.0  ;;  %v4723_v30 = vpop.permute.xlu1 %3136 }
 0x179   : > { %1702 = vadd.xlane.f32.xlu1 %v1701_v52  ;;  %6317 = vst [vmem:[#allocation52_spill] sm:$0xff] %v4723_v30 }
 0x17a   : > { %6314 = vst [vmem:[#allocation49_spill] sm:$0xff] %v4711_v17  ;;  %v793_v59 = vpop.f32.mrb[44].mxu1  ;;  %v1451_v29 = vsel %vm1387_vm0, %v4711_v17, 0.0  ;;  %v1601_v63 = vmul.f32 %v4711_v17, %v4711_v17 }
 0x17b   : > { %v1178_v11 = vpop.f32.mrb[44].mxu0  ;;  %1705 = vadd.xlane.f32.xlu0 %v1704_v46  ;;  %v795_v6 = vpop.f32.mrb[45].mxu1 }
 0x17c   : > { %v4719_v26 = vadd.f32 %v1178_v11, %v793_v59  ;;  %v1180_v13 = vpop.f32.mrb[45].mxu0  ;;  %v4729_v6 = vpop.permute.xlu0 %3151 }
 0x17d   : > { %1452 = vadd.xlane.f32.xlu1 %v1451_v29  ;;  %6318 = vst [vmem:[#allocation53_spill] sm:$0xff] %v4729_v6  ;;  %v1707_v13 = vsel %vm1387_vm0, %v1601_v63, 0.0 }
 0x17e   : > { %6316 = vst [vmem:[#allocation51_spill] sm:$0xff] %v4719_v26  ;;  %v1454_v12 = vsel %vm1387_vm0, %v4719_v26, 0.0  ;;  %v798_v23 = vpop.f32.mrb[46].mxu1  ;;  %v1602_v36 = vmul.f32 %v4719_v26, %v4719_v26 }
 0x17f   : > { %1455 = vadd.xlane.f32.xlu0 %v1454_v12  ;;  %v1183_v52 = vpop.f32.mrb[46].mxu0  ;;  %v800_v46 = vpop.f32.mrb[47].mxu1 }
 0x180   : > { %v4731_v59 = vadd.f32 %v1183_v52, %v798_v23  ;;  %v1185_v11 = vpop.f32.mrb[47].mxu0  ;;  %v1710_v29 = vsel %vm1387_vm0, %v1602_v36, 0.0  ;;  %v4737_v12 = vpop.permute.xlu1 %3146 }
 0x181   : > { %1708 = vadd.xlane.f32.xlu1 %v1707_v13  ;;  %6320 = vst [vmem:[#allocation55_spill] sm:$0xff] %v4737_v12  ;;  %v4743_v63 = vpop.permute.xlu0 %3161 }
 0x182   : > { %6319 = vst [vmem:[#allocation54_spill] sm:$0xff] %v4731_v59  ;;  %v803_v30 = vpop.f32.mrb[48].mxu1  ;;  %v1457_v25 = vsel %vm1387_vm0, %v4731_v59, 0.0  ;;  %v1603_v23 = vmul.f32 %v4731_v59, %v4731_v59  ;;  %6322 = vst [vmem:[#allocation57_spill] sm:$0xff] %v4743_v63 }
 0x183   : > { %v1188_v42 = vpop.f32.mrb[48].mxu0  ;;  %1711 = vadd.xlane.f32.xlu0 %v1710_v29  ;;  %v805_v26 = vpop.f32.mrb[49].mxu1 }
 0x184   : > { %v4739_v46 = vadd.f32 %v1188_v42, %v803_v30  ;;  %v1190_v6 = vpop.f32.mrb[49].mxu0  ;;  %v1713_v30 = vsel %vm1387_vm0, %v1603_v23, 0.0 }
 0x185   : > { %1458 = vadd.xlane.f32.xlu1 %v1457_v25  ;;  %v4753_v25 = vpop.permute.xlu1 %3156 }
 0x186   : > { %6321 = vst [vmem:[#allocation56_spill] sm:$0xff] %v4739_v46  ;;  %v1460_v36 = vsel %vm1387_vm0, %v4739_v46, 0.0  ;;  %v808_v52 = vpop.f32.mrb[50].mxu1  ;;  %v1604_v11 = vmul.f32 %v4739_v46, %v4739_v46  ;;  %6324 = vst [vmem:[#allocation59_spill] sm:$0xff] %v4753_v25 }
 0x187   : > { %1461 = vadd.xlane.f32.xlu0 %v1460_v36  ;;  %v1193_v26 = vpop.f32.mrb[50].mxu0  ;;  %v810_v13 = vpop.f32.mrb[51].mxu1 }
 0x188   : > { %v4749_v29 = vadd.f32 %v1193_v26, %v808_v52  ;;  %v1195_v42 = vpop.f32.mrb[51].mxu0  ;;  %v1716_v6 = vsel %vm1387_vm0, %v1604_v11, 0.0  ;;  %v4757_v36 = vpop.permute.xlu0 %3171 }
 0x189   : > { %1714 = vadd.xlane.f32.xlu1 %v1713_v30  ;;  %6325 = vst [vmem:[#allocation60_spill] sm:$0xff] %v4757_v36 }
 0x18a   : > { %6323 = vst [vmem:[#allocation58_spill] sm:$0xff] %v4749_v29  ;;  %v813_v12 = vpop.f32.mrb[52].mxu1  ;;  %v1463_v63 = vsel %vm1387_vm0, %v4749_v29, 0.0  ;;  %v1605_v23 = vmul.f32 %v4749_v29, %v4749_v29 }
 0x18b   : > { %v1198_v34 = vpop.f32.mrb[52].mxu0  ;;  %1717 = vadd.xlane.f32.xlu0 %v1716_v6  ;;  %v815_v46 = vpop.f32.mrb[53].mxu1 }
 0x18c   : > { %v4759_v13 = vadd.f32 %v1198_v34, %v813_v12  ;;  %v1200_v52 = vpop.f32.mrb[53].mxu0  ;;  %v4767_v46 = vpop.permute.xlu1 %3166  ;;  %v1719_v12 = vsel %vm1387_vm0, %v1605_v23, 0.0 }
 0x18d   : > { %1464 = vadd.xlane.f32.xlu1 %v1463_v63  ;;  %6327 = vst [vmem:[#allocation62_spill] sm:$0xff] %v4767_v46  ;;  %v4773_v63 = vpop.permute.xlu0 %3181 }
 0x18e   : > { %6326 = vst [vmem:[#allocation61_spill] sm:$0xff] %v4759_v13  ;;  %v1466_v11 = vsel %vm1387_vm0, %v4759_v13, 0.0  ;;  %v818_v26 = vpop.f32.mrb[54].mxu1  ;;  %v1606_v42 = vmul.f32 %v4759_v13, %v4759_v13  ;;  %6329 = vst [vmem:[#allocation64_spill] sm:$0xff] %v4773_v63 }
 0x18f   : > { %1467 = vadd.xlane.f32.xlu0 %v1466_v11  ;;  %v1203_v30 = vpop.f32.mrb[54].mxu0  ;;  %v820_v6 = vpop.f32.mrb[55].mxu1 }
 0x190   : > { %v4769_v25 = vadd.f32 %v1203_v30, %v818_v26  ;;  %v1205_v34 = vpop.f32.mrb[55].mxu0  ;;  %v1722_v52 = vsel %vm1387_vm0, %v1606_v42, 0.0  ;;  %v4781_v23 = vpop.permute.xlu1 %3176 }
 0x191   : > { %1720 = vadd.xlane.f32.xlu1 %v1719_v12  ;;  %6331 = vst [vmem:[#allocation66_spill] sm:$0xff] %v4781_v23 }
 0x192   : > { %6328 = vst [vmem:[#allocation63_spill] sm:$0xff] %v4769_v25  ;;  %v823_v36 = vpop.f32.mrb[56].mxu1  ;;  %v1469_v47 = vsel %vm1387_vm0, %v4769_v25, 0.0  ;;  %v1607_v26 = vmul.f32 %v4769_v25, %v4769_v25 }
 0x193   : > { %v1208_v13 = vpop.f32.mrb[56].mxu0  ;;  %1723 = vadd.xlane.f32.xlu0 %v1722_v52  ;;  %v825_v11 = vpop.f32.mrb[57].mxu1 }
 0x194   : > { %v4777_v6 = vadd.f32 %v1208_v13, %v823_v36  ;;  %v1210_v46 = vpop.f32.mrb[57].mxu0  ;;  %v4787_v11 = vpop.permute.xlu0 %3191 }
 0x195   : > { %1470 = vadd.xlane.f32.xlu1 %v1469_v47  ;;  %6332 = vst [vmem:[#allocation67_spill] sm:$0xff] %v4787_v11  ;;  %v1725_v46 = vsel %vm1387_vm0, %v1607_v26, 0.0  ;;  %v517_v11 = vld [vmem:[%s4094_s25 + $0x6e0] sm:$0xff] }
 0x196   : > { %6330 = vst [vmem:[#allocation65_spill] sm:$0xff] %v4777_v6  ;;  %v1472_v42 = vsel %vm1387_vm0, %v4777_v6, 0.0  ;;  %v828_v30 = vpop.f32.mrb[58].mxu1  ;;  %v1608_v34 = vmul.f32 %v4777_v6, %v4777_v6 }
 0x197   : > { %1473 = vadd.xlane.f32.xlu0 %v1472_v42  ;;  %v1213_v12 = vpop.f32.mrb[58].mxu0  ;;  %v830_v52 = vpop.f32.mrb[59].mxu1 }
 0x198   : > { %v4789_v36 = vadd.f32 %v1213_v12, %v828_v30  ;;  %v1215_v13 = vpop.f32.mrb[59].mxu0  ;;  %v1728_v47 = vsel %vm1387_vm0, %v1608_v34, 0.0  ;;  %v4795_v52 = vpop.permute.xlu1 %3186 }
 0x199   : > { %1726 = vadd.xlane.f32.xlu1 %v1725_v46  ;;  %6334 = vst [vmem:[#allocation69_spill] sm:$0xff] %v4795_v52  ;;  %v4801_v34 = vpop.permute.xlu0 %3201 }
 0x19a   : > { %6333 = vst [vmem:[#allocation68_spill] sm:$0xff] %v4789_v36  ;;  %v833_v23 = vpop.f32.mrb[60].mxu1  ;;  %v1475_v63 = vsel %vm1387_vm0, %v4789_v36, 0.0  ;;  %v1609_v26 = vmul.f32 %v4789_v36, %v4789_v36  ;;  %6336 = vst [vmem:[#allocation71_spill] sm:$0xff] %v4801_v34 }
 0x19b   : > { %v1218_v8 = vpop.f32.mrb[60].mxu0  ;;  %1729 = vadd.xlane.f32.xlu0 %v1728_v47  ;;  %v835_v42 = vpop.f32.mrb[61].mxu1 }
 0x19c   : > { %v4797_v6 = vadd.f32 %v1218_v8, %v833_v23  ;;  %v1220_v30 = vpop.f32.mrb[61].mxu0  ;;  %v518_v23 = vld [vmem:[%s4094_s25 + $0x6e8] sm:$0xff]  ;;  %v520_v42 = vld [vmem:[%s4094_s25 + $0x6f8] sm:$0xff] }
 0x19d   : > { %1476 = vadd.xlane.f32.xlu1 %v1475_v63  ;;  %v1731_v63 = vsel %vm1387_vm0, %v1609_v26, 0.0  ;;  %956 = vmatprep.mubr.f32.mxu1 %v518_v23  ;;  %v4821_v23 = vpop.permute.xlu0 %3211 }
 0x19e   : > { %6335 = vst [vmem:[#allocation70_spill] sm:$0xff] %v4797_v6  ;;  %v1478_v12 = vsel %vm1387_vm0, %v4797_v6, 0.0  ;;  %v838_v13 = vpop.f32.mrb[62].mxu1  ;;  %v1610_v46 = vmul.f32 %v4797_v6, %v4797_v6  ;;  %1341 = vmatprep.mubr.f32.mxu0 %v520_v42  ;;  %957 = vmatmul.mubr.f32.gmra.mrb[110].mxu1 %v517_v11  ;;  %6339 = vst [vmem:[#allocation74_spill] sm:$0xff] %v4821_v23  ;;  %v523_v6 = vld [vmem:[%s4094_s25 + $0x710] sm:$0xff] }
 0x19f   : > { %1479 = vadd.xlane.f32.xlu0 %v1478_v12  ;;  %v1223_v47 = vpop.f32.mrb[62].mxu0  ;;  %v840_v8 = vpop.f32.mrb[63].mxu1  ;;  %1342 = vmatmul.mubr.f32.gmra.mrb[110].mxu0 %v519_v37 }
 0x1a0   : > { %v4809_v30 = vadd.f32 %v1223_v47, %v838_v13  ;;  %v1225_v52 = vpop.f32.mrb[63].mxu0  ;;  %v1734_v34 = vsel %vm1387_vm0, %v1610_v46, 0.0  ;;  %v4815_v12 = vpop.permute.xlu1 %3196  ;;  %v522_v47 = vld [vmem:[%s4094_s25 + $0x708] sm:$0xff]  ;;  %v524_v46 = vld [vmem:[%s4094_s25 + $0x718] sm:$0xff] }
 0x1a1   : > { %1732 = vadd.xlane.f32.xlu1 %v1731_v63  ;;  %6338 = vst [vmem:[#allocation73_spill] sm:$0xff] %v4815_v12  ;;  %961 = vmatprep.mubr.f32.mxu1 %v522_v47  ;;  %v521_v12 = vld [vmem:[%s4094_s25 + $0x700] sm:$0xff] }
 0x1a2   : > { %6337 = vst [vmem:[#allocation72_spill] sm:$0xff] %v4809_v30  ;;  %v843_v8 = vpop.f32.mrb[64].mxu1  ;;  %v1481_v52 = vsel %vm1387_vm0, %v4809_v30, 0.0  ;;  %v1611_v11 = vmul.f32 %v4809_v30, %v4809_v30  ;;  %1346 = vmatprep.mubr.f32.mxu0 %v524_v46  ;;  %962 = vmatmul.mubr.f32.gmra.mrb[112].mxu1 %v521_v12 }
 0x1a3   : > { %v1228_v13 = vpop.f32.mrb[64].mxu0  ;;  %1735 = vadd.xlane.f32.xlu0 %v1734_v34  ;;  %v845_v26 = vpop.f32.mrb[65].mxu1  ;;  %1347 = vmatmul.mubr.f32.gmra.mrb[112].mxu0 %v523_v6 }
 0x1a4   : > { %v4823_v42 = vadd.f32 %v1228_v13, %v843_v8  ;;  %v1230_v63 = vpop.f32.mrb[65].mxu0  ;;  %v1737_v46 = vsel %vm1387_vm0, %v1611_v11, 0.0 }
 0x1a5   : > { %1482 = vadd.xlane.f32.xlu1 %v1481_v52  ;;  %v4833_v63 = vpop.permute.xlu1 %3206  ;;  %v4839_v52 = vpop.permute.xlu0 %3221 }
 0x1a6   : > { %6340 = vst [vmem:[#allocation75_spill] sm:$0xff] %v4823_v42  ;;  %v1484_v37 = vsel %vm1387_vm0, %v4823_v42, 0.0  ;;  %v848_v34 = vpop.f32.mrb[66].mxu1  ;;  %v1612_v26 = vmul.f32 %v4823_v42, %v4823_v42  ;;  %6341 = vst [vmem:[#allocation76_spill] sm:$0xff] %v4833_v63 }
 0x1a7   : > { %1485 = vadd.xlane.f32.xlu0 %v1484_v37  ;;  %v1233_v8 = vpop.f32.mrb[66].mxu0  ;;  %v850_v13 = vpop.f32.mrb[67].mxu1  ;;  %6343 = vst [vmem:[#allocation78_spill] sm:$0xff] %v4839_v52 }
 0x1a8   : > { %v4835_v23 = vadd.f32 %v1233_v8, %v848_v34  ;;  %v1235_v47 = vpop.f32.mrb[67].mxu0  ;;  %v1740_v12 = vsel %vm1387_vm0, %v1612_v26, 0.0 }
 0x1a9   : > { %1738 = vadd.xlane.f32.xlu1 %v1737_v46  ;;  %v4847_v11 = vpop.permute.xlu1 %3216 }
 0x1aa   : > { %6342 = vst [vmem:[#allocation77_spill] sm:$0xff] %v4835_v23  ;;  %v853_v30 = vpop.f32.mrb[68].mxu1  ;;  %v1487_v42 = vsel %vm1387_vm0, %v4835_v23, 0.0  ;;  %v1613_v34 = vmul.f32 %v4835_v23, %v4835_v23  ;;  %6345 = vst [vmem:[#allocation80_spill] sm:$0xff] %v4847_v11 }
 0x1ab   : > { %v1238_v6 = vpop.f32.mrb[68].mxu0  ;;  %1741 = vadd.xlane.f32.xlu0 %v1740_v12  ;;  %v855_v37 = vpop.f32.mrb[69].mxu1 }
 0x1ac   : > { %v4843_v13 = vadd.f32 %v1238_v6, %v853_v30  ;;  %v1240_v63 = vpop.f32.mrb[69].mxu0  ;;  %v4853_v37 = vpop.permute.xlu0 %3231  ;;  %v1743_v6 = vsel %vm1387_vm0, %v1613_v34, 0.0 }
 0x1ad   : > { %1488 = vadd.xlane.f32.xlu1 %v1487_v42  ;;  %6346 = vst [vmem:[#allocation81_spill] sm:$0xff] %v4853_v37 }
 0x1ae   : > { %6344 = vst [vmem:[#allocation79_spill] sm:$0xff] %v4843_v13  ;;  %v1490_v26 = vsel %vm1387_vm0, %v4843_v13, 0.0  ;;  %v858_v8 = vpop.f32.mrb[70].mxu1  ;;  %v1614_v47 = vmul.f32 %v4843_v13, %v4843_v13 }
 0x1af   : > { %1491 = vadd.xlane.f32.xlu0 %v1490_v26  ;;  %v1243_v46 = vpop.f32.mrb[70].mxu0  ;;  %v860_v12 = vpop.f32.mrb[71].mxu1 }
 0x1b0   : > { %v4855_v30 = vadd.f32 %v1243_v46, %v858_v8  ;;  %v1245_v63 = vpop.f32.mrb[71].mxu0  ;;  %v1746_v42 = vsel %vm1387_vm0, %v1614_v47, 0.0  ;;  %v4865_v46 = vpop.permute.xlu1 %3226 }
 0x1b1   : > { %1744 = vadd.xlane.f32.xlu1 %v1743_v6  ;;  %6349 = vst [vmem:[#allocation84_spill] sm:$0xff] %v4865_v46 }
 0x1b2   : > { %6347 = vst [vmem:[#allocation82_spill] sm:$0xff] %v4855_v30  ;;  %v863_v11 = vpop.f32.mrb[72].mxu1  ;;  %v1493_v52 = vsel %vm1387_vm0, %v4855_v30, 0.0  ;;  %v1615_v8 = vmul.f32 %v4855_v30, %v4855_v30 }
 0x1b3   : > { %v1248_v23 = vpop.f32.mrb[72].mxu0  ;;  %1747 = vadd.xlane.f32.xlu0 %v1746_v42  ;;  %v865_v13 = vpop.f32.mrb[73].mxu1 }
 0x1b4   : > { %v4861_v26 = vadd.f32 %v1248_v23, %v863_v11  ;;  %v1390_v12 = vpop.xlane.xlu0 %1389  ;;  %v1250_v36 = vpop.f32.mrb[73].mxu0  ;;  %v1749_v42 = vsel %vm1387_vm0, %v1615_v8, 0.0 }
 0x1b5   : > { %1494 = vadd.xlane.f32.xlu1 %v1493_v52 }
 0x1b6   : > { %6348 = vst [vmem:[#allocation83_spill] sm:$0xff] %v4861_v26  ;;  %v1496_v34 = vsel %vm1387_vm0, %v4861_v26, 0.0  ;;  %v868_v47 = vpop.f32.mrb[74].mxu1  ;;  %v1616_v63 = vmul.f32 %v4861_v26, %v4861_v26 }
 0x1b7   : > { %1497 = vadd.xlane.f32.xlu0 %v1496_v34  ;;  %v1253_v6 = vpop.f32.mrb[74].mxu0  ;;  %v870_v13 = vpop.f32.mrb[75].mxu1 }
 0x1b8   : > { %v1646_v23 = vpop.xlane.xlu0 %1645  ;;  %v4871_v11 = vadd.f32 %v1253_v6, %v868_v47  ;;  %v1255_v36 = vpop.f32.mrb[75].mxu0  ;;  %v1752_v52 = vsel %vm1387_vm0, %v1616_v63, 0.0 }
 0x1b9   : > { %1750 = vadd.xlane.f32.xlu1 %v1749_v42 }
 0x1ba   : > { %6350 = vst [vmem:[#allocation85_spill] sm:$0xff] %v4871_v11  ;;  %v1649_v37 = vpop.xlane.xlu1 %1648  ;;  %v873_v46 = vpop.f32.mrb[76].mxu1  ;;  %v1499_v30 = vsel %vm1387_vm0, %v4871_v11, 0.0  ;;  %v1617_v47 = vmul.f32 %v4871_v11, %v4871_v11 }
 0x1bb   : > { %v1258_v9 = vpop.f32.mrb[76].mxu0  ;;  %1753 = vadd.xlane.f32.xlu0 %v1752_v52  ;;  %v875_v26 = vpop.f32.mrb[77].mxu1  ;;  %v1901_v58 = vmul.f32 0.020408163, %v1649_v37 }
 0x1bc   : > { %v4877_v34 = vadd.f32 %v1258_v9, %v873_v46  ;;  %v1393_v13 = vpop.xlane.xlu0 %1392  ;;  %v1260_v25 = vpop.f32.mrb[77].mxu0 }
 0x1bd   : > { %1500 = vadd.xlane.f32.xlu1 %v1499_v30  ;;  %v1755_v25 = vsel %vm1387_vm0, %v1617_v47, 0.0  ;;  %v4893_v20 = vmul.f32 0.020408163, %v1393_v13 }
 0x1be   : > { %6351 = vst [vmem:[#allocation86_spill] sm:$0xff] %v4877_v34  ;;  %v1396_v8 = vpop.xlane.xlu1 %1395  ;;  %v1502_v63 = vsel %vm1387_vm0, %v4877_v34, 0.0  ;;  %v878_v6 = vpop.f32.mrb[78].mxu1  ;;  %v1618_v36 = vmul.f32 %v4877_v34, %v4877_v34  ;;  %v4895_v34 = vmul.f32 0.020408163, %v1390_v12 }
 0x1bf   : > { %1503 = vadd.xlane.f32.xlu0 %v1502_v63  ;;  %v1263_v42 = vpop.f32.mrb[78].mxu0  ;;  %v880_v52 = vpop.f32.mrb[79].mxu1 }
 0x1c0   : > { %v1652_v26 = vpop.xlane.xlu0 %1651  ;;  %v4885_v9 = vadd.f32 %v1263_v42, %v878_v6  ;;  %v1265_v46 = vpop.f32.mrb[79].mxu0  ;;  %v1758_v11 = vsel %vm1387_vm0, %v1618_v36, 0.0 }
 0x1c1   : > { %1756 = vadd.xlane.f32.xlu1 %v1755_v25  ;;  %v1900_v46 = vmul.f32 0.020408163, %v1646_v23 }
 0x1c2   : > { %6352 = vst [vmem:[#allocation87_spill] sm:$0xff] %v4885_v9  ;;  %v4889_v30 = vpop.xlane.xlu1 %1398  ;;  %v883_v43 = vpop.f32.mrb[80].mxu1  ;;  %v1505_v29 = vsel %vm1387_vm0, %v4885_v9, 0.0  ;;  %v1619_v36 = vmul.f32 %v4885_v9, %v4885_v9 }
 0x1c3   : > { %v1268_v63 = vpop.f32.mrb[80].mxu0  ;;  %1759 = vadd.xlane.f32.xlu0 %v1758_v11  ;;  %v885_v52 = vpop.f32.mrb[81].mxu1  ;;  %v4911_v11 = vmul.f32 0.020408163, %v1396_v8 }
 0x1c4   : > { %v4897_v6 = vadd.f32 %v1268_v63, %v883_v43  ;;  %v4899_v42 = vpop.xlane.xlu0 %1401  ;;  %v1270_v47 = vpop.f32.mrb[81].mxu0  ;;  %v1965_v43 = vmul.f32 %v4893_v20, %v4893_v20  ;;  %v1761_v53 = vsel %vm1387_vm0, %v1619_v36, 0.0 }
 0x1c5   : > { %1506 = vadd.xlane.f32.xlu1 %v1505_v29  ;;  %v1964_v29 = vmul.f32 %v4895_v34, %v4895_v34  ;;  %v1966_v31 = vmul.f32 %v4911_v11, %v4911_v11 }
 0x1c6   : > { %6353 = vst [vmem:[#allocation88_spill] sm:$0xff] %v4897_v6  ;;  %v4903_v25 = vpop.xlane.xlu1 %1654  ;;  %v1508_v13 = vsel %vm1387_vm0, %v4897_v6, 0.0  ;;  %v888_v59 = vpop.f32.mrb[82].mxu1  ;;  %v1620_v12 = vmul.f32 %v4897_v6, %v4897_v6  ;;  %v2029_v17 = vsub.f32 %v1901_v58, %v1965_v43 }
 0x1c7   : > { %1509 = vadd.xlane.f32.xlu0 %v1508_v13  ;;  %v1273_v63 = vpop.f32.mrb[82].mxu0  ;;  %v890_v52 = vpop.f32.mrb[83].mxu1  ;;  %v2028_v2 = vsub.f32 %v1900_v46, %v1964_v29 }
 0x1c8   : > { %v4915_v23 = vpop.xlane.xlu0 %1657  ;;  %v4917_v47 = vadd.f32 %v1273_v63, %v888_v59  ;;  %v1275_v9 = vpop.f32.mrb[83].mxu0  ;;  %v1764_v6 = vsel %vm1387_vm0, %v1620_v12, 0.0  ;;  %v1902_v59 = vmul.f32 0.020408163, %v1652_v26  ;;  %v2157_v43 = vadd.f32 1e-05, %v2029_v17 }
 0x1c9   : > { %1762 = vadd.xlane.f32.xlu1 %v1761_v53  ;;  %v2156_v12 = vadd.f32 1e-05, %v2028_v2 }
 0x1ca   : > { %6354 = vst [vmem:[#allocation89_spill] sm:$0xff] %v4917_v47  ;;  %v4921_v8 = vpop.xlane.xlu1 %1404  ;;  %v1511_v13 = vsel %vm1387_vm0, %v4917_v47, 0.0  ;;  %v893_v52 = vpop.f32.mrb[84].mxu1  ;;  %v1621_v53 = vmul.f32 %v4917_v47, %v4917_v47  ;;  %v2030_v5 = vsub.f32 %v1902_v59, %v1966_v31 }
 0x1cb   : > { %1765 = vadd.xlane.f32.xlu0 %v1764_v6  ;;  %v1278_v9 = vpop.f32.mrb[84].mxu0  ;;  %v895_v63 = vpop.f32.mrb[85].mxu1  ;;  %3783 = vrsqrt.f32 %v2156_v12 }
 0x1cc   : > { %v4927_v36 = vpop.xlane.xlu0 %1407  ;;  %v4931_v37 = vadd.f32 %v1278_v9, %v893_v52  ;;  %v1280_v46 = vpop.f32.mrb[85].mxu0  ;;  %v1767_v63 = vsel %vm1387_vm0, %v1621_v53, 0.0  ;;  %3785 = vrsqrt.f32 %v2157_v43  ;;  %v2158_v2 = vadd.f32 1e-05, %v2030_v5 }
 0x1cd   : > { %1512 = vadd.xlane.f32.xlu1 %v1511_v13 }
 0x1ce   : > { %6355 = vst [vmem:[#allocation90_spill] sm:$0xff] %v4931_v37  ;;  %v4933_v29 = vpop.xlane.xlu1 %1660  ;;  %v898_v58 = vpop.f32.mrb[86].mxu1  ;;  %3787 = vrsqrt.f32 %v2158_v2  ;;  %v527_v2 = vld [vmem:[%s4094_s25 + $0x730] sm:$0xff] }
 0x1cf   : > { %v1283_v41 = vpop.f32.mrb[86].mxu0  ;;  %v900_v26 = vpop.f32.mrb[87].mxu1 }
 0x1d0   : > { %v4935_v6 = vpop.xlane.xlu0 %1663  ;;  %v4938_v39 = vadd.f32 %v1283_v41, %v898_v58  ;;  %v1285_v3 = vpop.f32.mrb[87].mxu0  ;;  %v526_v26 = vld [vmem:[%s4094_s25 + $0x728] sm:$0xff] }
 0x1d1   : > { %1768 = vadd.xlane.f32.xlu1 %v1767_v63  ;;  %v528_v63 = vld [vmem:[%s4094_s25 + $0x738] sm:$0xff]  ;;  %966 = vmatprep.mubr.f32.mxu1 %v526_v26 }
 0x1d2   : > { %6356 = vst [vmem:[#allocation91_spill] sm:$0xff] %v4938_v39  ;;  %v4940_v52 = vpop.xlane.xlu1 %1410  ;;  %v903_v13 = vpop.f32.mrb[88].mxu1  ;;  %1351 = vmatprep.mubr.f32.mxu0 %v528_v63  ;;  %v530_v63 = vld [vmem:[%s4094_s25 + $0x748] sm:$0xff] }
 0x1d3   : > { %v1288_v31 = vpop.f32.mrb[88].mxu0  ;;  %v905_v17 = vpop.f32.mrb[89].mxu1  ;;  %1352 = vmatmul.mubr.f32.gmra.mrb[114].mxu0 %v527_v2 }
 0x1d4   : > { %v4942_v59 = vpop.xlane.xlu0 %1413  ;;  %v4944_v9 = vadd.f32 %v1288_v31, %v903_v13  ;;  %v1290_v41 = vpop.f32.mrb[89].mxu0  ;;  %v525_v13 = vld [vmem:[%s4094_s25 + $0x720] sm:$0xff]  ;;  %1356 = vmatprep.mubr.f32.mxu0 %v532_v50  ;;  %v2094_v50 = vld [vmem:[%s4958_s30 + $0x10] sm:$0xff] }
 0x1d5   : > { %967 = vmatmul.mubr.f32.gmra.mrb[114].mxu1 %v525_v13  ;;  %v531_v13 = vld [vmem:[%s4094_s25 + $0x750] sm:$0xff] }
 0x1d6   : > { %6357 = vst [vmem:[#allocation92_spill] sm:$0xff] %v4944_v9  ;;  %v4946_v3 = vpop.xlane.xlu1 %1666  ;;  %v908_v53 = vpop.f32.mrb[90].mxu1  ;;  %971 = vmatprep.mubr.f32.mxu1 %v530_v63 }
 0x1d7   : > { %v1293_v46 = vpop.f32.mrb[90].mxu0  ;;  %v910_v12 = vpop.f32.mrb[91].mxu1  ;;  %1357 = vmatmul.mubr.f32.gmra.mrb[116].mxu0 %v531_v13 }
 0x1d8   : > { %v4948_v58 = vpop.xlane.xlu0 %1669  ;;  %v4950_v43 = vadd.f32 %v1293_v46, %v908_v53  ;;  %v1295_v5 = vpop.f32.mrb[91].mxu0 }
 0x1d9   : > { %v3784_v46 = vpop.eup %3783  ;;  %v2092_v5 = vld [vmem:[%s4958_s30] sm:$0xff]  ;;  %972 = vmatmul.mubr.f32.gmra.mrb[116].mxu1 %v529_v61 }
 0x1da   : > { %6358 = vst [vmem:[#allocation93_spill] sm:$0xff] %v4950_v43  ;;  %v4962_v31 = vpop.xlane.xlu1 %1416  ;;  %v913_v17 = vpop.f32.mrb[92].mxu1 }
 0x1db   : > { %v1298_v41 = vpop.f32.mrb[92].mxu0  ;;  %v915_v53 = vpop.f32.mrb[93].mxu1 }
 0x1dc   : > { %v4964_v12 = vpop.xlane.xlu0 %1419  ;;  %v4967_v47 = vadd.f32 %v1298_v41, %v913_v17  ;;  %v1300_v26 = vpop.f32.mrb[93].mxu0  ;;  %v2284_v53 = vmul.f32 %v3784_v46, %v2092_v5 }
 0x1dd   : > { %v3786_v14 = vpop.eup %3785 }
 0x1de   : > { %6359 = vst [vmem:[#allocation94_spill] sm:$0xff] %v4967_v47  ;;  %v4974_v60 = vpop.xlane.xlu1 %1672  ;;  %v918_v2 = vpop.f32.mrb[94].mxu1  ;;  %v2285_v41 = vmul.f32 %v3786_v14, %v2093_v10 }
 0x1df   : > { %v1303_v0 = vpop.f32.mrb[94].mxu0  ;;  %v920_v21 = vpop.f32.mrb[95].mxu1 }
 0x1e0   : > { %v4976_v17 = vpop.xlane.xlu0 %1675  ;;  %v4978_v26 = vadd.f32 %v1303_v0, %v918_v2  ;;  %v1305_v56 = vpop.f32.mrb[95].mxu0 }
 0x1e1   : > { %v3788_v18 = vpop.eup %3787  ;;  %2414 = vperm.xlu0 %3782, %v2284_v53  }
 0x1e2   : > { %v4981_v63 = vpop.xlane.xlu1 %1422  ;;  %2419 = vperm.xlu1 %3781, %v2285_v41   ;;  %v923_v57 = vpop.f32.mrb[96].mxu1  ;;  %v2286_v46 = vmul.f32 %v3788_v18, %v2094_v50 }
 0x1e3   : > { %v1308_v22 = vpop.f32.mrb[96].mxu0  ;;  %v925_v54 = vpop.f32.mrb[97].mxu1 }
 0x1e4   : > { %v4983_v61 = vpop.xlane.xlu0 %1425  ;;  %v4985_v5 = vadd.f32 %v1308_v22, %v923_v57  ;;  %v1310_v21 = vpop.f32.mrb[97].mxu0 }
 0x1e5   : > { %6360 = vst [vmem:[#allocation95_spill] sm:$0xff] %v4983_v61 }
 0x1e6   : > { %6361 = vst [vmem:[#allocation96_spill] sm:$0xff] %v4985_v5  ;;  %v4987_v13 = vpop.xlane.xlu1 %1678  ;;  %2424 = vperm.xlu1 %3781, %v2286_v46   ;;  %v928_v0 = vpop.f32.mrb[98].mxu1 }
 0x1e7   : > { %v1313_v56 = vpop.f32.mrb[98].mxu0  ;;  %v930_v14 = vpop.f32.mrb[99].mxu1 }
 0x1e8   : > { %v4989_v10 = vpop.xlane.xlu0 %1681  ;;  %v4991_v2 = vadd.f32 %v1313_v56, %v928_v0  ;;  %v1315_v53 = vpop.f32.mrb[99].mxu0 }
 0x1e9   : > { %6362 = vst [vmem:[#allocation97_spill] sm:$0xff] %v4989_v10 }
 0x1ea   : > { %v4993_v41 = vpop.xlane.xlu1 %1428  ;;  %v933_v54 = vpop.f32.mrb[100].mxu1 }
 0x1eb   : > { %v1318_v45 = vpop.f32.mrb[100].mxu0  ;;  %v935_v44 = vpop.f32.mrb[101].mxu1 }
 0x1ec   : > { %v4995_v18 = vpop.xlane.xlu0 %1431  ;;  %v4997_v57 = vadd.f32 %v1318_v45, %v933_v54  ;;  %v1320_v22 = vpop.f32.mrb[101].mxu0  ;;  %v1514_v45 = vsel %vm1387_vm0, %v4931_v37, 0.0  ;;  %v1622_v54 = vmul.f32 %v4931_v37, %v4931_v37  ;;  %v1520_v37 = vsel %vm1387_vm0, %v4944_v9, 0.0 }
 0x1ed   : > { %6363 = vst [vmem:[#allocation98_spill] sm:$0xff] %v4995_v18  ;;  %v5025_v18 = vmul.f32 0.020408163, %v4889_v30 }
 0x1ee   : > { %6364 = vst [vmem:[#allocation99_spill] sm:$0xff] %v4997_v57  ;;  %v4999_v50 = vpop.xlane.xlu1 %1684  ;;  %v938_v10 = vpop.f32.mrb[102].mxu1 }
 0x1ef   : > { %v1323_v27 = vpop.f32.mrb[102].mxu0  ;;  %v1967_v30 = vmul.f32 %v5025_v18, %v5025_v18 }
 0x1f0   : > { %v5001_v46 = vpop.xlane.xlu0 %1687 }
 0x1f1   : > { %6365 = vst [vmem:[#allocation100_spill] sm:$0xff] %v5001_v46 }
 0x1f2   : > { %v5003_v21 = vpop.xlane.xlu1 %1434 }
 0x1f4   : > { %v5005_v14 = vpop.xlane.xlu0 %1437 }
 0x1f5   : > { %6366 = vst [vmem:[#allocation101_spill] sm:$0xff] %v5005_v14  ;;  %v1770_v14 = vsel %vm1387_vm0, %v1622_v54, 0.0  ;;  %v1325_v54 = vpop.f32.mrb[103].mxu0 }
 0x1f6   : > { %v5007_v0 = vpop.xlane.xlu1 %1690  ;;  %v1328_v61 = vpop.f32.mrb[104].mxu0 }
 0x1f8   : > { %v5009_v56 = vpop.xlane.xlu0 %1693 }
 0x1f9   : > { %6367 = vst [vmem:[#allocation102_spill] sm:$0xff] %v5009_v56 }
 0x1fa   : > { %v5011_v53 = vpop.xlane.xlu1 %1440 }
 0x1fb   : > { %6368 = vst [vmem:[#allocation103_spill] sm:$0xff] %v5011_v53 }
 0x1fc   : > { %v5013_v44 = vpop.xlane.xlu0 %1443 }
 0x1fd   : > { %6369 = vst [vmem:[#allocation104_spill] sm:$0xff] %v5013_v44  ;;  %v1903_v44 = vmul.f32 0.020408163, %v4903_v25  ;;  %v5043_v25 = vadd.f32 %v1323_v27, %v938_v10  ;;  %v1623_v10 = vmul.f32 %v4938_v39, %v4938_v39 }
 0x1fe   : > { %v5019_v22 = vpop.xlane.xlu1 %1696 }
 0x1ff   : > { %6370 = vst [vmem:[#allocation105_spill] sm:$0xff] %v5019_v22  ;;  %6375 = vst [vmem:[#allocation110_spill] sm:$0xff] %v5043_v25  ;;  %v2031_v54 = vsub.f32 %v1903_v44, %v1967_v30 }
 0x200   : > { %v5021_v46 = vpop.xlane.xlu0 %1699  ;;  %1515 = vadd.xlane.f32.xlu0 %v1514_v45  ;;  %v1624_v45 = vmul.f32 %v4944_v9, %v4944_v9  ;;  %v1904_v9 = vmul.f32 0.020408163, %v4915_v23  ;;  %v1773_v23 = vsel %vm1387_vm0, %v1623_v10, 0.0  ;;  %v535_v10 = vld [vmem:[%s4094_s25 + $0x770] sm:$0xff] }
 0x201   : > { %6371 = vst [vmem:[#allocation106_spill] sm:$0xff] %v5021_v46  ;;  %v940_v46 = vpop.f32.mrb[103].mxu1 }
 0x202   : > { %v5027_v56 = vpop.xlane.xlu1 %1446  ;;  %v1776_v27 = vsel %vm1387_vm0, %v1624_v45, 0.0 }
 0x203   : > { %6372 = vst [vmem:[#allocation107_spill] sm:$0xff] %v5027_v56  ;;  %v5039_v56 = vmul.f32 0.020408163, %v4899_v42 }
 0x204   : > { %v5030_v53 = vpop.xlane.xlu0 %1449  ;;  %1771 = vadd.xlane.f32.xlu0 %v1770_v14  ;;  %v943_v14 = vpop.f32.mrb[104].mxu1 }
 0x205   : > { %6373 = vst [vmem:[#allocation108_spill] sm:$0xff] %v5030_v53  ;;  %v1517_v53 = vsel %vm1387_vm0, %v4938_v39, 0.0  ;;  %v945_v55 = vpop.f32.mrb[105].mxu1  ;;  %v1968_v46 = vmul.f32 %v5039_v56, %v5039_v56  ;;  %v5052_v42 = vadd.f32 %v1328_v61, %v943_v14  ;;  %v1626_v61 = vmul.f32 %v4967_v47, %v4967_v47  ;;  %v534_v14 = vld [vmem:[%s4094_s25 + $0x768] sm:$0xff] }
 0x206   : > { %v5041_v22 = vpop.xlane.xlu1 %1702  ;;  %v2159_v55 = vadd.f32 1e-05, %v2031_v54  ;;  %976 = vmatprep.mubr.f32.mxu1 %v534_v14  ;;  %v540_v14 = vld [vmem:[%s4094_s25 + $0x798] sm:$0xff] }
 0x207   : > { %6374 = vst [vmem:[#allocation109_spill] sm:$0xff] %v5041_v22  ;;  %6377 = vst [vmem:[#allocation112_spill] sm:$0xff] %v5052_v42  ;;  %v1330_v22 = vpop.f32.mrb[105].mxu0  ;;  %v2032_v44 = vsub.f32 %v1904_v9, %v1968_v46  ;;  %v1782_v9 = vsel %vm1387_vm0, %v1626_v61, 0.0  ;;  %v536_v46 = vld [vmem:[%s4094_s25 + $0x778] sm:$0xff]  ;;  %v538_v61 = vld [vmem:[%s4094_s25 + $0x788] sm:$0xff] }
 0x208   : > { %v5050_v38 = vpop.xlane.xlu0 %1705  ;;  %1521 = vadd.xlane.f32.xlu0 %v1520_v37  ;;  %v1526_v37 = vsel %vm1387_vm0, %v4967_v47, 0.0  ;;  %3789 = vrsqrt.f32 %v2159_v55  ;;  %1361 = vmatprep.mubr.f32.mxu0 %v536_v46 }
 0x209   : > { %6376 = vst [vmem:[#allocation111_spill] sm:$0xff] %v5050_v38  ;;  %1362 = vmatmul.mubr.f32.gmra.mrb[118].mxu0 %v535_v10 }
 0x20a   : > { %v5057_v25 = vpop.xlane.xlu1 %1452  ;;  %1518 = vadd.xlane.f32.xlu1 %v1517_v53  ;;  %v2160_v53 = vadd.f32 1e-05, %v2032_v44  ;;  %v5080_v44 = vmul.f32 0.020408163, %v4962_v31  ;;  %1366 = vmatprep.mubr.f32.mxu0 %v540_v14 }
 0x20c   : > { %v5059_v30 = vpop.xlane.xlu0 %1455  ;;  %1777 = vadd.xlane.f32.xlu0 %v1776_v27  ;;  %v533_v27 = vld [vmem:[%s4094_s25 + $0x760] sm:$0xff]  ;;  %3791 = vrsqrt.f32 %v2160_v53  ;;  %v1973_v10 = vmul.f32 %v5080_v44, %v5080_v44 }
 0x20d   : > { %6378 = vst [vmem:[#allocation113_spill] sm:$0xff] %v5059_v30  ;;  %977 = vmatmul.mubr.f32.gmra.mrb[118].mxu1 %v533_v27  ;;  %v537_v53 = vld [vmem:[%s4094_s25 + $0x780] sm:$0xff]  ;;  %v539_v27 = vld [vmem:[%s4094_s25 + $0x790] sm:$0xff] }
 0x20e   : > { %v5066_v22 = vpop.xlane.xlu1 %1708  ;;  %1774 = vadd.xlane.f32.xlu1 %v1773_v23  ;;  %v1532_v23 = vsel %vm1387_vm0, %v4985_v5, 0.0  ;;  %981 = vmatprep.mubr.f32.mxu1 %v538_v61  ;;  %v2095_v61 = vld [vmem:[%s4958_s30 + $0x18] sm:$0xff] }
 0x20f   : > { %1367 = vmatmul.mubr.f32.gmra.mrb[120].mxu0 %v539_v27  ;;  %v2096_v27 = vld [vmem:[%s4958_s30 + $0x20] sm:$0xff] }
 0x210   : > { %v5068_v45 = vpop.xlane.xlu0 %1711  ;;  %1527 = vadd.xlane.f32.xlu0 %v1526_v37  ;;  %v1628_v37 = vmul.f32 %v4985_v5, %v4985_v5 }
 0x211   : > { %6379 = vst [vmem:[#allocation114_spill] sm:$0xff] %v5068_v45  ;;  %982 = vmatmul.mubr.f32.gmra.mrb[120].mxu1 %v537_v53 }
 0x212   : > { %v5073_v54 = vpop.xlane.xlu1 %1458  ;;  %v1788_v5 = vsel %vm1387_vm0, %v1628_v37, 0.0  ;;  %v3790_v47 = vpop.eup %3789 }
 0x214   : > { %v5077_v55 = vpop.xlane.xlu0 %1461  ;;  %1783 = vadd.xlane.f32.xlu0 %v1782_v9  ;;  %v1909_v9 = vmul.f32 0.020408163, %v4974_v60  ;;  %v2287_v60 = vmul.f32 %v3790_v47, %v2095_v61 }
 0x215   : > { %6380 = vst [vmem:[#allocation115_spill] sm:$0xff] %v5077_v55 }
 0x216   : > { %v5088_v46 = vpop.xlane.xlu1 %1714  ;;  %v2037_v14 = vsub.f32 %v1909_v9, %v1973_v10  ;;  %v3792_v45 = vpop.eup %3791 }
 0x217   : > { %v2288_v30 = vmul.f32 %v3792_v45, %v2096_v27 }
 0x218   : > { %v5093_v31 = vpop.xlane.xlu0 %1717  ;;  %1533 = vadd.xlane.f32.xlu0 %v1532_v23  ;;  %v2165_v23 = vadd.f32 1e-05, %v2037_v14  ;;  %v2101_v14 = vld [vmem:[%s4958_s30 + $0x48] sm:$0xff] }
 0x219   : > { %6381 = vst [vmem:[#allocation116_spill] sm:$0xff] %v5093_v31 }
 0x21a   : > { %v5098_v39 = vpop.xlane.xlu1 %1464  ;;  %3793 = vrsqrt.f32 %v2165_v23 }
 0x21b   : > { %6382 = vst [vmem:[#allocation117_spill] sm:$0xff] %v5098_v39 }
 0x21c   : > { %v5101_v55 = vpop.xlane.xlu0 %1467  ;;  %1789 = vadd.xlane.f32.xlu0 %v1788_v5 }
 0x21d   : > { %6383 = vst [vmem:[#allocation118_spill] sm:$0xff] %v5101_v55 }
 0x21e   : > { %v5103_v53 = vpop.xlane.xlu1 %1720 }
 0x21f   : > { %6384 = vst [vmem:[#allocation119_spill] sm:$0xff] %v5103_v53  ;;  %2429 = vperm.xlu1 %3781, %v2287_v60   ;;  %v547_v53 = vld [vmem:[%s4094_s25 + $0x7d0] sm:$0xff] }
 0x220   : > { %v5106_v31 = vpop.xlane.xlu0 %1723 }
 0x221   : > { %6385 = vst [vmem:[#allocation120_spill] sm:$0xff] %v5106_v31 }
 0x222   : > { %v5108_v37 = vpop.xlane.xlu1 %1470 }
 0x223   : > { %6386 = vst [vmem:[#allocation121_spill] sm:$0xff] %v5108_v37  ;;  %2434 = vperm.xlu1 %3781, %v2288_v30  }
 0x224   : > { %v5110_v38 = vpop.xlane.xlu0 %1473  ;;  %v3794_v61 = vpop.eup %3793 }
 0x225   : > { %6387 = vst [vmem:[#allocation122_spill] sm:$0xff] %v5110_v38  ;;  %v2293_v45 = vmul.f32 %v3794_v61, %v2101_v14  ;;  %v5142_v14 = vmul.f32 0.020408163, %v4921_v8  ;;  %v5154_v8 = vmul.f32 0.020408163, %v4927_v36  ;;  %v542_v36 = vld [vmem:[%s4094_s25 + $0x7a8] sm:$0xff] }
 0x226   : > { %v5112_v9 = vpop.xlane.xlu1 %1726  ;;  %986 = vmatprep.mubr.f32.mxu1 %v542_v36 }
 0x227   : > { %6388 = vst [vmem:[#allocation123_spill] sm:$0xff] %v5112_v9 }
 0x228   : > { %v5114_v5 = vpop.xlane.xlu0 %1729 }
 0x229   : > { %6389 = vst [vmem:[#allocation124_spill] sm:$0xff] %v5114_v5 }
 0x22a   : > { %v5116_v47 = vpop.xlane.xlu1 %1476 }
 0x22b   : > { %6390 = vst [vmem:[#allocation125_spill] sm:$0xff] %v5116_v47 }
 0x22c   : > { %v5118_v10 = vpop.xlane.xlu0 %1479 }
 0x22d   : > { %6391 = vst [vmem:[#allocation126_spill] sm:$0xff] %v5118_v10 }
 0x22e   : > { %v5121_v60 = vpop.xlane.xlu1 %1732 }
 0x22f   : > { %6392 = vst [vmem:[#allocation127_spill] sm:$0xff] %v5121_v60 }
 0x230   : > { %v5123_v31 = vpop.xlane.xlu0 %1735 }
 0x231   : > { %6393 = vst [vmem:[#allocation128_spill] sm:$0xff] %v5123_v31 }
 0x232   : > { %v5125_v27 = vpop.xlane.xlu1 %1482  ;;  %2459 = vperm.xlu0 %3782, %v2293_v45  }
 0x233   : > { %6394 = vst [vmem:[#allocation129_spill] sm:$0xff] %v5125_v27  ;;  %v546_v27 = vld [vmem:[%s4094_s25 + $0x7c8] sm:$0xff] }
 0x234   : > { %v5127_v30 = vpop.xlane.xlu0 %1485 }
 0x235   : > { %6395 = vst [vmem:[#allocation130_spill] sm:$0xff] %v5127_v30 }
 0x236   : > { %v5129_v23 = vpop.xlane.xlu1 %1738 }
 0x237   : > { %6396 = vst [vmem:[#allocation131_spill] sm:$0xff] %v5129_v23  ;;  %v543_v23 = vld [vmem:[%s4094_s25 + $0x7b0] sm:$0xff] }
 0x238   : > { %v5131_v38 = vpop.xlane.xlu0 %1741  ;;  %v948_v55 = vpop.f32.mrb[106].mxu1 }
 0x239   : > { %6397 = vst [vmem:[#allocation132_spill] sm:$0xff] %v5131_v38  ;;  %v1333_v47 = vpop.f32.mrb[106].mxu0  ;;  %v950_v9 = vpop.f32.mrb[107].mxu1  ;;  %v1905_v38 = vmul.f32 0.020408163, %v4933_v29  ;;  %v1523_v29 = vsel %vm1387_vm0, %v4950_v43, 0.0 }
 0x23a   : > { %v5133_v5 = vpop.xlane.xlu1 %1488  ;;  %v1335_v60 = vpop.f32.mrb[107].mxu0  ;;  %v5139_v61 = vadd.f32 %v1333_v47, %v948_v55  ;;  %v1969_v55 = vmul.f32 %v5142_v14, %v5142_v14 }
 0x23b   : > { %6398 = vst [vmem:[#allocation133_spill] sm:$0xff] %v5133_v5 }
 0x23c   : > { %v5135_v10 = vpop.xlane.xlu0 %1491  ;;  %6401 = vst [vmem:[#allocation136_spill] sm:$0xff] %v5139_v61 }
 0x23d   : > { %6399 = vst [vmem:[#allocation134_spill] sm:$0xff] %v5135_v10  ;;  %v953_v45 = vpop.f32.mrb[108].mxu1  ;;  %v1338_v31 = vpop.f32.mrb[108].mxu0 }
 0x23e   : > { %v5137_v37 = vpop.xlane.xlu1 %1744  ;;  %v5147_v5 = vadd.f32 %v1338_v31, %v953_v45  ;;  %v955_v9 = vpop.f32.mrb[109].mxu1  ;;  %v1970_v31 = vmul.f32 %v5154_v8, %v5154_v8  ;;  %v2033_v45 = vsub.f32 %v1905_v38, %v1969_v55  ;;  %v548_v38 = vld [vmem:[%s4094_s25 + $0x7d8] sm:$0xff] }
 0x23f   : > { %6400 = vst [vmem:[#allocation135_spill] sm:$0xff] %v5137_v37  ;;  %v1340_v60 = vpop.f32.mrb[109].mxu0  ;;  %v1906_v9 = vmul.f32 0.020408163, %v4935_v6 }
 0x240   : > { %v5144_v30 = vpop.xlane.xlu0 %1747  ;;  %6403 = vst [vmem:[#allocation138_spill] sm:$0xff] %v5147_v5  ;;  %v2161_v55 = vadd.f32 1e-05, %v2033_v45  ;;  %v5183_v45 = vmul.f32 0.020408163, %v4981_v63 }
 0x241   : > { %6402 = vst [vmem:[#allocation137_spill] sm:$0xff] %v5144_v30  ;;  %v1625_v30 = vmul.f32 %v4950_v43, %v4950_v43  ;;  %v2034_v6 = vsub.f32 %v1906_v9, %v1970_v31  ;;  %v545_v43 = vld [vmem:[%s4094_s25 + $0x7c0] sm:$0xff] }
 0x242   : > { %v5149_v10 = vpop.xlane.xlu1 %1494  ;;  %3795 = vrsqrt.f32 %v2161_v55  ;;  %v2097_v55 = vld [vmem:[%s4958_s30 + $0x28] sm:$0xff] }
 0x243   : > { %6404 = vst [vmem:[#allocation139_spill] sm:$0xff] %v5149_v10  ;;  %v544_v10 = vld [vmem:[%s4094_s25 + $0x7b8] sm:$0xff] }
 0x244   : > { %v5156_v47 = vpop.xlane.xlu0 %1497  ;;  %1371 = vmatprep.mubr.f32.mxu0 %v544_v10  ;;  %v2162_v10 = vadd.f32 1e-05, %v2034_v6 }
 0x245   : > { %6405 = vst [vmem:[#allocation140_spill] sm:$0xff] %v5156_v47  ;;  %v541_v47 = vld [vmem:[%s4094_s25 + $0x7a0] sm:$0xff]  ;;  %1372 = vmatmul.mubr.f32.gmra.mrb[122].mxu0 %v543_v23 }
 0x246   : > { %v5163_v60 = vpop.xlane.xlu1 %1750  ;;  %987 = vmatmul.mubr.f32.gmra.mrb[122].mxu1 %v541_v47  ;;  %1376 = vmatprep.mubr.f32.mxu0 %v548_v38  ;;  %v1911_v47 = vmul.f32 0.020408163, %v4987_v13  ;;  %3797 = vrsqrt.f32 %v2162_v10 }
 0x247   : > { %6406 = vst [vmem:[#allocation141_spill] sm:$0xff] %v5163_v60  ;;  %1524 = vadd.xlane.f32.xlu1 %v1523_v29  ;;  %v1779_v29 = vsel %vm1387_vm0, %v1625_v30, 0.0  ;;  %991 = vmatprep.mubr.f32.mxu1 %v546_v27  ;;  %v1538_v30 = vsel %vm1387_vm0, %v4997_v57, 0.0  ;;  %v1630_v27 = vmul.f32 %v4997_v57, %v4997_v57 }
 0x248   : > { %v5170_v37 = vpop.xlane.xlu0 %1753 }
 0x249   : > { %6407 = vst [vmem:[#allocation142_spill] sm:$0xff] %v5170_v37  ;;  %1377 = vmatmul.mubr.f32.gmra.mrb[124].mxu0 %v547_v53  ;;  %v1794_v53 = vsel %vm1387_vm0, %v1630_v27, 0.0  ;;  %v2098_v27 = vld [vmem:[%s4958_s30 + $0x30] sm:$0xff] }
 0x24a   : > { %v5175_v60 = vpop.xlane.xlu1 %1500  ;;  %992 = vmatmul.mubr.f32.gmra.mrb[124].mxu1 %v545_v43  ;;  %v1975_v43 = vmul.f32 %v5183_v45, %v5183_v45 }
 0x24b   : > { %1780 = vadd.xlane.f32.xlu1 %v1779_v29 }
 0x24c   : > { %v5180_v39 = vpop.xlane.xlu0 %1503  ;;  %v2039_v9 = vsub.f32 %v1911_v47, %v1975_v43  ;;  %v3796_v13 = vpop.eup %3795  ;;  %v2860_v43 = vld [vmem:[%s5210_s8] sm:$0xff] }
 0x24d   : > { %6408 = vst [vmem:[#allocation143_spill] sm:$0xff] %v5180_v39  ;;  %v2289_v10 = vmul.f32 %v3796_v13, %v2097_v55  ;;  %v2348_v13 = vsub.f32 %v4494_v62, %v4895_v34  ;;  %v2861_v55 = vld [vmem:[%s5210_s8 + $0x8] sm:$0xff]  ;;  %v2350_v34 = vsub.f32 %v4511_v15, %v4911_v11 }
 0x24e   : > { %v5185_v23 = vpop.xlane.xlu1 %1756  ;;  %v2167_v6 = vadd.f32 1e-05, %v2039_v9 }
 0x250   : > { %v5192_v31 = vpop.xlane.xlu0 %1759  ;;  %3799 = vrsqrt.f32 %v2167_v6  ;;  %v2349_v6 = vsub.f32 %v4502_v7, %v4893_v20 }
 0x251   : > { %6409 = vst [vmem:[#allocation144_spill] sm:$0xff] %v5192_v31  ;;  %1539 = vadd.xlane.f32.xlu0 %v1538_v30  ;;  %v3798_v30 = vpop.eup %3797 }
 0x252   : > { %v5196_v63 = vpop.xlane.xlu1 %1506  ;;  %v2290_v9 = vmul.f32 %v3798_v30, %v2098_v27 }
 0x254   : > { %v5199_v36 = vpop.xlane.xlu0 %1509 }
 0x255   : > { %1795 = vadd.xlane.f32.xlu0 %v1794_v53  ;;  %6410 = vst [vmem:[#allocation145_spill] sm:$0xff] %v5199_v36  ;;  %v3244_v36 = vadd.f32 %v4446_v24, %v2860_v43 }
 0x256   : > { %v5201_v38 = vpop.xlane.xlu1 %1762 }
 0x258   : > { %v5213_v47 = vpop.xlane.xlu0 %1765 }
 0x259   : > { %6411 = vst [vmem:[#allocation146_spill] sm:$0xff] %v5213_v47 }
 0x25a   : > { %v5204_v29 = vpop.xlane.xlu1 %1512  ;;  %v3800_v7 = vpop.eup %3799 }
 0x25c   : > { %2439 = vperm.xlu1 %3781, %v2289_v10   ;;  %v3245_v10 = vadd.f32 %v4440_v19, %v2861_v55 }
 0x25e   : > { %v5216_v53 = vpop.xlane.xlu1 %1768 }
 0x25f   : > { %6412 = vst [vmem:[#allocation147_spill] sm:$0xff] %v5216_v53  ;;  %v2862_v53 = vld [vmem:[%s5210_s8 + $0x10] sm:$0xff] }
 0x260   : > { %v2415_v57 = vpop.permute.xlu0 %2414  ;;  %2444 = vperm.xlu1 %3781, %v2290_v9   ;;  %v3246_v19 = vadd.f32 %v4457_v33, %v2862_v53 }
 0x261   : > { %v2732_v31 = vmul.f32 %v2415_v57, %v2348_v13  ;;  %v2103_v57 = vld [vmem:[%s4958_s30 + $0x58] sm:$0xff] }
 0x262   : > { %v2420_v47 = vpop.permute.xlu1 %2419  ;;  %v2295_v27 = vmul.f32 %v3800_v7, %v2103_v57  ;;  %v1908_v57 = vmul.f32 0.020408163, %v4948_v58  ;;  %v1913_v58 = vmul.f32 0.020408163, %v4999_v50  ;;  %v2099_v50 = vld [vmem:[%s4958_s30 + $0x38] sm:$0xff] }
 0x263   : > { %v3308_v39 = vadd.f32 %v3244_v36, %v2732_v31  ;;  %v2733_v37 = vmul.f32 %v2420_v47, %v2349_v6  ;;  %v5247_v6 = vmul.f32 0.020408163, %v4940_v52  ;;  %v1627_v52 = vmul.f32 %v4978_v26, %v4978_v26 }
 0x265   : > { %v3372_v62 = vmax.f32 %v3308_v39, 0.0  ;;  %v3309_v24 = vadd.f32 %v3245_v10, %v2733_v37  ;;  %v1907_v10 = vmul.f32 0.020408163, %v4946_v3 }
 0x266   : > { %v2425_v20 = vpop.permute.xlu1 %2424 }
 0x267   : > { %3436 = vst.msk [vmem:[%s5230_s11] sm:$0xff] %vm1387_vm0, %v3372_v62  ;;  %v3373_v31 = vmax.f32 %v3309_v24, 0.0  ;;  %v2734_v36 = vmul.f32 %v2425_v20, %v2350_v34  ;;  %v1971_v62 = vmul.f32 %v5247_v6, %v5247_v6  ;;  %v5253_v24 = vmul.f32 0.020408163, %v4942_v59 }
 0x268   : > { %v1529_v34 = vsel %vm1387_vm0, %v4978_v26, 0.0  ;;  %v1785_v59 = vsel %vm1387_vm0, %v1627_v52, 0.0 }
 0x269   : > { %3437 = vst.msk [vmem:[%s5230_s11 + $0x8] sm:$0xff] %vm1387_vm0, %v3373_v31  ;;  %v3310_v30 = vadd.f32 %v3246_v19, %v2734_v36  ;;  %v1972_v7 = vmul.f32 %v5253_v24, %v5253_v24  ;;  %v2035_v20 = vsub.f32 %v1907_v10, %v1971_v62  ;;  %v5263_v31 = vmul.f32 0.020408163, %v4993_v41 }
 0x26a   : > { %v1544_v36 = vsel %vm1387_vm0, %v5052_v42, 0.0 }
 0x26b   : > { %v3374_v47 = vmax.f32 %v3310_v30, 0.0  ;;  %2469 = vperm.xlu0 %3782, %v2295_v27   ;;  %v2163_v3 = vadd.f32 1e-05, %v2035_v20  ;;  %v2036_v19 = vsub.f32 %v1908_v57, %v1972_v7  ;;  %v1632_v30 = vmul.f32 %v5052_v42, %v5052_v42  ;;  %v2100_v7 = vld [vmem:[%s4958_s30 + $0x40] sm:$0xff] }
 0x26d   : > { %3438 = vst.msk [vmem:[%s5230_s11 + $0x10] sm:$0xff] %vm1387_vm0, %v3374_v47  ;;  %3801 = vrsqrt.f32 %v2163_v3  ;;  %v2164_v27 = vadd.f32 1e-05, %v2036_v19  ;;  %v1977_v47 = vmul.f32 %v5263_v31, %v5263_v31  ;;  %v1800_v41 = vsel %vm1387_vm0, %v1632_v30, 0.0  ;;  %v6439_v19 = vld [vmem:[#allocation20_spill] sm:$0xff] }
 0x26f   : > { %3803 = vrsqrt.f32 %v2164_v27 }
 0x271   : > { %v958_v39 = vpop.f32.mrb[110].mxu1 }
 0x272   : > { %v1343_v37 = vpop.f32.mrb[110].mxu0  ;;  %v960_v15 = vpop.f32.mrb[111].mxu1 }
 0x273   : > { %v5242_v11 = vadd.f32 %v1343_v37, %v958_v39  ;;  %v1345_v43 = vpop.f32.mrb[111].mxu0  ;;  %v2041_v39 = vsub.f32 %v1913_v58, %v1977_v47  ;;  %v2351_v58 = vsub.f32 %v4526_v32, %v5025_v18 }
 0x275   : > { %6413 = vst [vmem:[#allocation148_spill] sm:$0xff] %v5242_v11  ;;  %v963_v9 = vpop.f32.mrb[112].mxu1  ;;  %v2169_v15 = vadd.f32 1e-05, %v2041_v39 }
 0x276   : > { %v1348_v33 = vpop.f32.mrb[112].mxu0  ;;  %v965_v53 = vpop.f32.mrb[113].mxu1 }
 0x277   : > { %v5244_v13 = vadd.f32 %v1348_v33, %v963_v9  ;;  %v1350_v55 = vpop.f32.mrb[113].mxu0  ;;  %v3802_v9 = vpop.eup %3801  ;;  %3805 = vrsqrt.f32 %v2169_v15 }
 0x278   : > { %v2291_v10 = vmul.f32 %v3802_v9, %v2099_v50  ;;  %v2864_v50 = vld [vmem:[%s5210_s8 + $0x20] sm:$0xff] }
 0x279   : > { %6414 = vst [vmem:[#allocation149_spill] sm:$0xff] %v5244_v13  ;;  %v3804_v62 = vpop.eup %3803 }
 0x27a   : > { %v2292_v3 = vmul.f32 %v3804_v62, %v2100_v7  ;;  %v2352_v62 = vsub.f32 %v4537_v48, %v5039_v56 }
 0x281   : > { %v3806_v27 = vpop.eup %3805 }
 0x284   : > { %1530 = vadd.xlane.f32.xlu1 %v1529_v34 }
 0x288   : > { %1786 = vadd.xlane.f32.xlu1 %v1785_v59  ;;  %v2863_v59 = vld [vmem:[%s5210_s8 + $0x18] sm:$0xff] }
 0x289   : > { %v3247_v39 = vadd.f32 %v4451_v28, %v2863_v59 }
 0x28a   : > { %1545 = vadd.xlane.f32.xlu0 %v1544_v36 }
 0x28d   : > { %v5274_v37 = vpop.xlane.xlu0 %1515 }
 0x28e   : > { %1801 = vadd.xlane.f32.xlu0 %v1800_v41  ;;  %v2105_v41 = vld [vmem:[%s4958_s30 + $0x68] sm:$0xff] }
 0x28f   : > { %v2297_v7 = vmul.f32 %v3806_v27, %v2105_v41 }
 0x291   : > { %v5276_v43 = vpop.xlane.xlu0 %1771 }
 0x295   : > { %v1522_v33 = vpop.xlane.xlu0 %1521 }
 0x296   : > { %v5279_v53 = vmul.f32 0.020408163, %v1522_v33 }
 0x297   : > { %v5281_v55 = vpop.xlane.xlu1 %1518 }
 0x298   : > { %6415 = vst [vmem:[#allocation150_spill] sm:$0xff] %v5279_v53  ;;  %v5285_v34 = vmul.f32 %v5279_v53, %v5279_v53 }
 0x299   : > { %v1778_v20 = vpop.xlane.xlu0 %1777  ;;  %2449 = vperm.xlu1 %3781, %v2291_v10  }
 0x29a   : > { %v5288_v57 = vmul.f32 0.020408163, %v1778_v20  ;;  %v3248_v20 = vadd.f32 %v4466_v40, %v2864_v50 }
 0x29b   : > { %v5290_v52 = vpop.xlane.xlu1 %1774 }
 0x29d   : > { %v1528_v36 = vpop.xlane.xlu0 %1527  ;;  %2454 = vperm.xlu1 %3781, %v2292_v3  }
 0x29e   : > { %v5295_v30 = vmul.f32 0.020408163, %v1528_v36 }
 0x29f   : > { %v2430_v47 = vpop.permute.xlu1 %2429 }
 0x2a0   : > { %6416 = vst [vmem:[#allocation151_spill] sm:$0xff] %v5295_v30  ;;  %v5303_v15 = vmul.f32 %v5295_v30, %v5295_v30  ;;  %v2735_v9 = vmul.f32 %v2430_v47, %v2351_v58  ;;  %v6454_v30 = vld [vmem:[#allocation35_spill] sm:$0xff] }
 0x2a1   : > { %v1784_v33 = vpop.xlane.xlu0 %1783 }
 0x2a2   : > { %6417 = vst [vmem:[#allocation152_spill] sm:$0xff] %v5303_v15  ;;  %v3311_v10 = vadd.f32 %v3247_v39, %v2735_v9  ;;  %v5308_v32 = vmul.f32 0.020408163, %v1784_v33 }
 0x2a3   : > { %v2435_v18 = vpop.permute.xlu1 %2434 }
 0x2a4   : > { %6418 = vst [vmem:[#allocation153_spill] sm:$0xff] %v5308_v32  ;;  %v3375_v28 = vmax.f32 %v3311_v10, 0.0  ;;  %v2736_v3 = vmul.f32 %v2435_v18, %v2352_v62  ;;  %2479 = vperm.xlu0 %3782, %v2297_v7   ;;  %v2869_v62 = vld [vmem:[%s5210_s8 + $0x48] sm:$0xff]  ;;  %v2357_v7 = vsub.f32 %v4587_v1, %v5080_v44  ;;  %v1910_v44 = vmul.f32 0.020408163, %v4976_v17 }
 0x2a5   : > { %v1534_v36 = vpop.xlane.xlu0 %1533  ;;  %v1915_v17 = vmul.f32 0.020408163, %v5007_v0  ;;  %v2102_v0 = vld [vmem:[%s4958_s30 + $0x50] sm:$0xff] }
 0x2a6   : > { %3439 = vst.msk [vmem:[%s5230_s11 + $0x18] sm:$0xff] %vm1387_vm0, %v3375_v28  ;;  %v3312_v58 = vadd.f32 %v3248_v20, %v2736_v3  ;;  %v5315_v47 = vmul.f32 0.020408163, %v1534_v36  ;;  %v1353_v9 = vpop.f32.mrb[114].mxu0  ;;  %v3253_v28 = vadd.f32 %v4480_v51, %v2869_v62  ;;  %v1535_v51 = vsel %vm1387_vm0, %v4991_v2, 0.0 }
 0x2a7   : > { %v1355_v10 = vpop.f32.mrb[115].mxu0 }
 0x2a8   : > { %6419 = vst [vmem:[#allocation154_spill] sm:$0xff] %v5315_v47  ;;  %v3376_v48 = vmax.f32 %v3312_v58, 0.0  ;;  %v5319_v56 = vmul.f32 %v5315_v47, %v5315_v47  ;;  %v968_v39 = vpop.f32.mrb[114].mxu1 }
 0x2a9   : > { %v1790_v27 = vpop.xlane.xlu0 %1789  ;;  %v5327_v50 = vadd.f32 %v1353_v9, %v968_v39  ;;  %v970_v33 = vpop.f32.mrb[115].mxu1  ;;  %v5338_v39 = vmul.f32 0.020408163, %v4964_v12  ;;  %v1634_v12 = vmul.f32 %v5147_v5, %v5147_v5 }
 0x2aa   : > { %6420 = vst [vmem:[#allocation155_spill] sm:$0xff] %v5319_v56  ;;  %3440 = vst.msk [vmem:[%s5230_s11 + $0x20] sm:$0xff] %vm1387_vm0, %v3376_v48  ;;  %v5323_v40 = vmul.f32 0.020408163, %v1790_v27  ;;  %v1358_v36 = vpop.f32.mrb[116].mxu0 }
 0x2ab   : > { %6422 = vst [vmem:[#allocation157_spill] sm:$0xff] %v5327_v50  ;;  %v1360_v27 = vpop.f32.mrb[117].mxu0  ;;  %v1974_v1 = vmul.f32 %v5338_v39, %v5338_v39  ;;  %v5346_v33 = vmul.f32 0.020408163, %v5003_v21 }
 0x2ac   : > { %6421 = vst [vmem:[#allocation156_spill] sm:$0xff] %v5323_v40  ;;  %v973_v20 = vpop.f32.mrb[116].mxu1 }
 0x2ad   : > { %v975_v58 = vpop.f32.mrb[117].mxu1  ;;  %v5333_v48 = vadd.f32 %v1358_v36, %v973_v20  ;;  %v2038_v9 = vsub.f32 %v1910_v44, %v1974_v1  ;;  %v1979_v62 = vmul.f32 %v5346_v33, %v5346_v33  ;;  %v2107_v1 = vld [vmem:[%s4958_s30 + $0x78] sm:$0xff]  ;;  %v2865_v44 = vld [vmem:[%s5210_s8 + $0x28] sm:$0xff]  ;;  %v2363_v53 = vsub.f32 %v6454_v30, %v5346_v33 }
 0x2ae   : > { %v1553_v30 = vsel %vm1387_vm0, %v5242_v11, 0.0 }
 0x2af   : > { %6423 = vst [vmem:[#allocation158_spill] sm:$0xff] %v5333_v48  ;;  %v2166_v10 = vadd.f32 1e-05, %v2038_v9 }
 0x2b1   : > { %v2460_v18 = vpop.permute.xlu0 %2459  ;;  %3807 = vrsqrt.f32 %v2166_v10 }
 0x2b2   : > { %v2741_v3 = vmul.f32 %v2460_v18, %v2357_v7  ;;  %v1806_v7 = vsel %vm1387_vm0, %v1634_v12, 0.0  ;;  %v2043_v18 = vsub.f32 %v1915_v17, %v1979_v62  ;;  %v2866_v17 = vld [vmem:[%s5210_s8 + $0x30] sm:$0xff] }
 0x2b4   : > { %v3317_v41 = vadd.f32 %v3253_v28, %v2741_v3  ;;  %v2171_v20 = vadd.f32 1e-05, %v2043_v18 }
 0x2b6   : > { %v3381_v59 = vmax.f32 %v3317_v41, 0.0  ;;  %v1550_v41 = vsel %vm1387_vm0, %v5147_v5, 0.0  ;;  %3809 = vrsqrt.f32 %v2171_v20  ;;  %v3250_v20 = vadd.f32 %v4477_v49, %v2866_v17 }
 0x2b8   : > { %3445 = vst.msk [vmem:[%s5230_s11 + $0x48] sm:$0xff] %vm1387_vm0, %v3381_v59  ;;  %v1629_v59 = vmul.f32 %v4991_v2, %v4991_v2 }
 0x2ba   : > { %v1791_v21 = vsel %vm1387_vm0, %v1629_v59, 0.0  ;;  %v3249_v59 = vadd.f32 %v4460_v35, %v2865_v44 }
 0x2bb   : > { %v3808_v28 = vpop.eup %3807 }
 0x2bc   : > { %v2294_v36 = vmul.f32 %v3808_v28, %v2102_v0 }
 0x2c0   : > { %v3810_v58 = vpop.eup %3809 }
 0x2c1   : > { %1536 = vadd.xlane.f32.xlu1 %v1535_v51  ;;  %v2353_v51 = vsub.f32 %v4549_v4, %v5142_v14  ;;  %v2299_v9 = vmul.f32 %v3810_v58, %v2107_v1 }
 0x2c3   : > { %1551 = vadd.xlane.f32.xlu0 %v1550_v41 }
 0x2c5   : > { %1792 = vadd.xlane.f32.xlu1 %v1791_v21  ;;  %v2354_v21 = vsub.f32 %v4557_v16, %v5154_v8 }
 0x2c7   : > { %1807 = vadd.xlane.f32.xlu0 %v1806_v7 }
 0x2d4   : > { %v5360_v3 = vpop.xlane.xlu1 %1524 }
 0x2d6   : > { %2464 = vperm.xlu1 %3781, %v2294_v36  }
 0x2d8   : > { %v5362_v27 = vpop.xlane.xlu1 %1780 }
 0x2dc   : > { %v2440_v41 = vpop.permute.xlu1 %2439  ;;  %v1363_v1 = vpop.f32.mrb[118].mxu0 }
 0x2dd   : > { %v2737_v12 = vmul.f32 %v2440_v41, %v2353_v51  ;;  %2489 = vperm.xlu0 %3782, %v2299_v9   ;;  %v1365_v51 = vpop.f32.mrb[119].mxu0  ;;  %v2871_v9 = vld [vmem:[%s5210_s8 + $0x58] sm:$0xff]  ;;  %v6427_v41 = vld [vmem:[#allocation26_spill] sm:$0xff] }
 0x2de   : > { %v1540_v10 = vpop.xlane.xlu0 %1539  ;;  %v551_v51 = vld [vmem:[%s4094_s25 + $0x7f0] sm:$0xff] }
 0x2df   : > { %v3313_v62 = vadd.f32 %v3249_v59, %v2737_v12  ;;  %v5372_v7 = vmul.f32 0.020408163, %v1540_v10  ;;  %v2359_v59 = vsub.f32 %v6427_v41, %v5183_v45  ;;  %v6428_v10 = vld [vmem:[#allocation4_spill] sm:$0xff]  ;;  %v552_v45 = vld [vmem:[%s4094_s25 + $0x7f8] sm:$0xff] }
 0x2e0   : > { %v2445_v18 = vpop.permute.xlu1 %2444  ;;  %v978_v8 = vpop.f32.mrb[118].mxu1  ;;  %1381 = vmatprep.mubr.f32.mxu0 %v552_v45  ;;  %v6431_v41 = vld [vmem:[#allocation97_spill] sm:$0xff] }
 0x2e1   : > { %6424 = vst [vmem:[#allocation159_spill] sm:$0xff] %v5372_v7  ;;  %v3377_v4 = vmax.f32 %v3313_v62, 0.0  ;;  %v2738_v14 = vmul.f32 %v2445_v18, %v2354_v21  ;;  %v5377_v35 = vmul.f32 %v5372_v7, %v5372_v7  ;;  %v5387_v49 = vadd.f32 %v1363_v1, %v978_v8  ;;  %v980_v44 = vpop.f32.mrb[119].mxu1  ;;  %v550_v1 = vld [vmem:[%s4094_s25 + $0x7e8] sm:$0xff]  ;;  %1382 = vmatmul.mubr.f32.gmra.mrb[126].mxu0 %v551_v51 }
 0x2e2   : > { %v1796_v28 = vpop.xlane.xlu0 %1795  ;;  %v3255_v62 = vadd.f32 %v6428_v10, %v2871_v9  ;;  %v1368_v18 = vpop.f32.mrb[120].mxu0  ;;  %v549_v44 = vld [vmem:[%s4094_s25 + $0x7e0] sm:$0xff]  ;;  %996 = vmatprep.mubr.f32.mxu1 %v550_v1 }
 0x2e3   : > { %6425 = vst [vmem:[#allocation160_spill] sm:$0xff] %v5377_v35  ;;  %3441 = vst.msk [vmem:[%s5230_s11 + $0x28] sm:$0xff] %vm1387_vm0, %v3377_v4  ;;  %v3314_v0 = vadd.f32 %v3250_v20, %v2738_v14  ;;  %v5381_v36 = vmul.f32 0.020408163, %v1796_v28  ;;  %v1370_v14 = vpop.f32.mrb[121].mxu0  ;;  %997 = vmatmul.mubr.f32.gmra.mrb[126].mxu1 %v549_v44  ;;  %v2119_v35 = vld [vmem:[%s4958_s30 + $0xd8] sm:$0xff] }
 0x2e4   : > { %v983_v17 = vpop.f32.mrb[120].mxu1  ;;  %v1636_v14 = vmul.f32 %v5244_v13, %v5244_v13 }
 0x2e5   : > { %6426 = vst [vmem:[#allocation161_spill] sm:$0xff] %v5381_v36  ;;  %v3378_v58 = vmax.f32 %v3314_v0, 0.0  ;;  %v985_v20 = vpop.f32.mrb[121].mxu1  ;;  %v5393_v4 = vadd.f32 %v1368_v18, %v983_v17  ;;  %v1556_v18 = vsel %vm1387_vm0, %v5244_v13, 0.0 }
 0x2e6   : > { %v1812_v44 = vsel %vm1387_vm0, %v1636_v14, 0.0 }
 0x2e7   : > { %3442 = vst.msk [vmem:[%s5230_s11 + $0x30] sm:$0xff] %vm1387_vm0, %v3378_v58  ;;  %6429 = vst [vmem:[#allocation26_spill] sm:$0xff] %v5393_v4  ;;  %v6430_v58 = vld [vmem:[#allocation95_spill] sm:$0xff] }
 0x2e8   : > { %v5398_v8 = vmul.f32 0.020408163, %v6430_v58 }
 0x2ea   : > { %v2470_v12 = vpop.permute.xlu0 %2469  ;;  %v1976_v9 = vmul.f32 %v5398_v8, %v5398_v8 }
 0x2eb   : > { %v2743_v21 = vmul.f32 %v2470_v12, %v2359_v59  ;;  %v1912_v59 = vmul.f32 0.020408163, %v6431_v41  ;;  %v6432_v12 = vld [vmem:[#allocation110_spill] sm:$0xff] }
 0x2ec   : > { %v1541_v17 = vsel %vm1387_vm0, %v6432_v12, 0.0  ;;  %v1631_v20 = vmul.f32 %v6432_v12, %v6432_v12 }
 0x2ed   : > { %v3319_v28 = vadd.f32 %v3255_v62, %v2743_v21  ;;  %v2040_v10 = vsub.f32 %v1912_v59, %v1976_v9  ;;  %v6433_v62 = vld [vmem:[#allocation103_spill] sm:$0xff]  ;;  %v2104_v59 = vld [vmem:[%s4958_s30 + $0x60] sm:$0xff] }
 0x2ee   : > { %v5410_v21 = vmul.f32 0.020408163, %v6433_v62  ;;  %v1797_v45 = vsel %vm1387_vm0, %v1631_v20, 0.0 }
 0x2ef   : > { %v3383_v0 = vmax.f32 %v3319_v28, 0.0  ;;  %v6434_v28 = vld [vmem:[#allocation105_spill] sm:$0xff]  ;;  %v2168_v58 = vadd.f32 1e-05, %v2040_v10 }
 0x2f0   : > { %v1981_v1 = vmul.f32 %v5410_v21, %v5410_v21 }
 0x2f1   : > { %3447 = vst.msk [vmem:[%s5230_s11 + $0x58] sm:$0xff] %vm1387_vm0, %v3383_v0  ;;  %v1917_v0 = vmul.f32 0.020408163, %v6434_v28  ;;  %3811 = vrsqrt.f32 %v2168_v58  ;;  %v2867_v58 = vld [vmem:[%s5210_s8 + $0x38] sm:$0xff] }
 0x2f3   : > { %v2045_v51 = vsub.f32 %v1917_v0, %v1981_v1 }
 0x2f5   : > { %v2173_v9 = vadd.f32 1e-05, %v2045_v51 }
 0x2f7   : > { %3813 = vrsqrt.f32 %v2173_v9 }
 0x2fa   : > { %1542 = vadd.xlane.f32.xlu1 %v1541_v17 }
 0x2fb   : > { %v3812_v41 = vpop.eup %3811 }
 0x2fc   : > { %1557 = vadd.xlane.f32.xlu0 %v1556_v18  ;;  %v2296_v17 = vmul.f32 %v3812_v41, %v2104_v59  ;;  %v2109_v18 = vld [vmem:[%s4958_s30 + $0x88] sm:$0xff]  ;;  %v6437_v59 = vld [vmem:[#allocation2_spill] sm:$0xff] }
 0x2fe   : > { %1798 = vadd.xlane.f32.xlu1 %v1797_v45  ;;  %v2356_v45 = vsub.f32 %v6439_v19, %v5253_v24 }
 0x300   : > { %1813 = vadd.xlane.f32.xlu0 %v1812_v44  ;;  %v6435_v44 = vld [vmem:[#allocation17_spill] sm:$0xff] }
 0x301   : > { %v3814_v10 = vpop.eup %3813  ;;  %v2355_v51 = vsub.f32 %v6435_v44, %v5247_v6 }
 0x302   : > { %v2301_v20 = vmul.f32 %v3814_v10, %v2109_v18 }
 0x30f   : > { %2474 = vperm.xlu1 %3781, %v2296_v17   ;;  %v3251_v17 = vadd.f32 %v6437_v59, %v2867_v58 }
 0x311   : > { %v1531_v62 = vpop.xlane.xlu1 %1530 }
 0x312   : > { %v5425_v28 = vmul.f32 0.020408163, %v1531_v62 }
 0x314   : > { %v5429_v14 = vmul.f32 %v5425_v28, %v5425_v28 }
 0x315   : > { %v1787_v16 = vpop.xlane.xlu1 %1786 }
 0x316   : > { %v5431_v0 = vmul.f32 0.020408163, %v1787_v16  ;;  %2499 = vperm.xlu0 %3782, %v2301_v20   ;;  %v2868_v16 = vld [vmem:[%s5210_s8 + $0x40] sm:$0xff] }
 0x317   : > { %v1546_v1 = vpop.xlane.xlu0 %1545 }
 0x318   : > { %v5438_v9 = vmul.f32 0.020408163, %v1546_v1  ;;  %v1373_v1 = vpop.f32.mrb[122].mxu0 }
 0x319   : > { %v2450_v41 = vpop.permute.xlu1 %2449  ;;  %v988_v6 = vpop.f32.mrb[122].mxu1 }
 0x31a   : > { %6436 = vst [vmem:[#allocation4_spill] sm:$0xff] %v5438_v9  ;;  %v2739_v10 = vmul.f32 %v2450_v41, %v2355_v51  ;;  %v5443_v62 = vmul.f32 %v5438_v9, %v5438_v9  ;;  %v5450_v5 = vadd.f32 %v1373_v1, %v988_v6  ;;  %v990_v58 = vpop.f32.mrb[123].mxu1  ;;  %v6441_v51 = vld [vmem:[#allocation3_spill] sm:$0xff] }
 0x31b   : > { %v1802_v18 = vpop.xlane.xlu0 %1801  ;;  %v3252_v41 = vadd.f32 %v6441_v51, %v2868_v16  ;;  %v2873_v9 = vld [vmem:[%s5210_s8 + $0x68] sm:$0xff]  ;;  %v6443_v16 = vld [vmem:[#allocation30_spill] sm:$0xff] }
 0x31c   : > { %6438 = vst [vmem:[#allocation95_spill] sm:$0xff] %v5443_v62  ;;  %v3315_v20 = vadd.f32 %v3251_v17, %v2739_v10  ;;  %v5448_v13 = vmul.f32 0.020408163, %v1802_v18  ;;  %v1375_v10 = vpop.f32.mrb[123].mxu0  ;;  %v6455_v62 = vld [vmem:[#allocation8_spill] sm:$0xff] }
 0x31d   : > { %v2455_v44 = vpop.permute.xlu1 %2454  ;;  %v993_v19 = vpop.f32.mrb[124].mxu1 }
 0x31e   : > { %6440 = vst [vmem:[#allocation97_spill] sm:$0xff] %v5448_v13  ;;  %v3379_v59 = vmax.f32 %v3315_v20, 0.0  ;;  %v2740_v42 = vmul.f32 %v2455_v44, %v2356_v45  ;;  %v1378_v18 = vpop.f32.mrb[124].mxu0  ;;  %v995_v1 = vpop.f32.mrb[125].mxu1  ;;  %v2361_v20 = vsub.f32 %v6443_v16, %v5263_v31  ;;  %v6444_v44 = vld [vmem:[#allocation6_spill] sm:$0xff]  ;;  %v1547_v31 = vsel %vm1387_vm0, %v5139_v61, 0.0 }
 0x31f   : > { %v5458_v7 = vadd.f32 %v1378_v18, %v993_v19  ;;  %v1380_v6 = vpop.f32.mrb[125].mxu0  ;;  %v3257_v51 = vadd.f32 %v6444_v44, %v2873_v9  ;;  %v6447_v9 = vld [vmem:[#allocation107_spill] sm:$0xff]  ;;  %v1638_v16 = vmul.f32 %v5333_v48, %v5333_v48 }
 0x320   : > { %3443 = vst.msk [vmem:[%s5230_s11 + $0x38] sm:$0xff] %vm1387_vm0, %v3379_v59  ;;  %v3316_v24 = vadd.f32 %v3252_v41, %v2740_v42  ;;  %v6445_v42 = vld [vmem:[#allocation98_spill] sm:$0xff]  ;;  %v5476_v1 = vmul.f32 0.020408163, %v6447_v9  ;;  %v2111_v9 = vld [vmem:[%s4958_s30 + $0x98] sm:$0xff] }
 0x321   : > { %6442 = vst [vmem:[#allocation110_spill] sm:$0xff] %v5458_v7  ;;  %v5468_v41 = vmul.f32 0.020408163, %v6445_v42 }
 0x322   : > { %v3380_v58 = vmax.f32 %v3316_v24, 0.0  ;;  %v6446_v24 = vld [vmem:[#allocation100_spill] sm:$0xff] }
 0x323   : > { %v2480_v45 = vpop.permute.xlu0 %2479  ;;  %v1978_v19 = vmul.f32 %v5468_v41, %v5468_v41  ;;  %v1914_v18 = vmul.f32 0.020408163, %v6446_v24 }
 0x324   : > { %3444 = vst.msk [vmem:[%s5230_s11 + $0x40] sm:$0xff] %vm1387_vm0, %v3380_v58  ;;  %v2745_v10 = vmul.f32 %v2480_v45, %v2361_v20  ;;  %v1562_v58 = vsel %vm1387_vm0, %v5333_v48, 0.0  ;;  %v6448_v20 = vld [vmem:[#allocation109_spill] sm:$0xff] }
 0x325   : > { %v2042_v6 = vsub.f32 %v1914_v18, %v1978_v19  ;;  %v1919_v45 = vmul.f32 0.020408163, %v6448_v20  ;;  %v2106_v18 = vld [vmem:[%s4958_s30 + $0x70] sm:$0xff] }
 0x326   : > { %v3321_v59 = vadd.f32 %v3257_v51, %v2745_v10  ;;  %v1983_v51 = vmul.f32 %v5476_v1, %v5476_v1 }
 0x327   : > { %v2170_v44 = vadd.f32 1e-05, %v2042_v6 }
 0x328   : > { %v3385_v17 = vmax.f32 %v3321_v59, 0.0  ;;  %v1818_v59 = vsel %vm1387_vm0, %v1638_v16, 0.0  ;;  %v2047_v42 = vsub.f32 %v1919_v45, %v1983_v51 }
 0x329   : > { %3815 = vrsqrt.f32 %v2170_v44 }
 0x32a   : > { %3449 = vst.msk [vmem:[%s5230_s11 + $0x68] sm:$0xff] %vm1387_vm0, %v3385_v17  ;;  %v1633_v17 = vmul.f32 %v5139_v61, %v5139_v61  ;;  %v2175_v19 = vadd.f32 1e-05, %v2047_v42  ;;  %v5680_v61 = vmul.f32 0.020408163, %v5281_v55 }
 0x32c   : > { %v1803_v10 = vsel %vm1387_vm0, %v1633_v17, 0.0  ;;  %3817 = vrsqrt.f32 %v2175_v19 }
 0x333   : > { %1548 = vadd.xlane.f32.xlu1 %v1547_v31  ;;  %v3816_v24 = vpop.eup %3815 }
 0x334   : > { %v2298_v31 = vmul.f32 %v3816_v24, %v2106_v18  ;;  %v6451_v24 = vld [vmem:[#allocation23_spill] sm:$0xff] }
 0x335   : > { %1563 = vadd.xlane.f32.xlu0 %v1562_v58  ;;  %v2358_v18 = vsub.f32 %v6451_v24, %v5338_v39 }
 0x336   : > { %v3818_v6 = vpop.eup %3817 }
 0x337   : > { %1804 = vadd.xlane.f32.xlu1 %v1803_v10  ;;  %v2303_v58 = vmul.f32 %v3818_v6, %v2111_v9  ;;  %v6453_v9 = vld [vmem:[#allocation5_spill] sm:$0xff] }
 0x339   : > { %1819 = vadd.xlane.f32.xlu0 %v1818_v59  ;;  %v2870_v59 = vld [vmem:[%s5210_s8 + $0x50] sm:$0xff] }
 0x348   : > { %2484 = vperm.xlu1 %3781, %v2298_v31  }
 0x34e   : > { %v1537_v20 = vpop.xlane.xlu1 %1536 }
 0x34f   : > { %v5491_v48 = vmul.f32 0.020408163, %v1537_v20  ;;  %2509 = vperm.xlu0 %3782, %v2303_v58   ;;  %v3254_v58 = vadd.f32 %v6453_v9, %v2870_v59  ;;  %v6456_v59 = vld [vmem:[#allocation101_spill] sm:$0xff]  ;;  %v6457_v9 = vld [vmem:[#allocation102_spill] sm:$0xff] }
 0x350   : > { %v1552_v17 = vpop.xlane.xlu0 %1551 }
 0x351   : > { %v5493_v16 = vmul.f32 0.020408163, %v1552_v17  ;;  %v5497_v44 = vmul.f32 %v5491_v48, %v5491_v48 }
 0x352   : > { %v1793_v45 = vpop.xlane.xlu1 %1792 }
 0x353   : > { %6449 = vst [vmem:[#allocation103_spill] sm:$0xff] %v5493_v16  ;;  %v5499_v51 = vmul.f32 0.020408163, %v1793_v45  ;;  %v5503_v10 = vmul.f32 %v5493_v16, %v5493_v16  ;;  %v2875_v16 = vld [vmem:[%s5210_s8 + $0x78] sm:$0xff] }
 0x354   : > { %v1808_v42 = vpop.xlane.xlu0 %1807  ;;  %v3259_v13 = vadd.f32 %v6455_v62, %v2875_v16  ;;  %v5532_v62 = vmul.f32 0.020408163, %v5057_v25  ;;  %v1921_v16 = vmul.f32 0.020408163, %v5066_v22 }
 0x355   : > { %6450 = vst [vmem:[#allocation105_spill] sm:$0xff] %v5503_v10  ;;  %v5510_v31 = vmul.f32 0.020408163, %v1808_v42 }
 0x356   : > { %v2465_v6 = vpop.permute.xlu1 %2464  ;;  %v1985_v25 = vmul.f32 %v5532_v62, %v5532_v62 }
 0x357   : > { %6452 = vst [vmem:[#allocation17_spill] sm:$0xff] %v5510_v31  ;;  %v2742_v20 = vmul.f32 %v2465_v6, %v2358_v18  ;;  %v5524_v18 = vmul.f32 0.020408163, %v6456_v59  ;;  %v2108_v59 = vld [vmem:[%s4958_s30 + $0x80] sm:$0xff]  ;;  %v6478_v31 = vld [vmem:[#allocation141_spill] sm:$0xff] }
 0x359   : > { %v3318_v45 = vadd.f32 %v3254_v58, %v2742_v20  ;;  %v1980_v6 = vmul.f32 %v5524_v18, %v5524_v18  ;;  %v1916_v58 = vmul.f32 0.020408163, %v6457_v9  ;;  %v2113_v9 = vld [vmem:[%s4958_s30 + $0xa8] sm:$0xff] }
 0x35b   : > { %v3382_v47 = vmax.f32 %v3318_v45, 0.0  ;;  %v2044_v33 = vsub.f32 %v1916_v58, %v1980_v6 }
 0x35c   : > { %v2490_v19 = vpop.permute.xlu0 %2489 }
 0x35d   : > { %3446 = vst.msk [vmem:[%s5230_s11 + $0x50] sm:$0xff] %vm1387_vm0, %v3382_v47  ;;  %v2747_v39 = vmul.f32 %v2490_v19, %v2363_v53  ;;  %v1635_v53 = vmul.f32 %v5242_v11, %v5242_v11  ;;  %v1640_v47 = vmul.f32 %v5393_v4, %v5393_v4  ;;  %v2172_v19 = vadd.f32 1e-05, %v2044_v33  ;;  %v6464_v11 = vld [vmem:[#allocation10_spill] sm:$0xff] }
 0x35f   : > { %v3323_v42 = vadd.f32 %v3259_v13, %v2747_v39  ;;  %v1568_v13 = vsel %vm1387_vm0, %v5393_v4, 0.0  ;;  %v1809_v20 = vsel %vm1387_vm0, %v1635_v53, 0.0  ;;  %v1824_v45 = vsel %vm1387_vm0, %v1640_v47, 0.0  ;;  %v6463_v4 = vld [vmem:[#allocation40_spill] sm:$0xff] }
 0x360   : > { %v2049_v39 = vsub.f32 %v1921_v16, %v1985_v25  ;;  %3819 = vrsqrt.f32 %v2172_v19 }
 0x361   : > { %v3387_v24 = vmax.f32 %v3323_v42, 0.0 }
 0x362   : > { %v2177_v42 = vadd.f32 1e-05, %v2049_v39 }
 0x363   : > { %3451 = vst.msk [vmem:[%s5230_s11 + $0x78] sm:$0xff] %vm1387_vm0, %v3387_v24 }
 0x364   : > { %3821 = vrsqrt.f32 %v2177_v42  ;;  %v6460_v42 = vld [vmem:[#allocation28_spill] sm:$0xff] }
 0x36a   : > { %v3820_v24 = vpop.eup %3819 }
 0x36b   : > { %v2300_v22 = vmul.f32 %v3820_v24, %v2108_v59  ;;  %v2360_v24 = vsub.f32 %v6460_v42, %v5398_v8 }
 0x36c   : > { %1554 = vadd.xlane.f32.xlu1 %v1553_v30 }
 0x36e   : > { %1569 = vadd.xlane.f32.xlu0 %v1568_v13  ;;  %v3822_v6 = vpop.eup %3821 }
 0x36f   : > { %v2305_v58 = vmul.f32 %v3822_v6, %v2113_v9  ;;  %v6462_v6 = vld [vmem:[#allocation7_spill] sm:$0xff] }
 0x370   : > { %1810 = vadd.xlane.f32.xlu1 %v1809_v20  ;;  %v2872_v20 = vld [vmem:[%s5210_s8 + $0x60] sm:$0xff] }
 0x371   : > { %v3256_v9 = vadd.f32 %v6462_v6, %v2872_v20  ;;  %v6465_v20 = vld [vmem:[#allocation104_spill] sm:$0xff]  ;;  %v6466_v6 = vld [vmem:[#allocation106_spill] sm:$0xff] }
 0x372   : > { %1825 = vadd.xlane.f32.xlu0 %v1824_v45 }
 0x381   : > { %2494 = vperm.xlu1 %3781, %v2300_v22  }
 0x387   : > { %v1543_v30 = vpop.xlane.xlu1 %1542 }
 0x388   : > { %v5547_v33 = vmul.f32 0.020408163, %v1543_v30  ;;  %2519 = vperm.xlu0 %3782, %v2305_v58  }
 0x389   : > { %v1558_v13 = vpop.xlane.xlu0 %1557 }
 0x38a   : > { %v5549_v53 = vmul.f32 0.020408163, %v1558_v13  ;;  %v5553_v16 = vmul.f32 %v5547_v33, %v5547_v33 }
 0x38b   : > { %v1799_v47 = vpop.xlane.xlu1 %1798 }
 0x38c   : > { %6458 = vst [vmem:[#allocation2_spill] sm:$0xff] %v5549_v53  ;;  %v5555_v19 = vmul.f32 0.020408163, %v1799_v47  ;;  %v5559_v25 = vmul.f32 %v5549_v53, %v5549_v53  ;;  %v2877_v47 = vld [vmem:[%s5210_s8 + $0x88] sm:$0xff]  ;;  %v2365_v53 = vsub.f32 %v6463_v4, %v5410_v21  ;;  %v1559_v4 = vsel %vm1387_vm0, %v5327_v50, 0.0 }
 0x38d   : > { %v1814_v45 = vpop.xlane.xlu0 %1813  ;;  %v3261_v10 = vadd.f32 %v6464_v11, %v2877_v47  ;;  %v5588_v11 = vmul.f32 0.020408163, %v5073_v54  ;;  %v6467_v47 = vld [vmem:[#allocation117_spill] sm:$0xff] }
 0x38e   : > { %6459 = vst [vmem:[#allocation20_spill] sm:$0xff] %v5559_v25  ;;  %v5566_v59 = vmul.f32 0.020408163, %v1814_v45  ;;  %v5600_v54 = vmul.f32 0.020408163, %v6467_v47 }
 0x38f   : > { %v2475_v22 = vpop.permute.xlu1 %2474 }
 0x390   : > { %6461 = vst [vmem:[#allocation3_spill] sm:$0xff] %v5566_v59  ;;  %v2744_v58 = vmul.f32 %v2475_v22, %v2360_v24  ;;  %v5580_v24 = vmul.f32 0.020408163, %v6465_v20  ;;  %v6468_v20 = vld [vmem:[#allocation119_spill] sm:$0xff] }
 0x392   : > { %v3320_v13 = vadd.f32 %v3256_v9, %v2744_v58  ;;  %v1982_v22 = vmul.f32 %v5580_v24, %v5580_v24  ;;  %v1918_v9 = vmul.f32 0.020408163, %v6466_v6  ;;  %v6469_v6 = vld [vmem:[#allocation121_spill] sm:$0xff] }
 0x394   : > { %v3384_v17 = vmax.f32 %v3320_v13, 0.0  ;;  %v2046_v21 = vsub.f32 %v1918_v9, %v1982_v22  ;;  %v1987_v13 = vmul.f32 %v5588_v11, %v5588_v11  ;;  %v1925_v22 = vmul.f32 0.020408163, %v6468_v20 }
 0x395   : > { %v2500_v39 = vpop.permute.xlu0 %2499  ;;  %v5608_v9 = vmul.f32 0.020408163, %v6469_v6  ;;  %v6473_v6 = vld [vmem:[#allocation129_spill] sm:$0xff] }
 0x396   : > { %3448 = vst.msk [vmem:[%s5230_s11 + $0x60] sm:$0xff] %vm1387_vm0, %v3384_v17  ;;  %v2749_v8 = vmul.f32 %v2500_v39, %v2365_v53  ;;  %v1637_v17 = vmul.f32 %v5327_v50, %v5327_v50  ;;  %v1642_v53 = vmul.f32 %v5458_v7, %v5458_v7  ;;  %v1923_v39 = vmul.f32 0.020408163, %v5088_v46 }
 0x397   : > { %v2174_v58 = vadd.f32 1e-05, %v2046_v21  ;;  %v1989_v46 = vmul.f32 %v5600_v54, %v5600_v54  ;;  %v5620_v30 = vmul.f32 0.020408163, %v6473_v6  ;;  %v6476_v6 = vld [vmem:[#allocation135_spill] sm:$0xff] }
 0x398   : > { %v3325_v45 = vadd.f32 %v3261_v10, %v2749_v8  ;;  %v1574_v10 = vsel %vm1387_vm0, %v5458_v7, 0.0  ;;  %v1815_v8 = vsel %vm1387_vm0, %v1637_v17, 0.0  ;;  %v1991_v17 = vmul.f32 %v5608_v9, %v5608_v9  ;;  %v6474_v7 = vld [vmem:[#allocation131_spill] sm:$0xff] }
 0x399   : > { %3823 = vrsqrt.f32 %v2174_v58  ;;  %v2053_v21 = vsub.f32 %v1925_v22, %v1989_v46  ;;  %v2110_v22 = vld [vmem:[%s4958_s30 + $0x90] sm:$0xff]  ;;  %v1933_v25 = vmul.f32 0.020408163, %v6476_v6  ;;  %v1937_v6 = vmul.f32 0.020408163, %v5185_v23 }
 0x39a   : > { %v3389_v42 = vmax.f32 %v3325_v45, 0.0  ;;  %v1830_v45 = vsel %vm1387_vm0, %v1642_v53, 0.0  ;;  %v6471_v53 = vld [vmem:[#allocation125_spill] sm:$0xff] }
 0x39b   : > { %v2181_v58 = vadd.f32 1e-05, %v2053_v21  ;;  %v6475_v21 = vld [vmem:[#allocation133_spill] sm:$0xff] }
 0x39c   : > { %3453 = vst.msk [vmem:[%s5230_s11 + $0x88] sm:$0xff] %vm1387_vm0, %v3389_v42  ;;  %v2051_v42 = vsub.f32 %v1923_v39, %v1987_v13  ;;  %v5614_v39 = vmul.f32 0.020408163, %v6471_v53  ;;  %v1931_v53 = vmul.f32 0.020408163, %v6474_v7 }
 0x39e   : > { %v1993_v20 = vmul.f32 %v5614_v39, %v5614_v39 }
 0x3a5   : > { %1560 = vadd.xlane.f32.xlu1 %v1559_v4  ;;  %v2179_v4 = vadd.f32 1e-05, %v2051_v42  ;;  %v3824_v42 = vpop.eup %3823 }
 0x3a7   : > { %1575 = vadd.xlane.f32.xlu0 %v1574_v10  ;;  %v6470_v10 = vld [vmem:[#allocation123_spill] sm:$0xff]  ;;  %3825 = vrsqrt.f32 %v2179_v4  ;;  %v1995_v4 = vmul.f32 %v5620_v30, %v5620_v30 }
 0x3a8   : > { %v1927_v47 = vmul.f32 0.020408163, %v6470_v10  ;;  %3827 = vrsqrt.f32 %v2181_v58 }
 0x3a9   : > { %1816 = vadd.xlane.f32.xlu1 %v1815_v8  ;;  %v6472_v8 = vld [vmem:[#allocation127_spill] sm:$0xff]  ;;  %v2059_v50 = vsub.f32 %v1931_v53, %v1995_v4 }
 0x3aa   : > { %v2055_v13 = vsub.f32 %v1927_v47, %v1991_v17  ;;  %v5627_v47 = vmul.f32 0.020408163, %v6475_v21  ;;  %v2302_v17 = vmul.f32 %v3824_v42, %v2110_v22  ;;  %v1935_v42 = vmul.f32 0.020408163, %v6478_v31 }
 0x3ab   : > { %1831 = vadd.xlane.f32.xlu0 %v1830_v45  ;;  %v1929_v45 = vmul.f32 0.020408163, %v6472_v8  ;;  %v5638_v22 = vmul.f32 0.020408163, %v5175_v60 }
 0x3ac   : > { %v2183_v46 = vadd.f32 1e-05, %v2055_v13  ;;  %v1997_v58 = vmul.f32 %v5627_v47, %v5627_v47  ;;  %v6477_v13 = vld [vmem:[#allocation139_spill] sm:$0xff] }
 0x3ad   : > { %v2057_v10 = vsub.f32 %v1929_v45, %v1993_v20  ;;  %v5633_v7 = vmul.f32 0.020408163, %v6477_v13  ;;  %v2115_v45 = vld [vmem:[%s4958_s30 + $0xb8] sm:$0xff]  ;;  %v2187_v20 = vadd.f32 1e-05, %v2059_v50  ;;  %v2001_v60 = vmul.f32 %v5638_v22, %v5638_v22 }
 0x3ae   : > { %3829 = vrsqrt.f32 %v2183_v46  ;;  %v2061_v21 = vsub.f32 %v1933_v25, %v1997_v58  ;;  %v5651_v13 = vmul.f32 0.020408163, %v5196_v63 }
 0x3af   : > { %v2185_v8 = vadd.f32 1e-05, %v2057_v10  ;;  %v1999_v53 = vmul.f32 %v5633_v7, %v5633_v7  ;;  %v2065_v23 = vsub.f32 %v1937_v6, %v2001_v60  ;;  %v5669_v60 = vmul.f32 0.020408163, %v5204_v29  ;;  %v2879_v29 = vld [vmem:[%s5210_s8 + $0x98] sm:$0xff] }
 0x3b0   : > { %v2189_v50 = vadd.f32 1e-05, %v2061_v21  ;;  %v2874_v21 = vld [vmem:[%s5210_s8 + $0x70] sm:$0xff]  ;;  %v2003_v6 = vmul.f32 %v5651_v13, %v5651_v13 }
 0x3b1   : > { %v3826_v59 = vpop.eup %3825  ;;  %3831 = vrsqrt.f32 %v2185_v8  ;;  %v2063_v25 = vsub.f32 %v1935_v42, %v1999_v53  ;;  %v6480_v53 = vld [vmem:[#allocation33_spill] sm:$0xff]  ;;  %v2005_v32 = vmul.f32 %v5669_v60, %v5669_v60 }
 0x3b2   : > { %v2307_v46 = vmul.f32 %v3826_v59, %v2115_v45  ;;  %v3828_v10 = vpop.eup %3827  ;;  %3833 = vrsqrt.f32 %v2187_v20  ;;  %v2362_v63 = vsub.f32 %v6480_v53, %v5468_v41 }
 0x3b3   : > { %3835 = vrsqrt.f32 %v2189_v50  ;;  %v2191_v42 = vadd.f32 1e-05, %v2063_v25  ;;  %v2121_v50 = vld [vmem:[%s4958_s30 + $0xe8] sm:$0xff]  ;;  %v6481_v25 = vld [vmem:[#allocation9_spill] sm:$0xff] }
 0x3b5   : > { %3837 = vrsqrt.f32 %v2191_v42  ;;  %v6483_v42 = vld [vmem:[#allocation44_spill] sm:$0xff] }
 0x3b8   : > { %v3830_v58 = vpop.eup %3829 }
 0x3ba   : > { %2504 = vperm.xlu1 %3781, %v2302_v17   ;;  %v2117_v17 = vld [vmem:[%s4958_s30 + $0xc8] sm:$0xff] }
 0x3bb   : > { %v2309_v59 = vmul.f32 %v3828_v10, %v2117_v17  ;;  %v2311_v17 = vmul.f32 %v3830_v58, %v2119_v35  ;;  %v3832_v36 = vpop.eup %3831  ;;  %v6482_v58 = vld [vmem:[#allocation147_spill] sm:$0xff] }
 0x3bc   : > { %v2313_v40 = vmul.f32 %v3832_v36, %v2121_v50  ;;  %v3834_v15 = vpop.eup %3833  ;;  %v1943_v50 = vmul.f32 0.020408163, %v5290_v52 }
 0x3c0   : > { %v5642_v4 = vpop.xlane.xlu1 %1548 }
 0x3c1   : > { %2529 = vperm.xlu0 %3782, %v2307_v46   ;;  %v1939_v46 = vmul.f32 0.020408163, %v5201_v38  ;;  %v3258_v38 = vadd.f32 %v6481_v25, %v2874_v21  ;;  %v998_v21 = vpop.f32.mrb[126].mxu1 }
 0x3c2   : > { %v1564_v31 = vpop.xlane.xlu0 %1563 }
 0x3c3   : > { %v5648_v8 = vmul.f32 0.020408163, %v1564_v31  ;;  %v2067_v41 = vsub.f32 %v1939_v46, %v2003_v6  ;;  %v1000_v46 = vpop.f32.mrb[127].mxu1 }
 0x3c4   : > { %v5653_v45 = vpop.xlane.xlu1 %1804 }
 0x3c5   : > { %6479 = vst [vmem:[#allocation30_spill] sm:$0xff] %v5648_v8  ;;  %2539 = vperm.xlu0 %3782, %v2309_v59   ;;  %v5658_v20 = vmul.f32 %v5648_v8, %v5648_v8  ;;  %v2193_v8 = vadd.f32 1e-05, %v2065_v23  ;;  %v2123_v23 = vld [vmem:[%s4958_s30 + $0xf8] sm:$0xff]  ;;  %v2195_v6 = vadd.f32 1e-05, %v2067_v41 }
 0x3c6   : > { %v1820_v10 = vpop.xlane.xlu0 %1819  ;;  %v5694_v41 = vmul.f32 0.020408163, %v5360_v3  ;;  %v6485_v3 = vld [vmem:[#allocation108_spill] sm:$0xff] }
 0x3c7   : > { %v5664_v31 = vmul.f32 0.020408163, %v1820_v10  ;;  %v1941_v10 = vmul.f32 0.020408163, %v6482_v58  ;;  %3839 = vrsqrt.f32 %v2193_v8 }
 0x3c8   : > { %v2485_v59 = vpop.permute.xlu1 %2484  ;;  %3841 = vrsqrt.f32 %v2195_v6 }
 0x3c9   : > { %v2746_v56 = vmul.f32 %v2485_v59, %v2362_v63  ;;  %2549 = vperm.xlu0 %3782, %v2311_v17   ;;  %v2086_v35 = vsub.f32 %v5664_v31, %v5658_v20  ;;  %v1383_v63 = vpop.f32.mrb[126].mxu0  ;;  %v2069_v59 = vsub.f32 %v1941_v10, %v2005_v32  ;;  %v2125_v32 = vld [vmem:[%s4958_s30 + $0x108] sm:$0xff]  ;;  %v2146_v31 = vld [vmem:[%s4958_s30 + $0x1b0] sm:$0xff] }
 0x3ca   : > { %v1385_v36 = vpop.f32.mrb[127].mxu0  ;;  %v5686_v55 = vadd.f32 %v1383_v63, %v998_v21 }
 0x3cb   : > { %v3322_v53 = vadd.f32 %v3258_v38, %v2746_v56  ;;  %v2367_v56 = vsub.f32 %v6483_v42, %v5476_v1  ;;  %v6484_v38 = vld [vmem:[#allocation12_spill] sm:$0xff]  ;;  %v2007_v1 = vmul.f32 %v5680_v61, %v5680_v61  ;;  %v2197_v10 = vadd.f32 1e-05, %v2069_v59  ;;  %v2127_v42 = vld [vmem:[%s4958_s30 + $0x118] sm:$0xff] }
 0x3cc   : > { %v3263_v58 = vadd.f32 %v6484_v38, %v2879_v29  ;;  %v1945_v29 = vmul.f32 0.020408163, %v5362_v27  ;;  %v2129_v38 = vld [vmem:[%s4958_s30 + $0x128] sm:$0xff] }
 0x3cd   : > { %v3386_v17 = vmax.f32 %v3322_v53, 0.0  ;;  %2559 = vperm.xlu0 %3782, %v2313_v40   ;;  %v2315_v40 = vmul.f32 %v3834_v15, %v2123_v23  ;;  %v3836_v53 = vpop.eup %3835  ;;  %v2071_v21 = vsub.f32 %v1943_v50, %v2007_v1  ;;  %v2009_v23 = vmul.f32 %v5694_v41, %v5694_v41  ;;  %v6486_v50 = vld [vmem:[#allocation111_spill] sm:$0xff] }
 0x3ce   : > { %v2510_v25 = vpop.permute.xlu0 %2509  ;;  %v3838_v15 = vpop.eup %3837  ;;  %3843 = vrsqrt.f32 %v2197_v10  ;;  %v6487_v10 = vsub.f32 %v5431_v0, %v5429_v14  ;;  %v1953_v14 = vmul.f32 0.020408163, %v5653_v45 }
 0x3cf   : > { %3450 = vst.msk [vmem:[%s5230_s11 + $0x70] sm:$0xff] %vm1387_vm0, %v3386_v17  ;;  %v2751_v8 = vmul.f32 %v2510_v25, %v2367_v56  ;;  %v2317_v17 = vmul.f32 %v3836_v53, %v2125_v32  ;;  %v5704_v56 = vmul.f32 0.020408163, %v6485_v3  ;;  %v2199_v36 = vadd.f32 1e-05, %v2071_v21  ;;  %v2131_v32 = vld [vmem:[%s4958_s30 + $0x138] sm:$0xff] }
 0x3d0   : > { %v2073_v46 = vsub.f32 %v1945_v29, %v2009_v23  ;;  %v2319_v27 = vmul.f32 %v3838_v15, %v2127_v42  ;;  %v1920_v25 = vmul.f32 0.020408163, %v6486_v50  ;;  %v2203_v21 = vadd.f32 1e-05, %v6487_v10  ;;  %v2133_v23 = vld [vmem:[%s4958_s30 + $0x148] sm:$0xff] }
 0x3d1   : > { %v3327_v52 = vadd.f32 %v3263_v58, %v2751_v8  ;;  %2569 = vperm.xlu0 %3782, %v2315_v40   ;;  %v3840_v6 = vpop.eup %3839  ;;  %v1984_v59 = vmul.f32 %v5704_v56, %v5704_v56  ;;  %3845 = vrsqrt.f32 %v2199_v36  ;;  %v1565_v40 = vsel %vm1387_vm0, %v5387_v49, 0.0  ;;  %v2137_v50 = vld [vmem:[%s4958_s30 + $0x168] sm:$0xff] }
 0x3d2   : > { %v2201_v58 = vadd.f32 1e-05, %v2073_v46  ;;  %v2321_v8 = vmul.f32 %v3840_v6, %v2129_v38  ;;  %v3842_v53 = vpop.eup %3841  ;;  %v5719_v15 = vmul.f32 0.020408163, %v5642_v4  ;;  %v6488_v3 = vsub.f32 %v5499_v51, %v5497_v44  ;;  %v2135_v6 = vld [vmem:[%s4958_s30 + $0x158] sm:$0xff] }
 0x3d3   : > { %v3391_v63 = vmax.f32 %v3327_v52, 0.0  ;;  %v2048_v1 = vsub.f32 %v1920_v25, %v1984_v59  ;;  %v1639_v52 = vmul.f32 %v5387_v49, %v5387_v49  ;;  %v2323_v29 = vmul.f32 %v3842_v53, %v2131_v32  ;;  %v2112_v53 = vld [vmem:[%s4958_s30 + $0xa0] sm:$0xff] }
 0x3d4   : > { %3847 = vrsqrt.f32 %v2201_v58  ;;  %v2205_v36 = vadd.f32 1e-05, %v6488_v3  ;;  %v2017_v4 = vmul.f32 %v5719_v15, %v5719_v15 }
 0x3d5   : > { %3455 = vst.msk [vmem:[%s5230_s11 + $0x98] sm:$0xff] %vm1387_vm0, %v3391_v63  ;;  %2579 = vperm.xlu0 %3782, %v2317_v17   ;;  %v2176_v17 = vadd.f32 1e-05, %v2048_v1  ;;  %v1821_v42 = vsel %vm1387_vm0, %v1639_v52, 0.0  ;;  %3849 = vrsqrt.f32 %v2203_v21  ;;  %v2143_v21 = vld [vmem:[%s4958_s30 + $0x198] sm:$0xff] }
 0x3d6   : > { %v2081_v44 = vsub.f32 %v1953_v14, %v2017_v4 }
 0x3d7   : > { %3851 = vrsqrt.f32 %v2176_v17  ;;  %v2145_v17 = vld [vmem:[%s4958_s30 + $0x1a8] sm:$0xff] }
 0x3d8   : > { %v3844_v63 = vpop.eup %3843  ;;  %3853 = vrsqrt.f32 %v2205_v36  ;;  %v2209_v25 = vadd.f32 1e-05, %v2081_v44 }
 0x3d9   : > { %2589 = vperm.xlu0 %3782, %v2319_v27   ;;  %v2325_v0 = vmul.f32 %v3844_v63, %v2133_v23  ;;  %v6489_v27 = vsub.f32 %v5555_v19, %v5553_v16  ;;  %v2141_v19 = vld [vmem:[%s4958_s30 + $0x188] sm:$0xff] }
 0x3db   : > { %v3846_v46 = vpop.eup %3845  ;;  %v2207_v59 = vadd.f32 1e-05, %v6489_v27  ;;  %v2876_v27 = vld [vmem:[%s5210_s8 + $0x80] sm:$0xff] }
 0x3dc   : > { %v2327_v51 = vmul.f32 %v3846_v46, %v2135_v6 }
 0x3dd   : > { %2599 = vperm.xlu0 %3782, %v2321_v8   ;;  %3855 = vrsqrt.f32 %v2207_v59  ;;  %v2139_v8 = vld [vmem:[%s4958_s30 + $0x178] sm:$0xff] }
 0x3de   : > { %1566 = vadd.xlane.f32.xlu1 %v1565_v40  ;;  %v3848_v45 = vpop.eup %3847  ;;  %3857 = vrsqrt.f32 %v2209_v25 }
 0x3df   : > { %v2329_v38 = vmul.f32 %v3848_v45, %v2137_v50  ;;  %v3850_v58 = vpop.eup %3849 }
 0x3e0   : > { %v2331_v1 = vmul.f32 %v3850_v58, %v2139_v8 }
 0x3e1   : > { %2609 = vperm.xlu0 %3782, %v2323_v29   ;;  %v3852_v40 = vpop.eup %3851 }
 0x3e2   : > { %1822 = vadd.xlane.f32.xlu1 %v1821_v42  ;;  %v3854_v16 = vpop.eup %3853  ;;  %v2304_v32 = vmul.f32 %v3852_v40, %v2112_v53 }
 0x3e3   : > { %v2333_v52 = vmul.f32 %v3854_v16, %v2141_v19  ;;  %v2881_v16 = vld [vmem:[%s5210_s8 + $0xa8] sm:$0xff] }
 0x3e5   : > { %2619 = vperm.xlu0 %3782, %v2325_v0  }
 0x3e7   : > { %v3856_v10 = vpop.eup %3855 }
 0x3e8   : > { %v2335_v29 = vmul.f32 %v3856_v10, %v2143_v21  ;;  %v3858_v63 = vpop.eup %3857  ;;  %v6493_v10 = vld [vmem:[#allocation14_spill] sm:$0xff] }
 0x3e9   : > { %2629 = vperm.xlu0 %3782, %v2327_v51   ;;  %v2337_v3 = vmul.f32 %v3858_v63, %v2145_v17  ;;  %v6490_v51 = vld [vmem:[#allocation37_spill] sm:$0xff]  ;;  %v3265_v21 = vadd.f32 %v6493_v10, %v2881_v16 }
 0x3ea   : > { %v2364_v45 = vsub.f32 %v6490_v51, %v5524_v18  ;;  %v1641_v51 = vmul.f32 %v5450_v5, %v5450_v5 }
 0x3ed   : > { %2639 = vperm.xlu0 %3782, %v2329_v38   ;;  %v6491_v38 = vld [vmem:[#allocation11_spill] sm:$0xff] }
 0x3ee   : > { %v3260_v58 = vadd.f32 %v6491_v38, %v2876_v27 }
 0x3f1   : > { %2649 = vperm.xlu0 %3782, %v2331_v1  }
 0x3f3   : > { %2514 = vperm.xlu1 %3781, %v2304_v32   ;;  %v6492_v32 = vld [vmem:[#allocation49_spill] sm:$0xff] }
 0x3f5   : > { %2659 = vperm.xlu0 %3782, %v2333_v52   ;;  %v2369_v52 = vsub.f32 %v6492_v32, %v5532_v62 }
 0x3f9   : > { %v1555_v23 = vpop.xlane.xlu1 %1554  ;;  %2669 = vperm.xlu0 %3782, %v2335_v29  }
 0x3fa   : > { %v5739_v42 = vmul.f32 0.020408163, %v1555_v23  ;;  %v2147_v23 = vld [vmem:[%s4958_s30 + $0x1b8] sm:$0xff] }
 0x3fb   : > { %v1570_v36 = vpop.xlane.xlu0 %1569 }
 0x3fc   : > { %v5741_v14 = vmul.f32 0.020408163, %v1570_v36  ;;  %v2019_v46 = vmul.f32 %v5739_v42, %v5739_v42  ;;  %v6494_v36 = vld [vmem:[#allocation113_spill] sm:$0xff] }
 0x3fd   : > { %v1811_v0 = vpop.xlane.xlu1 %1810  ;;  %2679 = vperm.xlu0 %3782, %v2337_v3  }
 0x3fe   : > { %v1955_v4 = vmul.f32 0.020408163, %v1811_v0  ;;  %v5747_v6 = vmul.f32 %v5741_v14, %v5741_v14  ;;  %v5767_v0 = vmul.f32 0.020408163, %v6494_v36 }
 0x3ff   : > { %v1826_v59 = vpop.xlane.xlu0 %1825 }
 0x400   : > { %v2083_v44 = vsub.f32 %v1955_v4, %v2019_v46  ;;  %v5752_v50 = vmul.f32 0.020408163, %v1826_v59  ;;  %v1986_v62 = vmul.f32 %v5767_v0, %v5767_v0  ;;  %v6495_v4 = vld [vmem:[#allocation114_spill] sm:$0xff]  ;;  %v1571_v59 = vsel %vm1387_vm0, %v5450_v5, 0.0 }
 0x401   : > { %v2495_v25 = vpop.permute.xlu1 %2494  ;;  %v1922_v27 = vmul.f32 0.020408163, %v6495_v4 }
 0x402   : > { %v2211_v8 = vadd.f32 1e-05, %v2083_v44  ;;  %v2748_v40 = vmul.f32 %v2495_v25, %v2364_v45  ;;  %v2088_v53 = vsub.f32 %v5752_v50, %v5747_v6  ;;  %v1827_v25 = vsel %vm1387_vm0, %v1641_v51, 0.0  ;;  %v2883_v51 = vld [vmem:[%s5210_s8 + $0xb8] sm:$0xff] }
 0x403   : > { %v2050_v44 = vsub.f32 %v1922_v27, %v1986_v62 }
 0x404   : > { %3859 = vrsqrt.f32 %v2211_v8  ;;  %v3324_v1 = vadd.f32 %v3260_v58, %v2748_v40  ;;  %v2114_v58 = vld [vmem:[%s4958_s30 + $0xb0] sm:$0xff] }
 0x405   : > { %v2178_v45 = vadd.f32 1e-05, %v2050_v44 }
 0x406   : > { %v3388_v19 = vmax.f32 %v3324_v1, 0.0 }
 0x407   : > { %v2520_v18 = vpop.permute.xlu0 %2519  ;;  %3861 = vrsqrt.f32 %v2178_v45 }
 0x408   : > { %3452 = vst.msk [vmem:[%s5230_s11 + $0x80] sm:$0xff] %vm1387_vm0, %v3388_v19  ;;  %v2753_v29 = vmul.f32 %v2520_v18, %v2369_v52 }
 0x40a   : > { %v3329_v63 = vadd.f32 %v3265_v21, %v2753_v29  ;;  %v2878_v21 = vld [vmem:[%s5210_s8 + $0x90] sm:$0xff] }
 0x40c   : > { %v3393_v17 = vmax.f32 %v3329_v63, 0.0 }
 0x40e   : > { %v3860_v3 = vpop.eup %3859  ;;  %3457 = vst.msk [vmem:[%s5230_s11 + $0xa8] sm:$0xff] %vm1387_vm0, %v3393_v17  ;;  %v6496_v17 = vld [vmem:[#allocation42_spill] sm:$0xff] }
 0x40f   : > { %v2339_v46 = vmul.f32 %v3860_v3, %v2147_v23  ;;  %v2366_v23 = vsub.f32 %v6496_v17, %v5580_v24  ;;  %v2887_v17 = vld [vmem:[%s5210_s8 + $0xd8] sm:$0xff] }
 0x411   : > { %2689 = vperm.xlu0 %3782, %v2339_v46   ;;  %v3862_v38 = vpop.eup %3861  ;;  %v6497_v46 = vld [vmem:[#allocation13_spill] sm:$0xff] }
 0x412   : > { %v2306_v8 = vmul.f32 %v3862_v38, %v2114_v58  ;;  %v3262_v62 = vadd.f32 %v6497_v46, %v2878_v21  ;;  %v6499_v58 = vld [vmem:[#allocation16_spill] sm:$0xff] }
 0x417   : > { %1572 = vadd.xlane.f32.xlu1 %v1571_v59 }
 0x41b   : > { %1828 = vadd.xlane.f32.xlu1 %v1827_v25  ;;  %v6498_v25 = vld [vmem:[#allocation54_spill] sm:$0xff] }
 0x41c   : > { %v2371_v24 = vsub.f32 %v6498_v25, %v5588_v11  ;;  %v2149_v11 = vld [vmem:[%s4958_s30 + $0x1c8] sm:$0xff] }
 0x42c   : > { %2524 = vperm.xlu1 %3781, %v2306_v8   ;;  %v3267_v8 = vadd.f32 %v6499_v58, %v2883_v51 }
 0x432   : > { %v1561_v40 = vpop.xlane.xlu1 %1560 }
 0x433   : > { %v5778_v1 = vmul.f32 0.020408163, %v1561_v40 }
 0x434   : > { %v1576_v16 = vpop.xlane.xlu0 %1575 }
 0x435   : > { %v5780_v19 = vmul.f32 0.020408163, %v1576_v16  ;;  %v2021_v52 = vmul.f32 %v5778_v1, %v5778_v1  ;;  %v2885_v16 = vld [vmem:[%s5210_s8 + $0xc8] sm:$0xff] }
 0x436   : > { %v1817_v32 = vpop.xlane.xlu1 %1816 }
 0x437   : > { %v1957_v18 = vmul.f32 0.020408163, %v1817_v32  ;;  %v5786_v10 = vmul.f32 %v5780_v19, %v5780_v19 }
 0x438   : > { %v1832_v29 = vpop.xlane.xlu0 %1831 }
 0x439   : > { %v2085_v63 = vsub.f32 %v1957_v18, %v2021_v52  ;;  %v5791_v3 = vmul.f32 0.020408163, %v1832_v29  ;;  %v6500_v52 = vld [vmem:[#allocation58_spill] sm:$0xff]  ;;  %v6501_v29 = vld [vmem:[#allocation19_spill] sm:$0xff] }
 0x43a   : > { %v2505_v36 = vpop.permute.xlu1 %2504  ;;  %v2373_v18 = vsub.f32 %v6500_v52, %v5600_v54 }
 0x43b   : > { %v2213_v4 = vadd.f32 1e-05, %v2085_v63  ;;  %v2750_v27 = vmul.f32 %v2505_v36, %v2366_v23  ;;  %v2090_v59 = vsub.f32 %v5791_v3, %v5786_v10  ;;  %v3269_v63 = vadd.f32 %v6501_v29, %v2885_v16  ;;  %v2152_v10 = vld [vmem:[%s4958_s30 + $0x1e0] sm:$0xff] }
 0x43d   : > { %3863 = vrsqrt.f32 %v2213_v4  ;;  %v3326_v44 = vadd.f32 %v3262_v62, %v2750_v27  ;;  %v6502_v62 = vld [vmem:[#allocation115_spill] sm:$0xff]  ;;  %v2218_v20 = vadd.f32 1e-05, %v2090_v59 }
 0x43e   : > { %v5809_v4 = vmul.f32 0.020408163, %v6502_v62  ;;  %v1577_v62 = vsel %vm1387_vm0, %v5686_v55, 0.0 }
 0x43f   : > { %v3390_v45 = vmax.f32 %v3326_v44, 0.0  ;;  %v6503_v44 = vld [vmem:[#allocation63_spill] sm:$0xff] }
 0x440   : > { %v2530_v38 = vpop.permute.xlu0 %2529  ;;  %v2375_v51 = vsub.f32 %v6503_v44, %v5608_v9  ;;  %v1988_v58 = vmul.f32 %v5809_v4, %v5809_v4  ;;  %v6506_v9 = vld [vmem:[#allocation68_spill] sm:$0xff] }
 0x441   : > { %3454 = vst.msk [vmem:[%s5230_s11 + $0x90] sm:$0xff] %vm1387_vm0, %v3390_v45  ;;  %v2755_v40 = vmul.f32 %v2530_v38, %v2371_v24  ;;  %v6504_v45 = vld [vmem:[#allocation22_spill] sm:$0xff]  ;;  %v2889_v38 = vld [vmem:[%s5210_s8 + $0xe8] sm:$0xff] }
 0x442   : > { %v3271_v54 = vadd.f32 %v6504_v45, %v2887_v17 }
 0x443   : > { %v3331_v32 = vadd.f32 %v3267_v8, %v2755_v40  ;;  %v6505_v8 = vld [vmem:[#allocation116_spill] sm:$0xff] }
 0x444   : > { %v2540_v21 = vpop.permute.xlu0 %2539  ;;  %v1924_v40 = vmul.f32 0.020408163, %v6505_v8 }
 0x445   : > { %v3395_v23 = vmax.f32 %v3331_v32, 0.0  ;;  %v2757_v36 = vmul.f32 %v2540_v21, %v2373_v18  ;;  %v2377_v18 = vsub.f32 %v6506_v9, %v5614_v39  ;;  %v6507_v21 = vld [vmem:[#allocation25_spill] sm:$0xff] }
 0x446   : > { %v3273_v29 = vadd.f32 %v6507_v21, %v2889_v38  ;;  %v6511_v38 = vld [vmem:[#allocation122_spill] sm:$0xff] }
 0x447   : > { %v3864_v46 = vpop.eup %3863  ;;  %3459 = vst.msk [vmem:[%s5230_s11 + $0xb8] sm:$0xff] %vm1387_vm0, %v3395_v23  ;;  %v3333_v27 = vadd.f32 %v3269_v63, %v2757_v36  ;;  %v6508_v63 = vld [vmem:[#allocation118_spill] sm:$0xff]  ;;  %v2052_v36 = vsub.f32 %v1924_v40, %v1988_v58  ;;  %v5841_v58 = vmul.f32 0.020408163, %v6511_v38  ;;  %v6512_v40 = vld [vmem:[#allocation29_spill] sm:$0xff] }
 0x448   : > { %v2550_v25 = vpop.permute.xlu0 %2549  ;;  %v2341_v24 = vmul.f32 %v3864_v46, %v2149_v11  ;;  %v5826_v17 = vmul.f32 0.020408163, %v6508_v63 }
 0x449   : > { %v3397_v16 = vmax.f32 %v3333_v27, 0.0  ;;  %v2759_v32 = vmul.f32 %v2550_v25, %v2375_v51  ;;  %v2891_v27 = vld [vmem:[%s5210_s8 + $0xf8] sm:$0xff]  ;;  %v6509_v51 = vld [vmem:[#allocation120_spill] sm:$0xff] }
 0x44a   : > { %2699 = vperm.xlu0 %3782, %v2341_v24   ;;  %v1990_v44 = vmul.f32 %v5826_v17, %v5826_v17  ;;  %v1926_v45 = vmul.f32 0.020408163, %v6509_v51  ;;  %v1643_v24 = vmul.f32 %v5686_v55, %v5686_v55 }
 0x44b   : > { %3461 = vst.msk [vmem:[%s5230_s11 + $0xc8] sm:$0xff] %vm1387_vm0, %v3397_v16  ;;  %v3335_v52 = vadd.f32 %v3271_v54, %v2759_v32  ;;  %v6510_v54 = vld [vmem:[#allocation72_spill] sm:$0xff]  ;;  %v3275_v16 = vadd.f32 %v6512_v40, %v2891_v27  ;;  %v2180_v32 = vadd.f32 1e-05, %v2052_v36  ;;  %v6515_v27 = vld [vmem:[#allocation126_spill] sm:$0xff] }
 0x44c   : > { %v2560_v23 = vpop.permute.xlu0 %2559  ;;  %v2379_v25 = vsub.f32 %v6510_v54, %v5620_v30  ;;  %v2054_v21 = vsub.f32 %v1926_v45, %v1990_v44  ;;  %v6513_v30 = vld [vmem:[#allocation124_spill] sm:$0xff]  ;;  %v5854_v36 = vmul.f32 0.020408163, %v6515_v27  ;;  %v2897_v27 = vld [vmem:[%s5210_s8 + $0x128] sm:$0xff] }
 0x44d   : > { %v3399_v11 = vmax.f32 %v3335_v52, 0.0  ;;  %v2761_v46 = vmul.f32 %v2560_v23, %v2377_v18  ;;  %v2893_v18 = vld [vmem:[%s5210_s8 + $0x108] sm:$0xff]  ;;  %v1928_v63 = vmul.f32 0.020408163, %v6513_v30  ;;  %v6516_v44 = vld [vmem:[#allocation32_spill] sm:$0xff]  ;;  %3865 = vrsqrt.f32 %v2180_v32 }
 0x44e   : > { %v3277_v45 = vadd.f32 %v6516_v44, %v2893_v18  ;;  %v2182_v38 = vadd.f32 1e-05, %v2054_v21  ;;  %v1994_v40 = vmul.f32 %v5854_v36, %v5854_v36  ;;  %v6519_v18 = vld [vmem:[#allocation82_spill] sm:$0xff]  ;;  %v6520_v30 = vld [vmem:[#allocation36_spill] sm:$0xff] }
 0x44f   : > { %3463 = vst.msk [vmem:[%s5230_s11 + $0xd8] sm:$0xff] %vm1387_vm0, %v3399_v11  ;;  %v3337_v39 = vadd.f32 %v3273_v29, %v2761_v46  ;;  %v1992_v29 = vmul.f32 %v5841_v58, %v5841_v58  ;;  %v6514_v11 = vld [vmem:[#allocation77_spill] sm:$0xff]  ;;  %v2383_v32 = vsub.f32 %v6519_v18, %v5633_v7 }
 0x450   : > { %v2570_v8 = vpop.permute.xlu0 %2569  ;;  %1578 = vadd.xlane.f32.xlu1 %v1577_v62  ;;  %v2381_v46 = vsub.f32 %v6514_v11, %v5627_v47  ;;  %v1833_v62 = vsel %vm1387_vm0, %v1643_v24, 0.0  ;;  %v6517_v47 = vld [vmem:[#allocation128_spill] sm:$0xff]  ;;  %3867 = vrsqrt.f32 %v2182_v38  ;;  %v6522_v7 = vld [vmem:[#allocation85_spill] sm:$0xff] }
 0x451   : > { %v3401_v52 = vmax.f32 %v3337_v39, 0.0  ;;  %v2763_v9 = vmul.f32 %v2570_v8, %v2379_v25  ;;  %v2895_v39 = vld [vmem:[%s5210_s8 + $0x118] sm:$0xff]  ;;  %v2056_v8 = vsub.f32 %v1928_v63, %v1992_v29  ;;  %v1930_v24 = vmul.f32 0.020408163, %v6517_v47  ;;  %v6521_v29 = vld [vmem:[#allocation132_spill] sm:$0xff] }
 0x452   : > { %v1932_v63 = vmul.f32 0.020408163, %v6521_v29  ;;  %v2899_v38 = vld [vmem:[%s5210_s8 + $0x138] sm:$0xff]  ;;  %v6526_v29 = vld [vmem:[#allocation87_spill] sm:$0xff] }
 0x453   : > { %3465 = vst.msk [vmem:[%s5230_s11 + $0xe8] sm:$0xff] %vm1387_vm0, %v3401_v52  ;;  %v3339_v23 = vadd.f32 %v3275_v16, %v2763_v9  ;;  %v6518_v16 = vld [vmem:[#allocation130_spill] sm:$0xff]  ;;  %v2058_v44 = vsub.f32 %v1930_v24, %v1994_v40  ;;  %v6525_v24 = vld [vmem:[#allocation137_spill] sm:$0xff] }
 0x454   : > { %v2580_v51 = vpop.permute.xlu0 %2579  ;;  %1834 = vadd.xlane.f32.xlu1 %v1833_v62  ;;  %v5862_v52 = vmul.f32 0.020408163, %v6518_v16  ;;  %v6524_v16 = vld [vmem:[#allocation39_spill] sm:$0xff] }
 0x455   : > { %v3403_v54 = vmax.f32 %v3339_v23, 0.0  ;;  %v2765_v25 = vmul.f32 %v2580_v51, %v2381_v46  ;;  %v3279_v23 = vadd.f32 %v6520_v30, %v2895_v39  ;;  %v2184_v51 = vadd.f32 1e-05, %v2056_v8 }
 0x456   : > { %v1996_v21 = vmul.f32 %v5862_v52, %v5862_v52  ;;  %v2385_v39 = vsub.f32 %v6522_v7, %v5638_v22  ;;  %v3281_v18 = vadd.f32 %v6524_v16, %v2897_v27  ;;  %v2186_v8 = vadd.f32 1e-05, %v2058_v44  ;;  %v2116_v27 = vld [vmem:[%s4958_s30 + $0xc0] sm:$0xff] }
 0x457   : > { %3467 = vst.msk [vmem:[%s5230_s11 + $0xf8] sm:$0xff] %vm1387_vm0, %v3403_v54  ;;  %v3341_v9 = vadd.f32 %v3277_v45, %v2765_v25  ;;  %v6523_v54 = vld [vmem:[#allocation134_spill] sm:$0xff]  ;;  %3869 = vrsqrt.f32 %v2184_v51  ;;  %v3866_v22 = vpop.eup %3865  ;;  %v6528_v51 = vld [vmem:[#allocation43_spill] sm:$0xff] }
 0x458   : > { %v2590_v11 = vpop.permute.xlu0 %2589  ;;  %v5878_v25 = vmul.f32 0.020408163, %v6523_v54  ;;  %v3283_v44 = vadd.f32 %v6528_v51, %v2899_v38  ;;  %v2901_v54 = vld [vmem:[%s5210_s8 + $0x148] sm:$0xff]  ;;  %3871 = vrsqrt.f32 %v2186_v8  ;;  %v2308_v38 = vmul.f32 %v3866_v22, %v2116_v27  ;;  %v2118_v8 = vld [vmem:[%s4958_s30 + $0xd0] sm:$0xff] }
 0x459   : > { %v3405_v46 = vmax.f32 %v3341_v9, 0.0  ;;  %v2767_v62 = vmul.f32 %v2590_v11, %v2383_v32  ;;  %v2060_v9 = vsub.f32 %v1932_v63, %v1996_v21  ;;  %v6527_v21 = vld [vmem:[#allocation140_spill] sm:$0xff] }
 0x45a   : > { %v1998_v40 = vmul.f32 %v5878_v25, %v5878_v25  ;;  %v5890_v63 = vmul.f32 0.020408163, %v6527_v21  ;;  %v2903_v21 = vld [vmem:[%s5210_s8 + $0x158] sm:$0xff]  ;;  %v6533_v22 = vld [vmem:[#allocation144_spill] sm:$0xff] }
 0x45b   : > { %3469 = vst.msk [vmem:[%s5230_s11 + $0x108] sm:$0xff] %vm1387_vm0, %v3405_v46  ;;  %v3343_v45 = vadd.f32 %v3279_v23, %v2767_v62  ;;  %v1934_v23 = vmul.f32 0.020408163, %v6525_v24  ;;  %v2387_v46 = vsub.f32 %v6526_v29, %v5651_v13  ;;  %v1938_v27 = vmul.f32 0.020408163, %v6533_v22 }
 0x45c   : > { %v2600_v47 = vpop.permute.xlu0 %2599  ;;  %v2000_v16 = vmul.f32 %v5890_v63, %v5890_v63 }
 0x45d   : > { %v3407_v32 = vmax.f32 %v3343_v45, 0.0  ;;  %v2769_v30 = vmul.f32 %v2600_v47, %v2385_v39  ;;  %v2188_v45 = vadd.f32 1e-05, %v2060_v9  ;;  %v2062_v47 = vsub.f32 %v1934_v23, %v1998_v40  ;;  %v3868_v9 = vpop.eup %3867  ;;  %v6532_v40 = vld [vmem:[#allocation46_spill] sm:$0xff] }
 0x45e   : > { %v3285_v23 = vadd.f32 %v6532_v40, %v2901_v54 }
 0x45f   : > { %3471 = vst.msk [vmem:[%s5230_s11 + $0x118] sm:$0xff] %vm1387_vm0, %v3407_v32  ;;  %v3345_v11 = vadd.f32 %v3281_v18, %v2769_v30  ;;  %v6529_v18 = vld [vmem:[#allocation142_spill] sm:$0xff]  ;;  %v6530_v30 = vld [vmem:[#allocation89_spill] sm:$0xff]  ;;  %3873 = vrsqrt.f32 %v2188_v45  ;;  %v6535_v45 = vld [vmem:[#allocation91_spill] sm:$0xff] }
 0x460   : > { %v2610_v62 = vpop.permute.xlu0 %2609  ;;  %v1936_v13 = vmul.f32 0.020408163, %v6529_v18  ;;  %v2389_v24 = vsub.f32 %v6530_v30, %v5669_v60  ;;  %v2310_v30 = vmul.f32 %v3868_v9, %v2118_v8  ;;  %v6538_v8 = vld [vmem:[#allocation93_spill] sm:$0xff] }
 0x461   : > { %v3409_v7 = vmax.f32 %v3345_v11, 0.0  ;;  %v2771_v39 = vmul.f32 %v2610_v62, %v2387_v46  ;;  %v6531_v11 = vld [vmem:[#allocation143_spill] sm:$0xff] }
 0x462   : > { %v5903_v29 = vmul.f32 0.020408163, %v6531_v11 }
 0x463   : > { %3473 = vst.msk [vmem:[%s5230_s11 + $0x128] sm:$0xff] %vm1387_vm0, %v3409_v7  ;;  %v3347_v32 = vadd.f32 %v3283_v44, %v2771_v39  ;;  %v2190_v44 = vadd.f32 1e-05, %v2062_v47  ;;  %v2064_v7 = vsub.f32 %v1936_v13, %v2000_v16  ;;  %v6534_v39 = vld [vmem:[#allocation145_spill] sm:$0xff]  ;;  %v6536_v47 = vld [vmem:[#allocation50_spill] sm:$0xff] }
 0x464   : > { %v2620_v46 = vpop.permute.xlu0 %2619  ;;  %v2002_v60 = vmul.f32 %v5903_v29, %v5903_v29  ;;  %v5912_v18 = vmul.f32 0.020408163, %v6534_v39  ;;  %v3287_v16 = vadd.f32 %v6536_v47, %v2903_v21  ;;  %v2393_v21 = vsub.f32 %v6538_v8, %v5694_v41  ;;  %v6540_v8 = vld [vmem:[#allocation57_spill] sm:$0xff] }
 0x465   : > { %v3411_v62 = vmax.f32 %v3347_v32, 0.0  ;;  %v2773_v51 = vmul.f32 %v2620_v46, %v2389_v24  ;;  %2534 = vperm.xlu1 %3781, %v2308_v38   ;;  %v2391_v32 = vsub.f32 %v6535_v45, %v5680_v61  ;;  %v3870_v24 = vpop.eup %3869  ;;  %v2120_v38 = vld [vmem:[%s4958_s30 + $0xe0] sm:$0xff]  ;;  %3875 = vrsqrt.f32 %v2190_v44  ;;  %v2122_v44 = vld [vmem:[%s4958_s30 + $0xf0] sm:$0xff] }
 0x466   : > { %v2004_v11 = vmul.f32 %v5912_v18, %v5912_v18  ;;  %v6537_v46 = vld [vmem:[#allocation146_spill] sm:$0xff]  ;;  %v2312_v45 = vmul.f32 %v3870_v24, %v2120_v38  ;;  %v3872_v47 = vpop.eup %3871 }
 0x467   : > { %3475 = vst.msk [vmem:[%s5230_s11 + $0x138] sm:$0xff] %vm1387_vm0, %v3411_v62  ;;  %v3349_v54 = vadd.f32 %v3285_v23, %v2773_v51  ;;  %v1940_v40 = vmul.f32 0.020408163, %v6537_v46  ;;  %v2905_v23 = vld [vmem:[%s5210_s8 + $0x168] sm:$0xff]  ;;  %v2192_v62 = vadd.f32 1e-05, %v2064_v7  ;;  %v2066_v51 = vsub.f32 %v1938_v27, %v2002_v60 }
 0x468   : > { %v2630_v13 = vpop.permute.xlu0 %2629  ;;  %v6539_v7 = vld [vmem:[#allocation53_spill] sm:$0xff] }
 0x469   : > { %v3413_v22 = vmax.f32 %v3349_v54, 0.0  ;;  %v2775_v39 = vmul.f32 %v2630_v13, %v2391_v32  ;;  %2544 = vperm.xlu1 %3781, %v2310_v30   ;;  %v5929_v54 = vmul.f32 0.020408163, %v5274_v37  ;;  %v3289_v60 = vadd.f32 %v6539_v7, %v2905_v23  ;;  %v3874_v38 = vpop.eup %3873  ;;  %v2909_v7 = vld [vmem:[%s5210_s8 + $0x188] sm:$0xff] }
 0x46a   : > { %v2068_v27 = vsub.f32 %v1940_v40, %v2004_v11  ;;  %3877 = vrsqrt.f32 %v2192_v62  ;;  %v2194_v41 = vadd.f32 1e-05, %v2066_v51  ;;  %v1942_v37 = vmul.f32 0.020408163, %v5276_v43 }
 0x46b   : > { %3477 = vst.msk [vmem:[%s5230_s11 + $0x148] sm:$0xff] %vm1387_vm0, %v3413_v22  ;;  %v3351_v61 = vadd.f32 %v3287_v16, %v2775_v39  ;;  %v1567_v9 = vpop.xlane.xlu1 %1566  ;;  %v2907_v16 = vld [vmem:[%s5210_s8 + $0x178] sm:$0xff]  ;;  %v2006_v24 = vmul.f32 %v5929_v54, %v5929_v54  ;;  %v2395_v11 = vsub.f32 %v4978_v26, %v5425_v28  ;;  %v2314_v40 = vmul.f32 %v3872_v47, %v2122_v44  ;;  %v6541_v28 = vld [vmem:[#allocation47_spill] sm:$0xff] }
 0x46c   : > { %v5931_v32 = vmul.f32 0.020408163, %v1567_v9  ;;  %v2640_v30 = vpop.permute.xlu0 %2639  ;;  %v2880_v9 = vld [vmem:[%s5210_s8 + $0xa0] sm:$0xff]  ;;  %v3291_v43 = vadd.f32 %v6540_v8, %v2907_v16  ;;  %3879 = vrsqrt.f32 %v2194_v41  ;;  %v2368_v47 = vsub.f32 %v6541_v28, %v5704_v56  ;;  %v2913_v28 = vld [vmem:[%s5210_s8 + $0x1a8] sm:$0xff] }
 0x46d   : > { %v3415_v13 = vmax.f32 %v3351_v61, 0.0  ;;  %v2777_v46 = vmul.f32 %v2640_v30, %v2393_v21  ;;  %2554 = vperm.xlu1 %3781, %v2312_v45   ;;  %v2124_v61 = vld [vmem:[%s4958_s30 + $0x100] sm:$0xff]  ;;  %v2196_v21 = vadd.f32 1e-05, %v2068_v27 }
 0x46e   : > { %v2023_v23 = vmul.f32 %v5931_v32, %v5931_v32  ;;  %v2316_v27 = vmul.f32 %v3874_v38, %v2124_v61  ;;  %v2399_v38 = vsub.f32 %v6432_v12, %v5547_v33  ;;  %v6546_v33 = vld [vmem:[#allocation136_spill] sm:$0xff] }
 0x46f   : > { %3479 = vst.msk [vmem:[%s5230_s11 + $0x158] sm:$0xff] %vm1387_vm0, %v3415_v13  ;;  %v3353_v22 = vadd.f32 %v3289_v60, %v2777_v46  ;;  %v1823_v39 = vpop.xlane.xlu1 %1822  ;;  %v2070_v60 = vsub.f32 %v1942_v37, %v2006_v24  ;;  %v2397_v46 = vsub.f32 %v4991_v2, %v5491_v48  ;;  %v3876_v16 = vpop.eup %3875  ;;  %v2126_v37 = vld [vmem:[%s4958_s30 + $0x110] sm:$0xff]  ;;  %3881 = vrsqrt.f32 %v2196_v21 }
 0x470   : > { %v1959_v62 = vmul.f32 0.020408163, %v1823_v39  ;;  %v2650_v51 = vpop.permute.xlu0 %2649  ;;  %v2318_v61 = vmul.f32 %v3876_v16, %v2126_v37 }
 0x471   : > { %v3417_v45 = vmax.f32 %v3353_v22, 0.0  ;;  %v2779_v30 = vmul.f32 %v2650_v51, %v2395_v11  ;;  %2564 = vperm.xlu1 %3781, %v2314_v40   ;;  %v6542_v22 = vld [vmem:[#allocation15_spill] sm:$0xff]  ;;  %v6543_v40 = vld [vmem:[#allocation60_spill] sm:$0xff]  ;;  %v2911_v51 = vld [vmem:[%s5210_s8 + $0x198] sm:$0xff]  ;;  %v2198_v8 = vadd.f32 1e-05, %v2070_v60 }
 0x472   : > { %v2087_v26 = vsub.f32 %v1959_v62, %v2023_v23  ;;  %v3264_v39 = vadd.f32 %v6542_v22, %v2880_v9  ;;  %v3293_v23 = vadd.f32 %v6543_v40, %v2909_v7  ;;  %v2130_v22 = vld [vmem:[%s4958_s30 + $0x130] sm:$0xff] }
 0x473   : > { %3481 = vst.msk [vmem:[%s5230_s11 + $0x168] sm:$0xff] %vm1387_vm0, %v3417_v45  ;;  %v3355_v44 = vadd.f32 %v3291_v43, %v2779_v30  ;;  %v2515_v13 = vpop.permute.xlu1 %2514  ;;  %v2128_v45 = vld [vmem:[%s4958_s30 + $0x120] sm:$0xff]  ;;  %v6544_v30 = vld [vmem:[#allocation64_spill] sm:$0xff] }
 0x474   : > { %v2215_v11 = vadd.f32 1e-05, %v2087_v26  ;;  %v2752_v41 = vmul.f32 %v2515_v13, %v2368_v47  ;;  %v2660_v24 = vpop.permute.xlu0 %2659  ;;  %v3878_v9 = vpop.eup %3877  ;;  %v3295_v7 = vadd.f32 %v6544_v30, %v2911_v51  ;;  %v6545_v47 = vsub.f32 %v5288_v57, %v5285_v34  ;;  %v6548_v57 = vld [vmem:[#allocation153_spill] sm:$0xff]  ;;  %v2134_v30 = vld [vmem:[%s4958_s30 + $0x150] sm:$0xff] }
 0x475   : > { %v3419_v56 = vmax.f32 %v3355_v44, 0.0  ;;  %v2781_v62 = vmul.f32 %v2660_v24, %v2397_v46  ;;  %2574 = vperm.xlu1 %3781, %v2316_v27   ;;  %v2401_v13 = vsub.f32 %v6546_v33, %v5719_v15  ;;  %v2320_v46 = vmul.f32 %v3878_v9, %v2128_v45  ;;  %v6549_v24 = vld [vmem:[#allocation152_spill] sm:$0xff]  ;;  %v6557_v33 = vld [vmem:[#allocation97_spill] sm:$0xff] }
 0x476   : > { %3883 = vrsqrt.f32 %v2215_v11  ;;  %v3328_v2 = vadd.f32 %v3264_v39, %v2752_v41  ;;  %v2200_v44 = vadd.f32 1e-05, %v6545_v47  ;;  %v3880_v27 = vpop.eup %3879  ;;  %v6547_v39 = vld [vmem:[#allocation67_spill] sm:$0xff]  ;;  %v6550_v37 = vsub.f32 %v6548_v57, %v6549_v24 }
 0x477   : > { %3483 = vst.msk [vmem:[%s5230_s11 + $0x178] sm:$0xff] %vm1387_vm0, %v3419_v56  ;;  %v3357_v48 = vadd.f32 %v3293_v23, %v2781_v62  ;;  %3885 = vrsqrt.f32 %v2198_v8  ;;  %v3297_v11 = vadd.f32 %v6547_v39, %v2913_v28  ;;  %v2151_v23 = vld [vmem:[%s4958_s30 + $0x1d8] sm:$0xff]  ;;  %v2322_v62 = vmul.f32 %v3880_v27, %v2130_v22  ;;  %v2132_v8 = vld [vmem:[%s4958_s30 + $0x140] sm:$0xff]  ;;  %v2138_v39 = vld [vmem:[%s4958_s30 + $0x170] sm:$0xff] }
 0x478   : > { %v3392_v43 = vmax.f32 %v3328_v2, 0.0  ;;  %v2670_v21 = vpop.permute.xlu0 %2669  ;;  %3887 = vrsqrt.f32 %v2200_v44  ;;  %v2202_v40 = vadd.f32 1e-05, %v6550_v37  ;;  %v6563_v37 = vld [vmem:[#allocation148_spill] sm:$0xff] }
 0x479   : > { %v3421_v26 = vmax.f32 %v3357_v48, 0.0  ;;  %v2783_v60 = vmul.f32 %v2670_v21, %v2399_v38  ;;  %2584 = vperm.xlu1 %3781, %v2318_v61   ;;  %v3882_v56 = vpop.eup %3881  ;;  %v6551_v38 = vld [vmem:[#allocation156_spill] sm:$0xff]  ;;  %v6552_v61 = vld [vmem:[#allocation155_spill] sm:$0xff] }
 0x47a   : > { %3456 = vst.msk [vmem:[%s5230_s11 + $0xa0] sm:$0xff] %vm1387_vm0, %v3392_v43  ;;  %3889 = vrsqrt.f32 %v2202_v40  ;;  %v6553_v9 = vsub.f32 %v6551_v38, %v6552_v61  ;;  %v2324_v21 = vmul.f32 %v3882_v56, %v2132_v8  ;;  %v2403_v40 = vsub.f32 %v6563_v37, %v5739_v42  ;;  %v6566_v38 = vld [vmem:[#allocation20_spill] sm:$0xff]  ;;  %v6568_v37 = vld [vmem:[#allocation51_spill] sm:$0xff] }
 0x47b   : > { %3485 = vst.msk [vmem:[%s5230_s11 + $0x188] sm:$0xff] %vm1387_vm0, %v3421_v26  ;;  %v3359_v12 = vadd.f32 %v3295_v7, %v2783_v60  ;;  %v6554_v7 = vld [vmem:[#allocation161_spill] sm:$0xff]  ;;  %v6555_v26 = vld [vmem:[#allocation160_spill] sm:$0xff] }
 0x47c   : > { %v2680_v16 = vpop.permute.xlu0 %2679  ;;  %v2204_v43 = vadd.f32 1e-05, %v6553_v9  ;;  %v6556_v60 = vsub.f32 %v6554_v7, %v6555_v26  ;;  %v2214_v7 = vadd.f32 1e-05, %v2086_v35 }
 0x47d   : > { %v3423_v41 = vmax.f32 %v3359_v12, 0.0  ;;  %v2785_v34 = vmul.f32 %v2680_v16, %v2401_v13  ;;  %2594 = vperm.xlu1 %3781, %v2320_v46   ;;  %v2136_v12 = vld [vmem:[%s4958_s30 + $0x160] sm:$0xff]  ;;  %v6558_v13 = vld [vmem:[#allocation95_spill] sm:$0xff] }
 0x47e   : > { %3891 = vrsqrt.f32 %v2204_v43  ;;  %v2206_v28 = vadd.f32 1e-05, %v6556_v60  ;;  %v6559_v46 = vsub.f32 %v6557_v33, %v6558_v13  ;;  %v2148_v13 = vld [vmem:[%s4958_s30 + $0x1c0] sm:$0xff] }
 0x47f   : > { %3487 = vst.msk [vmem:[%s5230_s11 + $0x198] sm:$0xff] %vm1387_vm0, %v3423_v41  ;;  %v3361_v15 = vadd.f32 %v3297_v11, %v2785_v34  ;;  %v2915_v11 = vld [vmem:[%s5210_s8 + $0x1b8] sm:$0xff] }
 0x480   : > { %v3884_v51 = vpop.eup %3883  ;;  %3893 = vrsqrt.f32 %v2206_v28  ;;  %v2208_v27 = vadd.f32 1e-05, %v6559_v46  ;;  %v6560_v41 = vld [vmem:[#allocation17_spill] sm:$0xff]  ;;  %v2216_v28 = vadd.f32 1e-05, %v2088_v53  ;;  %v2150_v46 = vld [vmem:[%s4958_s30 + $0x1d0] sm:$0xff] }
 0x481   : > { %v3425_v2 = vmax.f32 %v3361_v15, 0.0  ;;  %2604 = vperm.xlu1 %3781, %v2322_v62   ;;  %v2343_v48 = vmul.f32 %v3884_v51, %v2151_v23  ;;  %v3886_v45 = vpop.eup %3885  ;;  %v6561_v34 = vld [vmem:[#allocation105_spill] sm:$0xff]  ;;  %v2140_v62 = vld [vmem:[%s4958_s30 + $0x180] sm:$0xff]  ;;  %v6564_v51 = vld [vmem:[#allocation71_spill] sm:$0xff] }
 0x482   : > { %v2326_v47 = vmul.f32 %v3886_v45, %v2134_v30  ;;  %v3888_v44 = vpop.eup %3887  ;;  %3895 = vrsqrt.f32 %v2208_v27  ;;  %v6562_v57 = vsub.f32 %v6560_v41, %v6561_v34  ;;  %v3299_v8 = vadd.f32 %v6564_v51, %v2915_v11  ;;  %v2142_v30 = vld [vmem:[%s4958_s30 + $0x190] sm:$0xff] }
 0x483   : > { %3489 = vst.msk [vmem:[%s5230_s11 + $0x1a8] sm:$0xff] %vm1387_vm0, %v3425_v2  ;;  %2709 = vperm.xlu0 %3782, %v2343_v48   ;;  %v2328_v16 = vmul.f32 %v3888_v44, %v2136_v12  ;;  %v6565_v48 = vld [vmem:[#allocation3_spill] sm:$0xff]  ;;  %v2882_v34 = vld [vmem:[%s5210_s8 + $0xb0] sm:$0xff] }
 0x484   : > { %v3890_v22 = vpop.eup %3889  ;;  %v2210_v24 = vadd.f32 1e-05, %v6562_v57  ;;  %v6567_v61 = vsub.f32 %v6565_v48, %v6566_v38  ;;  %v2154_v57 = vld [vmem:[%s4958_s30 + $0x1f0] sm:$0xff] }
 0x485   : > { %2614 = vperm.xlu1 %3781, %v2324_v21   ;;  %v2330_v23 = vmul.f32 %v3890_v22, %v2138_v39  ;;  %v2858_v38 = vld [vmem:[%s4008_s24 + $0x1f0] sm:$0xff] }
 0x486   : > { %3897 = vrsqrt.f32 %v2210_v24  ;;  %v2212_v9 = vadd.f32 1e-05, %v6567_v61  ;;  %v2153_v61 = vld [vmem:[%s4958_s30 + $0x1e8] sm:$0xff] }
 0x488   : > { %v3892_v56 = vpop.eup %3891  ;;  %3899 = vrsqrt.f32 %v2212_v9 }
 0x489   : > { %2624 = vperm.xlu1 %3781, %v2326_v47   ;;  %v2332_v21 = vmul.f32 %v3892_v56, %v2140_v62  ;;  %v2144_v47 = vld [vmem:[%s4958_s30 + $0x1a0] sm:$0xff]  ;;  %3901 = vrsqrt.f32 %v2214_v7 }
 0x48a   : > { %v3894_v45 = vpop.eup %3893  ;;  %3903 = vrsqrt.f32 %v2216_v28  ;;  %v6569_v56 = vld [vmem:[#allocation18_spill] sm:$0xff] }
 0x48b   : > { %v2334_v26 = vmul.f32 %v3894_v45, %v2142_v30  ;;  %3905 = vrsqrt.f32 %v2218_v20 }
 0x48c   : > { %v3896_v60 = vpop.eup %3895 }
 0x48d   : > { %2634 = vperm.xlu1 %3781, %v2328_v16   ;;  %v2336_v44 = vmul.f32 %v3896_v60, %v2144_v47 }
 0x490   : > { %v2690_v15 = vpop.permute.xlu0 %2689  ;;  %v3898_v12 = vpop.eup %3897 }
 0x491   : > { %v2787_v2 = vmul.f32 %v2690_v15, %v2403_v40  ;;  %2644 = vperm.xlu1 %3781, %v2330_v23   ;;  %v2338_v35 = vmul.f32 %v3898_v12, %v2146_v31  ;;  %v2370_v40 = vsub.f32 %v6568_v37, %v5767_v0  ;;  %v3266_v15 = vadd.f32 %v6569_v56, %v2882_v34  ;;  %v6576_v37 = vld [vmem:[#allocation65_spill] sm:$0xff]  ;;  %v6577_v56 = vld [vmem:[#allocation27_spill] sm:$0xff] }
 0x492   : > { %v3900_v33 = vpop.eup %3899 }
 0x493   : > { %v3363_v43 = vadd.f32 %v3299_v8, %v2787_v2  ;;  %v2340_v6 = vmul.f32 %v3900_v33, %v2148_v13  ;;  %v3902_v50 = vpop.eup %3901  ;;  %v6572_v33 = vld [vmem:[#allocation56_spill] sm:$0xff] }
 0x494   : > { %v3904_v16 = vpop.eup %3903  ;;  %v2342_v3 = vmul.f32 %v3902_v50, %v2150_v46  ;;  %v2372_v13 = vsub.f32 %v6572_v33, %v5809_v4  ;;  %v6573_v50 = vld [vmem:[#allocation21_spill] sm:$0xff]  ;;  %v2888_v4 = vld [vmem:[%s5210_s8 + $0xe0] sm:$0xff] }
 0x495   : > { %v3427_v42 = vmax.f32 %v3363_v43, 0.0  ;;  %2654 = vperm.xlu1 %3781, %v2332_v21   ;;  %v2344_v11 = vmul.f32 %v3904_v16, %v2152_v10  ;;  %v3906_v41 = vpop.eup %3905  ;;  %v2917_v43 = vld [vmem:[%s5210_s8 + $0x1c8] sm:$0xff]  ;;  %v6570_v21 = vld [vmem:[#allocation157_spill] sm:$0xff]  ;;  %v2886_v10 = vld [vmem:[%s5210_s8 + $0xd0] sm:$0xff] }
 0x496   : > { %v2346_v8 = vmul.f32 %v3906_v41, %v2154_v57  ;;  %v2405_v45 = vsub.f32 %v6570_v21, %v5778_v1 }
 0x497   : > { %3491 = vst.msk [vmem:[%s5230_s11 + $0x1b8] sm:$0xff] %vm1387_vm0, %v3427_v42  ;;  %v6571_v42 = vld [vmem:[#allocation74_spill] sm:$0xff] }
 0x498   : > { %v3301_v7 = vadd.f32 %v6571_v42, %v2917_v43 }
 0x499   : > { %2664 = vperm.xlu1 %3781, %v2334_v26  }
 0x49d   : > { %2674 = vperm.xlu1 %3781, %v2336_v44  }
 0x4a1   : > { %2684 = vperm.xlu1 %3781, %v2338_v35   ;;  %v2884_v35 = vld [vmem:[%s5210_s8 + $0xc0] sm:$0xff] }
 0x4a4   : > { %v1573_v53 = vpop.xlane.xlu1 %1572 }
 0x4a5   : > { %v6025_v27 = vmul.f32 0.020408163, %v1573_v53  ;;  %2694 = vperm.xlu1 %3781, %v2340_v6   ;;  %v3268_v53 = vadd.f32 %v6573_v50, %v2884_v35 }
 0x4a7   : > { %v2025_v22 = vmul.f32 %v6025_v27, %v6025_v27 }
 0x4a8   : > { %v1829_v59 = vpop.xlane.xlu1 %1828 }
 0x4a9   : > { %v1961_v39 = vmul.f32 0.020408163, %v1829_v59  ;;  %2704 = vperm.xlu1 %3781, %v2342_v3   ;;  %v6574_v59 = vld [vmem:[#allocation61_spill] sm:$0xff] }
 0x4ab   : > { %v2089_v24 = vsub.f32 %v1961_v39, %v2025_v22  ;;  %v2374_v22 = vsub.f32 %v6574_v59, %v5826_v17 }
 0x4ac   : > { %v2525_v23 = vpop.permute.xlu1 %2524 }
 0x4ad   : > { %v2217_v62 = vadd.f32 1e-05, %v2089_v24  ;;  %v2754_v51 = vmul.f32 %v2525_v23, %v2370_v40  ;;  %2714 = vperm.xlu1 %3781, %v2344_v11   ;;  %v6575_v11 = vld [vmem:[#allocation24_spill] sm:$0xff]  ;;  %v2376_v40 = vsub.f32 %v6576_v37, %v5841_v58 }
 0x4ae   : > { %v3270_v41 = vadd.f32 %v6575_v11, %v2886_v10  ;;  %v6584_v10 = vld [vmem:[#allocation83_spill] sm:$0xff] }
 0x4af   : > { %3907 = vrsqrt.f32 %v2217_v62  ;;  %v3330_v2 = vadd.f32 %v3266_v15, %v2754_v51  ;;  %v3272_v15 = vadd.f32 %v6577_v56, %v2888_v4  ;;  %v2890_v51 = vld [vmem:[%s5210_s8 + $0xf0] sm:$0xff]  ;;  %v6586_v4 = vld [vmem:[#allocation86_spill] sm:$0xff] }
 0x4b1   : > { %v3394_v48 = vmax.f32 %v3330_v2, 0.0  ;;  %2724 = vperm.xlu1 %3781, %v2346_v8   ;;  %v6578_v2 = vld [vmem:[#allocation70_spill] sm:$0xff] }
 0x4b3   : > { %3458 = vst.msk [vmem:[%s5230_s11 + $0xb0] sm:$0xff] %vm1387_vm0, %v3394_v48  ;;  %v2378_v48 = vsub.f32 %v6578_v2, %v5854_v36 }
 0x4b5   : > { %3236 = vperm.xlu1 %3781, %v2858_v38   ;;  %v2155_v38 = vld [vmem:[%s4958_s30 + $0x1f8] sm:$0xff] }
 0x4b9   : > { %v3908_v9 = vpop.eup %3907 }
 0x4ba   : > { %v2345_v0 = vmul.f32 %v3908_v9, %v2153_v61 }
 0x4bc   : > { %2719 = vperm.xlu0 %3782, %v2345_v0   ;;  %v6579_v0 = vld [vmem:[#allocation31_spill] sm:$0xff] }
 0x4bd   : > { %v3274_v58 = vadd.f32 %v6579_v0, %v2890_v51  ;;  %v6588_v51 = vld [vmem:[#allocation78_spill] sm:$0xff] }
 0x4c9   : > { %v2700_v30 = vpop.permute.xlu0 %2699 }
 0x4ca   : > { %v2789_v26 = vmul.f32 %v2700_v30, %v2405_v45  ;;  %v2892_v45 = vld [vmem:[%s5210_s8 + $0x100] sm:$0xff] }
 0x4cc   : > { %v3365_v60 = vadd.f32 %v3301_v7, %v2789_v26  ;;  %v6580_v7 = vld [vmem:[#allocation75_spill] sm:$0xff] }
 0x4cd   : > { %v2380_v26 = vsub.f32 %v6580_v7, %v5862_v52  ;;  %v6592_v7 = vld [vmem:[#allocation52_spill] sm:$0xff] }
 0x4ce   : > { %v3429_v28 = vmax.f32 %v3365_v60, 0.0  ;;  %v6581_v60 = vld [vmem:[#allocation34_spill] sm:$0xff] }
 0x4d0   : > { %3493 = vst.msk [vmem:[%s5230_s11 + $0x1c8] sm:$0xff] %vm1387_vm0, %v3429_v28  ;;  %v3276_v28 = vadd.f32 %v6581_v60, %v2892_v45 }
 0x4dd   : > { %v1579_v47 = vpop.xlane.xlu1 %1578 }
 0x4de   : > { %v6045_v44 = vmul.f32 0.020408163, %v1579_v47 }
 0x4e0   : > { %v2027_v20 = vmul.f32 %v6045_v44, %v6045_v44 }
 0x4e1   : > { %v1835_v12 = vpop.xlane.xlu1 %1834 }
 0x4e2   : > { %v1963_v31 = vmul.f32 0.020408163, %v1835_v12 }
 0x4e4   : > { %v2091_v1 = vsub.f32 %v1963_v31, %v2027_v20  ;;  %v2859_v20 = vld [vmem:[%s4008_s24 + $0x1f8] sm:$0xff]  ;;  %v2894_v31 = vld [vmem:[%s5210_s8 + $0x110] sm:$0xff] }
 0x4e5   : > { %v2535_v6 = vpop.permute.xlu1 %2534 }
 0x4e6   : > { %v2219_v46 = vadd.f32 1e-05, %v2091_v1  ;;  %v2756_v16 = vmul.f32 %v2535_v6, %v2372_v13  ;;  %v6582_v1 = vld [vmem:[#allocation79_spill] sm:$0xff]  ;;  %v6583_v13 = vld [vmem:[#allocation38_spill] sm:$0xff] }
 0x4e7   : > { %v2382_v33 = vsub.f32 %v6582_v1, %v5878_v25  ;;  %v3278_v6 = vadd.f32 %v6583_v13, %v2894_v31  ;;  %v6595_v1 = vld [vmem:[#allocation55_spill] sm:$0xff]  ;;  %v2906_v13 = vld [vmem:[%s5210_s8 + $0x170] sm:$0xff] }
 0x4e8   : > { %3909 = vrsqrt.f32 %v2219_v46  ;;  %v3332_v3 = vadd.f32 %v3268_v53, %v2756_v16  ;;  %v2896_v46 = vld [vmem:[%s5210_s8 + $0x120] sm:$0xff] }
 0x4e9   : > { %v2545_v39 = vpop.permute.xlu1 %2544 }
 0x4ea   : > { %v3396_v34 = vmax.f32 %v3332_v3, 0.0  ;;  %v2758_v57 = vmul.f32 %v2545_v39, %v2374_v22  ;;  %v2384_v3 = vsub.f32 %v6584_v10, %v5890_v63  ;;  %v6585_v22 = vld [vmem:[#allocation41_spill] sm:$0xff]  ;;  %v6598_v10 = vld [vmem:[#allocation59_spill] sm:$0xff] }
 0x4eb   : > { %v3280_v39 = vadd.f32 %v6585_v22, %v2896_v46  ;;  %v6587_v63 = vld [vmem:[#allocation45_spill] sm:$0xff] }
 0x4ec   : > { %3460 = vst.msk [vmem:[%s5230_s11 + $0xc0] sm:$0xff] %vm1387_vm0, %v3396_v34  ;;  %v3334_v24 = vadd.f32 %v3270_v41, %v2758_v57  ;;  %v2898_v41 = vld [vmem:[%s5210_s8 + $0x130] sm:$0xff]  ;;  %v2919_v34 = vld [vmem:[%s5210_s8 + $0x1d8] sm:$0xff] }
 0x4ed   : > { %v2555_v23 = vpop.permute.xlu1 %2554 }
 0x4ee   : > { %v3398_v62 = vmax.f32 %v3334_v24, 0.0  ;;  %v2760_v17 = vmul.f32 %v2555_v23, %v2376_v40  ;;  %v2386_v24 = vsub.f32 %v6586_v4, %v5903_v29  ;;  %v2407_v40 = vsub.f32 %v5387_v49, %v5931_v32  ;;  %v6589_v29 = vld [vmem:[#allocation88_spill] sm:$0xff]  ;;  %v6601_v4 = vld [vmem:[#allocation62_spill] sm:$0xff] }
 0x4ef   : > { %v3282_v23 = vadd.f32 %v6587_v63, %v2898_v41  ;;  %v6600_v41 = vld [vmem:[#allocation96_spill] sm:$0xff] }
 0x4f0   : > { %3462 = vst.msk [vmem:[%s5230_s11 + $0xd0] sm:$0xff] %vm1387_vm0, %v3398_v62  ;;  %v3336_v8 = vadd.f32 %v3272_v15, %v2760_v17  ;;  %v2900_v17 = vld [vmem:[%s5210_s8 + $0x140] sm:$0xff]  ;;  %v2910_v63 = vld [vmem:[%s5210_s8 + $0x190] sm:$0xff] }
 0x4f1   : > { %v2565_v61 = vpop.permute.xlu1 %2564 }
 0x4f2   : > { %v3910_v9 = vpop.eup %3909  ;;  %v3400_v43 = vmax.f32 %v3336_v8, 0.0  ;;  %v2762_v21 = vmul.f32 %v2565_v61, %v2378_v48  ;;  %v3303_v8 = vadd.f32 %v6588_v51, %v2919_v34  ;;  %v6590_v61 = vld [vmem:[#allocation48_spill] sm:$0xff]  ;;  %v6604_v51 = vld [vmem:[#allocation66_spill] sm:$0xff] }
 0x4f3   : > { %v2347_v30 = vmul.f32 %v3910_v9, %v2155_v38  ;;  %v2388_v38 = vsub.f32 %v6589_v29, %v5912_v18  ;;  %v3284_v9 = vadd.f32 %v6590_v61, %v2900_v17  ;;  %v2912_v29 = vld [vmem:[%s5210_s8 + $0x1a0] sm:$0xff] }
 0x4f4   : > { %3464 = vst.msk [vmem:[%s5230_s11 + $0xe0] sm:$0xff] %vm1387_vm0, %v3400_v43  ;;  %v3338_v42 = vadd.f32 %v3274_v58, %v2762_v21  ;;  %v2902_v43 = vld [vmem:[%s5210_s8 + $0x150] sm:$0xff] }
 0x4f5   : > { %2729 = vperm.xlu0 %3782, %v2347_v30   ;;  %v2575_v36 = vpop.permute.xlu1 %2574  ;;  %v6591_v30 = vld [vmem:[#allocation90_spill] sm:$0xff] }
 0x4f6   : > { %v3402_v47 = vmax.f32 %v3338_v42, 0.0  ;;  %v2764_v12 = vmul.f32 %v2575_v36, %v2380_v26  ;;  %v2390_v42 = vsub.f32 %v6591_v30, %v5929_v54  ;;  %v3286_v26 = vadd.f32 %v6592_v7, %v2902_v43 }
 0x4f8   : > { %3466 = vst.msk [vmem:[%s5230_s11 + $0xf0] sm:$0xff] %vm1387_vm0, %v3402_v47  ;;  %v3340_v35 = vadd.f32 %v3276_v28, %v2764_v12  ;;  %v2904_v28 = vld [vmem:[%s5210_s8 + $0x160] sm:$0xff] }
 0x4f9   : > { %3241 = vperm.xlu0 %3782, %v2859_v20   ;;  %v2585_v52 = vpop.permute.xlu1 %2584  ;;  %v6593_v12 = vld [vmem:[#allocation150_spill] sm:$0xff]  ;;  %v6594_v20 = vld [vmem:[#allocation92_spill] sm:$0xff] }
 0x4fa   : > { %v3404_v50 = vmax.f32 %v3340_v35, 0.0  ;;  %v2766_v53 = vmul.f32 %v2585_v52, %v2382_v33  ;;  %v2392_v31 = vsub.f32 %v6594_v20, %v6593_v12  ;;  %v3288_v33 = vadd.f32 %v6595_v1, %v2904_v28  ;;  %v2916_v12 = vld [vmem:[%s5210_s8 + $0x1c0] sm:$0xff] }
 0x4fc   : > { %3468 = vst.msk [vmem:[%s5230_s11 + $0x100] sm:$0xff] %vm1387_vm0, %v3404_v50  ;;  %v3342_v16 = vadd.f32 %v3278_v6, %v2766_v53  ;;  %v6596_v50 = vld [vmem:[#allocation151_spill] sm:$0xff]  ;;  %v6597_v53 = vld [vmem:[#allocation94_spill] sm:$0xff] }
 0x4fd   : > { %v2595_v59 = vpop.permute.xlu1 %2594  ;;  %v2394_v46 = vsub.f32 %v6597_v53, %v6596_v50  ;;  %v2918_v50 = vld [vmem:[%s5210_s8 + $0x1d0] sm:$0xff] }
 0x4fe   : > { %v3406_v11 = vmax.f32 %v3342_v16, 0.0  ;;  %v2768_v25 = vmul.f32 %v2595_v59, %v2384_v3  ;;  %v3290_v3 = vadd.f32 %v6598_v10, %v2906_v13 }
 0x500   : > { %3470 = vst.msk [vmem:[%s5230_s11 + $0x110] sm:$0xff] %vm1387_vm0, %v3406_v11  ;;  %v3344_v57 = vadd.f32 %v3280_v39, %v2768_v25  ;;  %v2908_v39 = vld [vmem:[%s5210_s8 + $0x180] sm:$0xff] }
 0x501   : > { %v2605_v37 = vpop.permute.xlu1 %2604  ;;  %v6599_v25 = vld [vmem:[#allocation154_spill] sm:$0xff] }
 0x502   : > { %v3408_v56 = vmax.f32 %v3344_v57, 0.0  ;;  %v2770_v15 = vmul.f32 %v2605_v37, %v2386_v24  ;;  %v2710_v62 = vpop.permute.xlu0 %2709  ;;  %v2396_v34 = vsub.f32 %v6600_v41, %v6599_v25  ;;  %v3292_v24 = vadd.f32 %v6601_v4, %v2908_v39  ;;  %v2920_v25 = vld [vmem:[%s5210_s8 + $0x1e0] sm:$0xff] }
 0x503   : > { %v2791_v2 = vmul.f32 %v2710_v62, %v2407_v40 }
 0x504   : > { %3472 = vst.msk [vmem:[%s5230_s11 + $0x120] sm:$0xff] %vm1387_vm0, %v3408_v56  ;;  %v3346_v48 = vadd.f32 %v3282_v23, %v2770_v15  ;;  %v6602_v56 = vld [vmem:[#allocation159_spill] sm:$0xff] }
 0x505   : > { %v3367_v49 = vadd.f32 %v3303_v8, %v2791_v2  ;;  %v2615_v32 = vpop.permute.xlu1 %2614  ;;  %v6603_v15 = vld [vmem:[#allocation99_spill] sm:$0xff]  ;;  %v3294_v8 = vadd.f32 %v6604_v51, %v2910_v63 }
 0x506   : > { %v3410_v0 = vmax.f32 %v3346_v48, 0.0  ;;  %v2772_v58 = vmul.f32 %v2615_v32, %v2388_v38  ;;  %v2398_v62 = vsub.f32 %v6603_v15, %v6602_v56  ;;  %v6606_v32 = vld [vmem:[#allocation112_spill] sm:$0xff] }
 0x507   : > { %v3431_v21 = vmax.f32 %v3367_v49, 0.0  ;;  %v6605_v49 = vld [vmem:[#allocation4_spill] sm:$0xff] }
 0x508   : > { %3474 = vst.msk [vmem:[%s5230_s11 + $0x130] sm:$0xff] %vm1387_vm0, %v3410_v0  ;;  %v3348_v45 = vadd.f32 %v3284_v9, %v2772_v58  ;;  %v2400_v61 = vsub.f32 %v6606_v32, %v6605_v49  ;;  %v6607_v0 = vld [vmem:[#allocation69_spill] sm:$0xff]  ;;  %v2409_v49 = vsub.f32 %v5450_v5, %v6025_v27 }
 0x509   : > { %3495 = vst.msk [vmem:[%s5230_s11 + $0x1d8] sm:$0xff] %vm1387_vm0, %v3431_v21  ;;  %v2625_v18 = vpop.permute.xlu1 %2624  ;;  %v3296_v58 = vadd.f32 %v6607_v0, %v2912_v29  ;;  %v2921_v29 = vld [vmem:[%s5210_s8 + $0x1e8] sm:$0xff] }
 0x50a   : > { %v3412_v36 = vmax.f32 %v3348_v45, 0.0  ;;  %v2774_v60 = vmul.f32 %v2625_v18, %v2390_v42  ;;  %v2914_v45 = vld [vmem:[%s5210_s8 + $0x1b0] sm:$0xff]  ;;  %v6608_v42 = vld [vmem:[#allocation103_spill] sm:$0xff]  ;;  %v6609_v18 = vld [vmem:[#allocation138_spill] sm:$0xff] }
 0x50b   : > { %v2402_v7 = vsub.f32 %v6609_v18, %v6608_v42 }
 0x50c   : > { %3476 = vst.msk [vmem:[%s5230_s11 + $0x140] sm:$0xff] %vm1387_vm0, %v3412_v36  ;;  %v3350_v47 = vadd.f32 %v3286_v26, %v2774_v60  ;;  %v6610_v36 = vld [vmem:[#allocation73_spill] sm:$0xff] }
 0x50d   : > { %v2635_v35 = vpop.permute.xlu1 %2634  ;;  %v3298_v60 = vadd.f32 %v6610_v36, %v2914_v45  ;;  %v2411_v45 = vsub.f32 %v5686_v55, %v6045_v44 }
 0x50e   : > { %v3414_v54 = vmax.f32 %v3350_v47, 0.0  ;;  %v2776_v52 = vmul.f32 %v2635_v35, %v2392_v31  ;;  %v6611_v31 = vld [vmem:[#allocation2_spill] sm:$0xff]  ;;  %v6612_v35 = vld [vmem:[#allocation149_spill] sm:$0xff] }
 0x50f   : > { %v2404_v1 = vsub.f32 %v6612_v35, %v6611_v31 }
 0x510   : > { %3478 = vst.msk [vmem:[%s5230_s11 + $0x150] sm:$0xff] %vm1387_vm0, %v3414_v54  ;;  %v3352_v6 = vadd.f32 %v3288_v33, %v2776_v52  ;;  %v6613_v54 = vld [vmem:[#allocation76_spill] sm:$0xff] }
 0x511   : > { %v2645_v16 = vpop.permute.xlu1 %2644  ;;  %v3300_v52 = vadd.f32 %v6613_v54, %v2916_v12 }
 0x512   : > { %v3416_v59 = vmax.f32 %v3352_v6, 0.0  ;;  %v2778_v22 = vmul.f32 %v2645_v16, %v2394_v46  ;;  %v6614_v46 = vld [vmem:[#allocation30_spill] sm:$0xff] }
 0x513   : > { %v6615_v16 = vld [vmem:[#allocation158_spill] sm:$0xff] }
 0x514   : > { %3480 = vst.msk [vmem:[%s5230_s11 + $0x160] sm:$0xff] %vm1387_vm0, %v3416_v59  ;;  %v3354_v11 = vadd.f32 %v3290_v3, %v2778_v22  ;;  %v2406_v10 = vsub.f32 %v6615_v16, %v6614_v46  ;;  %v6616_v59 = vld [vmem:[#allocation80_spill] sm:$0xff] }
 0x515   : > { %v2655_v57 = vpop.permute.xlu1 %2654  ;;  %v3302_v22 = vadd.f32 %v6616_v59, %v2918_v50 }
 0x516   : > { %v3418_v37 = vmax.f32 %v3354_v11, 0.0  ;;  %v2780_v40 = vmul.f32 %v2655_v57, %v2396_v34  ;;  %v6617_v34 = vld [vmem:[#allocation26_spill] sm:$0xff] }
 0x517   : > { %v2408_v57 = vsub.f32 %v6617_v34, %v5741_v14 }
 0x518   : > { %3482 = vst.msk [vmem:[%s5230_s11 + $0x170] sm:$0xff] %vm1387_vm0, %v3418_v37  ;;  %v3356_v23 = vadd.f32 %v3292_v24, %v2780_v40  ;;  %v6618_v24 = vld [vmem:[#allocation84_spill] sm:$0xff] }
 0x519   : > { %v2665_v17 = vpop.permute.xlu1 %2664  ;;  %v3304_v37 = vadd.f32 %v6618_v24, %v2920_v25 }
 0x51a   : > { %v3420_v2 = vmax.f32 %v3356_v23, 0.0  ;;  %v2782_v48 = vmul.f32 %v2665_v17, %v2398_v62  ;;  %v2922_v62 = vld [vmem:[%s5210_s8 + $0x1f0] sm:$0xff]  ;;  %v6619_v17 = vld [vmem:[#allocation110_spill] sm:$0xff] }
 0x51b   : > { %v2410_v51 = vsub.f32 %v6619_v17, %v5780_v19 }
 0x51c   : > { %3484 = vst.msk [vmem:[%s5230_s11 + $0x180] sm:$0xff] %vm1387_vm0, %v3420_v2  ;;  %v3358_v38 = vadd.f32 %v3294_v8, %v2782_v48 }
 0x51d   : > { %v2675_v9 = vpop.permute.xlu1 %2674 }
 0x51e   : > { %v3422_v43 = vmax.f32 %v3358_v38, 0.0  ;;  %v2784_v21 = vmul.f32 %v2675_v9, %v2400_v61  ;;  %v6620_v61 = vld [vmem:[#allocation81_spill] sm:$0xff] }
 0x51f   : > { %v3305_v9 = vadd.f32 %v6620_v61, %v2921_v29 }
 0x520   : > { %3486 = vst.msk [vmem:[%s5230_s11 + $0x190] sm:$0xff] %vm1387_vm0, %v3422_v43  ;;  %v3360_v30 = vadd.f32 %v3296_v58, %v2784_v21  ;;  %v2923_v21 = vld [vmem:[%s5210_s8 + $0x1f8] sm:$0xff] }
 0x521   : > { %v2685_v26 = vpop.permute.xlu1 %2684 }
 0x522   : > { %v3424_v28 = vmax.f32 %v3360_v30, 0.0  ;;  %v2786_v47 = vmul.f32 %v2685_v26, %v2402_v7 }
 0x524   : > { %3488 = vst.msk [vmem:[%s5230_s11 + $0x1a0] sm:$0xff] %vm1387_vm0, %v3424_v28  ;;  %v3362_v20 = vadd.f32 %v3298_v60, %v2786_v47 }
 0x525   : > { %v2695_v33 = vpop.permute.xlu1 %2694 }
 0x526   : > { %v3426_v13 = vmax.f32 %v3362_v20, 0.0  ;;  %v2788_v6 = vmul.f32 %v2695_v33, %v2404_v1 }
 0x528   : > { %3490 = vst.msk [vmem:[%s5230_s11 + $0x1b0] sm:$0xff] %vm1387_vm0, %v3426_v13  ;;  %v3364_v53 = vadd.f32 %v3300_v52, %v2788_v6 }
 0x529   : > { %v2705_v3 = vpop.permute.xlu1 %2704 }
 0x52a   : > { %v3428_v39 = vmax.f32 %v3364_v53, 0.0  ;;  %v2790_v11 = vmul.f32 %v2705_v3, %v2406_v10 }
 0x52c   : > { %3492 = vst.msk [vmem:[%s5230_s11 + $0x1c0] sm:$0xff] %vm1387_vm0, %v3428_v39  ;;  %v3366_v41 = vadd.f32 %v3302_v22, %v2790_v11 }
 0x52d   : > { %v2715_v4 = vpop.permute.xlu1 %2714 }
 0x52e   : > { %v3430_v40 = vmax.f32 %v3366_v41, 0.0  ;;  %v2792_v63 = vmul.f32 %v2715_v4, %v2408_v57 }
 0x530   : > { %3494 = vst.msk [vmem:[%s5230_s11 + $0x1d0] sm:$0xff] %vm1387_vm0, %v3430_v40  ;;  %v3368_v23 = vadd.f32 %v3304_v37, %v2792_v63 }
 0x531   : > { %v2725_v56 = vpop.permute.xlu1 %2724 }
 0x532   : > { %v3432_v15 = vmax.f32 %v3368_v23, 0.0  ;;  %v2794_v8 = vmul.f32 %v2725_v56, %v2410_v51 }
 0x534   : > { %3496 = vst.msk [vmem:[%s5230_s11 + $0x1e0] sm:$0xff] %vm1387_vm0, %v3432_v15 }
 0x535   : > { %v3237_v14 = vpop.permute.xlu1 %3236 }
 0x536   : > { %v3306_v2 = vadd.f32 %v3237_v14, %v2922_v62 }
 0x538   : > { %v3370_v48 = vadd.f32 %v3306_v2, %v2794_v8 }
 0x53a   : > { %v3434_v38 = vmax.f32 %v3370_v48, 0.0 }
 0x53b   : > { %v2720_v32 = vpop.permute.xlu0 %2719 }
 0x53c   : > { %3498 = vst.msk [vmem:[%s5230_s11 + $0x1f0] sm:$0xff] %vm1387_vm0, %v3434_v38  ;;  %v2793_v0 = vmul.f32 %v2720_v32, %v2409_v49 }
 0x53e   : > { %v3369_v58 = vadd.f32 %v3305_v9, %v2793_v0 }
 0x540   : > { %v3433_v43 = vmax.f32 %v3369_v58, 0.0 }
 0x542   : > { %3497 = vst.msk [vmem:[%s5230_s11 + $0x1e8] sm:$0xff] %vm1387_vm0, %v3433_v43 }
 0x574   : > { %v2730_v19 = vpop.permute.xlu0 %2729 }
 0x575   : > { %v2795_v42 = vmul.f32 %v2730_v19, %v2411_v45 }
 0x578   : > { %v3242_v30 = vpop.permute.xlu0 %3241 }
 0x579   : > { %v3307_v18 = vadd.f32 %v3242_v30, %v2923_v21 }
 0x57b   : > { %v3371_v5 = vadd.f32 %v3307_v18, %v2795_v42 }
 0x57d   : > { %v3435_v27 = vmax.f32 %v3371_v5, 0.0 }
 0x57f   : > { %3499 = vst.msk [vmem:[%s5230_s11 + $0x1f8] sm:$0xff] %vm1387_vm0, %v3435_v27 }
 0x580 PF: > { %s15_s18 = sadd.s32 1, %s3917_s18  }
 0x581   : > { %p12_p4 = scmp.ge.s32.totalorder %s15_s18, 6  }
 0x583   :  { %14 = sbr.rel (!%p12_p4) target bundleno = 1 (0x1), region = 79 }

</bundles_post_ra>
